<compile_context>
chip_gen: v7x
topology: tpu7x:2x2x1
jax: 0.10.0
libtpu: 0.0.40
codegen_flags: <defaults>
</compile_context>

<pallas_src>
import functools

import jax
import jax.numpy as jnp
from jax import lax
from jax.experimental import pallas as pl
from jax.experimental.pallas import tpu as pltpu

N_CHANNELS = 4      # args.n_channels
IMG_ENC_SIZE = 32   # args.img_enc_size
IMG_HW = 50         # spatial size implied by the 4*4*n_channels flatten
NB = 8              # batch rows per grid step (sublane aligned)


# ---------------------------------------------------------------------------
# Weight preprocessing (tiny, trace-time XLA glue)
# ---------------------------------------------------------------------------
def _conv_layer_mats(w, b, wi):
    """Torch conv weight (Cout,Cin,3,3), bias (Cout,) ->
       M_stack (3, Wi*Cin, Wo*Cout), bias_row (1, Wo*Cout), S_stack (2, Wo*Cout, Wp*Cout).

    M_dh[(wo+dw)*Cin + ci, wo*Cout + co] = w[co, ci, dh, dw]   (banded conv matrix)
    S_pw[(2wp+pw)*C + c,  wp*C + c]      = 1                   (W-pool selection)
    """
    cout, cin = int(w.shape[0]), int(w.shape[1])
    wo = wi - 2
    wp = wo // 2
    w = w.astype(jnp.float32)

    m_list = []
    for dh in range(3):
        m = jnp.zeros((wi * cin, wo * cout), jnp.float32)
        for dw in range(3):
            m = m + jnp.kron(jnp.eye(wi, wo, k=-dw, dtype=jnp.float32),
                             jnp.transpose(w[:, :, dh, dw]))
        m_list.append(m)
    m_stack = jnp.stack(m_list)                                # (3, Wi*Cin, Wo*Cout)

    s_list = []
    for pw in range(2):
        e = jnp.zeros((wo, wp), jnp.float32).at[
            2 * jnp.arange(wp) + pw, jnp.arange(wp)].set(1.0)
        s_list.append(jnp.kron(e, jnp.eye(cout, dtype=jnp.float32)))
    s_stack = jnp.stack(s_list)                                # (2, Wo*Cout, Wp*Cout)

    bias_row = jnp.tile(b.astype(jnp.float32), wo).reshape(1, wo * cout)
    return m_stack, bias_row, s_stack


def _head_mats(w1, b1, w2, b2, c, hp3, wp3):
    """Fold fc2(fc1(x)) (no activation between) into one matmul and permute the
    folded weight's feature axis from torch NCHW-flatten order (c*16+h*4+w) to
    the kernel's activation layout (row block h, lane w*C + c)."""
    w1 = w1.astype(jnp.float32)
    w2 = w2.astype(jnp.float32)
    b1 = b1.astype(jnp.float32)
    b2 = b2.astype(jnp.float32)
    e2 = int(w2.shape[0])
    w_head = w1.T @ w2.T                                       # (F, E2)
    b_head = (b1 @ w2.T + b2).reshape(1, e2)                   # (1, E2)
    wh = w_head.reshape(c, hp3, wp3, e2).transpose(1, 2, 0, 3).reshape(hp3, wp3 * c, e2)
    return wh, b_head


# ---------------------------------------------------------------------------
# Fused forward pass (single pallas_call)
# ---------------------------------------------------------------------------
@jax.jit
def img_enc_forward(x_nchw, params):
    """Pallas implementation of ImgEnc.forward.  x_nchw: (N, 3, 50, 50)."""
    n, cin0, h, w = x_nchw.shape
    c = int(params["w_conv1"].shape[0])
    e2 = int(params["w_fc2"].shape[0])

    hp1, wp1 = (h - 2) // 2, (w - 2) // 2          # 24, 24
    hp2, wp2 = (hp1 - 2) // 2, (wp1 - 2) // 2      # 11, 11
    hp3, wp3 = (hp2 - 2) // 2, (wp2 - 2) // 2      # 4, 4

    g = -(-n // NB)
    nb_tot = g * NB

    # ---- input relayout (1x data, pure XLA glue): row = h*NB + n, lane = w*Cin + ci
    x = jnp.pad(x_nchw.astype(jnp.float32),
                ((0, nb_tot - n), (0, 0), (0, 0), (0, 0)))
    x_in = x.reshape(g, NB, cin0, h, w).transpose(0, 3, 1, 4, 2).reshape(g, h * NB, w * cin0)

    # ---- weight preprocessing (tiny)
    m1, br1, s1 = _conv_layer_mats(params["w_conv1"], params["b_conv1"], w)
    m2, br2, s2 = _conv_layer_mats(params["w_conv2"], params["b_conv2"], wp1)
    m3, br3, s3 = _conv_layer_mats(params["w_conv3"], params["b_conv3"], wp2)
    wh, bh = _head_mats(params["w_fc1"], params["b_fc1"],
                        params["w_fc2"], params["b_fc2"], c, hp3, wp3)

    def kernel(x_ref, m1_ref, b1_ref, s1_ref, m2_ref, b2_ref, s2_ref,
               m3_ref, b3_ref, s3_ref, wh_ref, bh_ref, o_ref,
               c1_scr, p1_scr, c2_scr, p2_scr, c3_scr, p3_scr):

        def conv_relu_pool(read_rows, hi, m_ref, b_ref, s_ref, conv_scr, pool_scr):
            ho, hp = hi - 2, (hi - 2) // 2
            # 3x3 conv as 3 banded matmuls (one per kernel row dh), MXU f32 acc
            acc = jnp.dot(read_rows(0, ho * NB), m_ref[0],
                          preferred_element_type=jnp.float32)
            acc = acc + jnp.dot(read_rows(NB, (ho + 1) * NB), m_ref[1],
                                preferred_element_type=jnp.float32)
            acc = acc + jnp.dot(read_rows(2 * NB, (ho + 2) * NB), m_ref[2],
                                preferred_element_type=jnp.float32)
            conv_scr[...] = jnp.maximum(acc + b_ref[...], 0.0)   # bias + ReLU
            # max-pool along H: pairwise max of aligned NB-row blocks
            for hp_i in range(hp):
                r0 = 2 * hp_i * NB
                pool_scr[hp_i * NB:(hp_i + 1) * NB, :] = jnp.maximum(
                    conv_scr[r0:r0 + NB, :], conv_scr[r0 + NB:r0 + 2 * NB, :])
            bph = pool_scr[...]
            # max-pool along W via 0/1 selection matmuls (MXU lane compaction)
            return jnp.maximum(
                jnp.dot(bph, s_ref[0], preferred_element_type=jnp.float32),
                jnp.dot(bph, s_ref[1], preferred_element_type=jnp.float32))

        a1 = conv_relu_pool(lambda lo, hi_: x_ref[0, lo:hi_, :], h,
                            m1_ref, b1_ref, s1_ref, c1_scr, p1_scr)
        a2 = conv_relu_pool(lambda lo, hi_: a1[lo:hi_, :], hp1,
                            m2_ref, b2_ref, s2_ref, c2_scr, p2_scr)
        a3 = conv_relu_pool(lambda lo, hi_: a2[lo:hi_, :], hp2,
                            m3_ref, b3_ref, s3_ref, c3_scr, p3_scr)

        # fused (fc2 o fc1) head: one folded weight, split over the h row blocks
        o = bh_ref[...]
        for hh in range(hp3):
            o = o + jnp.dot(a3[hh * NB:(hh + 1) * NB, :], wh_ref[hh],
                            preferred_element_type=jnp.float32)
        o_ref[...] = o.astype(o_ref.dtype)

    out = pl.pallas_call(
        kernel,
        out_shape=jax.ShapeDtypeStruct((nb_tot, e2), jnp.float32),
        grid=(g,),
        in_specs=[
            pl.BlockSpec((1, h * NB, w * cin0), lambda i: (i, 0, 0)),
            pl.BlockSpec(m1.shape, lambda i: (0, 0, 0)),
            pl.BlockSpec(br1.shape, lambda i: (0, 0)),
            pl.BlockSpec(s1.shape, lambda i: (0, 0, 0)),
            pl.BlockSpec(m2.shape, lambda i: (0, 0, 0)),
            pl.BlockSpec(br2.shape, lambda i: (0, 0)),
            pl.BlockSpec(s2.shape, lambda i: (0, 0, 0)),
            pl.BlockSpec(m3.shape, lambda i: (0, 0, 0)),
            pl.BlockSpec(br3.shape, lambda i: (0, 0)),
            pl.BlockSpec(s3.shape, lambda i: (0, 0, 0)),
            pl.BlockSpec(wh.shape, lambda i: (0, 0, 0)),
            pl.BlockSpec(bh.shape, lambda i: (0, 0)),
        ],
        out_specs=pl.BlockSpec((NB, e2), lambda i: (i, 0)),
        scratch_shapes=[
            pltpu.VMEM(((h - 2) * NB, (w - 2) * c), jnp.float32),      # conv1 out
            pltpu.VMEM((hp1 * NB, (w - 2) * c), jnp.float32),          # conv1 H-pooled
            pltpu.VMEM(((hp1 - 2) * NB, (wp1 - 2) * c), jnp.float32),  # conv2 out
            pltpu.VMEM((hp2 * NB, (wp1 - 2) * c), jnp.float32),        # conv2 H-pooled
            pltpu.VMEM(((hp2 - 2) * NB, (wp2 - 2) * c), jnp.float32),  # conv3 out
            pltpu.VMEM((hp3 * NB, (wp2 - 2) * c), jnp.float32),        # conv3 H-pooled
        ],
        compiler_params=pltpu.CompilerParams(
            dimension_semantics=("arbitrary",)),
    )(x_in, m1, br1, s1, m2, br2, s2, m3, br3, s3, wh, bh)

    return out[:n]


# ---------------------------------------------------------------------------
# Pure-JAX reference (for self-validation only)
# ---------------------------------------------------------------------------
def img_enc_reference(x_nchw, params):
    x = x_nchw.astype(jnp.float32)
    for i in (1, 2, 3):
        w = params[f"w_conv{i}"].astype(jnp.float32)
        b = params[f"b_conv{i}"].astype(jnp.float32)
        x = lax.conv_general_dilated(
            x, w, (1, 1), "VALID",
            dimension_numbers=("NCHW", "OIHW", "NCHW")) + b[None, :, None, None]
        x = jnp.maximum(x, 0.0)
        x = lax.reduce_window(x, -jnp.inf, lax.max,
                              (1, 1, 2, 2), (1, 1, 2, 2), "VALID")
    flat = x.reshape(x.shape[0], -1)
    h = flat @ params["w_fc1"].T.astype(jnp.float32) + params["b_fc1"]
    return h @ params["w_fc2"].T.astype(jnp.float32) + params["b_fc2"]


# ---------------------------------------------------------------------------
# Deterministic parameter init (synthetic; shapes follow the module __init__)
# ---------------------------------------------------------------------------
def init_params(key, n_channels, img_enc_size):
    ks = jax.random.split(key, 10)
    C, E = n_channels, img_enc_size
    F = 4 * 4 * C
    def nrm(k, shape, scale=0.1):
        return (scale * jax.random.normal(k, shape)).astype(jnp.float32)
    return {
        "w_conv1": nrm(ks[0], (C, 3, 3, 3)), "b_conv1": nrm(ks[1], (C,)),
        "w_conv2": nrm(ks[2], (C, C, 3, 3)), "b_conv2": nrm(ks[3], (C,)),
        "w_conv3": nrm(ks[4], (C, C, 3, 3)), "b_conv3": nrm(ks[5], (C,)),
        "w_fc1": nrm(ks[6], (E, F)), "b_fc1": nrm(ks[7], (E,)),
        "w_fc2": nrm(ks[8], (E, E)), "b_fc2": nrm(ks[9], (E,)),
    }


if __name__ == "__main__":
    key = jax.random.PRNGKey(0)
    k_x, k_p = jax.random.split(key)
    params = init_params(k_p, N_CHANNELS, IMG_ENC_SIZE)
    x = jax.random.normal(k_x, (2, 3, IMG_HW, IMG_HW), dtype=jnp.float32)

    out = img_enc_forward(x, params)
    out = jax.block_until_ready(out)
    assert out.shape == (2, IMG_ENC_SIZE), out.shape

    ref = jax.block_until_ready(img_enc_reference(x, params))
    assert jnp.allclose(out, ref, rtol=2e-3, atol=2e-3), \
        float(jnp.max(jnp.abs(out - ref)))

    print("KERNEL_OK")
</pallas_src>

<mosaic_0001>
module attributes {stable_mosaic.version = 11 : i64} {
  func.func @kernel(%arg0: i32, %arg1: memref<1x400x150xf32, #tpu.memory_space<vmem>>, %arg2: memref<3x150x192xf32, #tpu.memory_space<vmem>>, %arg3: memref<1x192xf32, #tpu.memory_space<vmem>>, %arg4: memref<2x192x96xf32, #tpu.memory_space<vmem>>, %arg5: memref<3x96x88xf32, #tpu.memory_space<vmem>>, %arg6: memref<1x88xf32, #tpu.memory_space<vmem>>, %arg7: memref<2x88x44xf32, #tpu.memory_space<vmem>>, %arg8: memref<3x44x36xf32, #tpu.memory_space<vmem>>, %arg9: memref<1x36xf32, #tpu.memory_space<vmem>>, %arg10: memref<2x36x16xf32, #tpu.memory_space<vmem>>, %arg11: memref<4x16x32xf32, #tpu.memory_space<vmem>>, %arg12: memref<1x32xf32, #tpu.memory_space<vmem>>, %arg13: memref<8x32xf32, #tpu.memory_space<vmem>>, %arg14: memref<384x192xf32, #tpu.memory_space<vmem>>, %arg15: memref<192x192xf32, #tpu.memory_space<vmem>>, %arg16: memref<176x88xf32, #tpu.memory_space<vmem>>, %arg17: memref<88x88xf32, #tpu.memory_space<vmem>>, %arg18: memref<72x36xf32, #tpu.memory_space<vmem>>, %arg19: memref<32x36xf32, #tpu.memory_space<vmem>>) attributes {dimension_semantics = [#tpu.dimension_semantics<arbitrary>], iteration_bounds = array<i64: 1>, scalar_prefetch = 0 : i64, scratch_operands = 6 : i64, tpu.core_type = #tpu.core_type<tc>, window_params = [{transform_indices = @transform_0, window_bounds = array<i64: 1, 400, 150>}, {pipeline_mode = #tpu.pipeline_mode<synchronous>, transform_indices = @transform_1, window_bounds = array<i64: 3, 150, 192>}, {pipeline_mode = #tpu.pipeline_mode<synchronous>, transform_indices = @transform_2, window_bounds = array<i64: 1, 192>}, {pipeline_mode = #tpu.pipeline_mode<synchronous>, transform_indices = @transform_3, window_bounds = array<i64: 2, 192, 96>}, {pipeline_mode = #tpu.pipeline_mode<synchronous>, transform_indices = @transform_4, window_bounds = array<i64: 3, 96, 88>}, {pipeline_mode = #tpu.pipeline_mode<synchronous>, transform_indices = @transform_5, window_bounds = array<i64: 1, 88>}, {pipeline_mode = #tpu.pipeline_mode<synchronous>, transform_indices = @transform_6, window_bounds = array<i64: 2, 88, 44>}, {pipeline_mode = #tpu.pipeline_mode<synchronous>, transform_indices = @transform_7, window_bounds = array<i64: 3, 44, 36>}, {pipeline_mode = #tpu.pipeline_mode<synchronous>, transform_indices = @transform_8, window_bounds = array<i64: 1, 36>}, {pipeline_mode = #tpu.pipeline_mode<synchronous>, transform_indices = @transform_9, window_bounds = array<i64: 2, 36, 16>}, {pipeline_mode = #tpu.pipeline_mode<synchronous>, transform_indices = @transform_10, window_bounds = array<i64: 4, 16, 32>}, {pipeline_mode = #tpu.pipeline_mode<synchronous>, transform_indices = @transform_11, window_bounds = array<i64: 1, 32>}, {transform_indices = @transform_12, window_bounds = array<i64: 8, 32>}]} {
    %c0 = arith.constant 0 : index
    %c0_0 = arith.constant 0 : index
    %c0_1 = arith.constant 0 : index
    %0 = vector.load %arg1[%c0, %c0_0, %c0_1] : memref<1x400x150xf32, #tpu.memory_space<vmem>>, vector<1x384x150xf32>
    %1 = vector.shape_cast %0 : vector<1x384x150xf32> to vector<384x150xf32>
    %c0_2 = arith.constant 0 : index
    %c0_3 = arith.constant 0 : index
    %c0_4 = arith.constant 0 : index
    %2 = vector.load %arg2[%c0_2, %c0_3, %c0_4] : memref<3x150x192xf32, #tpu.memory_space<vmem>>, vector<1x150x192xf32>
    %3 = vector.shape_cast %2 : vector<1x150x192xf32> to vector<150x192xf32>
    %cst = arith.constant dense<0.000000e+00> : vector<384x192xf32>
    %4 = tpu.matmul %1, %3, %cst {dimension_numbers = #tpu.dot_dimension_numbers<[1], [0], [0], [1], [0, 0, 1, 1], [], []>} : vector<384x150xf32>, vector<150x192xf32>, vector<384x192xf32> -> vector<384x192xf32>
    %c0_5 = arith.constant 0 : index
    %c8 = arith.constant 8 : index
    %c0_6 = arith.constant 0 : index
    %5 = vector.load %arg1[%c0_5, %c8, %c0_6] : memref<1x400x150xf32, #tpu.memory_space<vmem>>, vector<1x384x150xf32>
    %6 = vector.shape_cast %5 : vector<1x384x150xf32> to vector<384x150xf32>
    %c1 = arith.constant 1 : index
    %c0_7 = arith.constant 0 : index
    %c0_8 = arith.constant 0 : index
    %7 = vector.load %arg2[%c1, %c0_7, %c0_8] : memref<3x150x192xf32, #tpu.memory_space<vmem>>, vector<1x150x192xf32>
    %8 = vector.shape_cast %7 : vector<1x150x192xf32> to vector<150x192xf32>
    %cst_9 = arith.constant dense<0.000000e+00> : vector<384x192xf32>
    %9 = tpu.matmul %6, %8, %cst_9 {dimension_numbers = #tpu.dot_dimension_numbers<[1], [0], [0], [1], [0, 0, 1, 1], [], []>} : vector<384x150xf32>, vector<150x192xf32>, vector<384x192xf32> -> vector<384x192xf32>
    %10 = arith.addf %4, %9 : vector<384x192xf32>
    %c0_10 = arith.constant 0 : index
    %c16 = arith.constant 16 : index
    %c0_11 = arith.constant 0 : index
    %11 = vector.load %arg1[%c0_10, %c16, %c0_11] : memref<1x400x150xf32, #tpu.memory_space<vmem>>, vector<1x384x150xf32>
    %12 = vector.shape_cast %11 : vector<1x384x150xf32> to vector<384x150xf32>
    %c2 = arith.constant 2 : index
    %c0_12 = arith.constant 0 : index
    %c0_13 = arith.constant 0 : index
    %13 = vector.load %arg2[%c2, %c0_12, %c0_13] : memref<3x150x192xf32, #tpu.memory_space<vmem>>, vector<1x150x192xf32>
    %14 = vector.shape_cast %13 : vector<1x150x192xf32> to vector<150x192xf32>
    %cst_14 = arith.constant dense<0.000000e+00> : vector<384x192xf32>
    %15 = tpu.matmul %12, %14, %cst_14 {dimension_numbers = #tpu.dot_dimension_numbers<[1], [0], [0], [1], [0, 0, 1, 1], [], []>} : vector<384x150xf32>, vector<150x192xf32>, vector<384x192xf32> -> vector<384x192xf32>
    %16 = arith.addf %10, %15 : vector<384x192xf32>
    %c0_15 = arith.constant 0 : index
    %c0_16 = arith.constant 0 : index
    %17 = vector.load %arg3[%c0_15, %c0_16] : memref<1x192xf32, #tpu.memory_space<vmem>>, vector<1x192xf32>
    %18 = vector.broadcast %17 : vector<1x192xf32> to vector<384x192xf32>
    %19 = arith.addf %16, %18 : vector<384x192xf32>
    %cst_17 = arith.constant 0.000000e+00 : f32
    %20 = vector.broadcast %cst_17 : f32 to vector<384x192xf32>
    %21 = arith.maximumf %19, %20 : vector<384x192xf32>
    %c0_18 = arith.constant 0 : index
    %c0_19 = arith.constant 0 : index
    %22 = vector.load %arg14[%c0_18, %c0_19] : memref<384x192xf32, #tpu.memory_space<vmem>>, vector<384x192xf32>
    tpu.vector_store %arg14[%c0_18, %c0_19], %21 {strides = array<i32>} : memref<384x192xf32, #tpu.memory_space<vmem>>, vector<384x192xf32>,
    %c0_20 = arith.constant 0 : index
    %c0_21 = arith.constant 0 : index
    %23 = vector.load %arg14[%c0_20, %c0_21] : memref<384x192xf32, #tpu.memory_space<vmem>>, vector<8x192xf32>
    %c8_22 = arith.constant 8 : index
    %c0_23 = arith.constant 0 : index
    %24 = vector.load %arg14[%c8_22, %c0_23] : memref<384x192xf32, #tpu.memory_space<vmem>>, vector<8x192xf32>
    %25 = arith.maximumf %23, %24 : vector<8x192xf32>
    %c0_24 = arith.constant 0 : index
    %c0_25 = arith.constant 0 : index
    %26 = vector.load %arg15[%c0_24, %c0_25] : memref<192x192xf32, #tpu.memory_space<vmem>>, vector<8x192xf32>
    tpu.vector_store %arg15[%c0_24, %c0_25], %25 {strides = array<i32>} : memref<192x192xf32, #tpu.memory_space<vmem>>, vector<8x192xf32>,
    %c16_26 = arith.constant 16 : index
    %c0_27 = arith.constant 0 : index
    %27 = vector.load %arg14[%c16_26, %c0_27] : memref<384x192xf32, #tpu.memory_space<vmem>>, vector<8x192xf32>
    %c24 = arith.constant 24 : index
    %c0_28 = arith.constant 0 : index
    %28 = vector.load %arg14[%c24, %c0_28] : memref<384x192xf32, #tpu.memory_space<vmem>>, vector<8x192xf32>
    %29 = arith.maximumf %27, %28 : vector<8x192xf32>
    %c8_29 = arith.constant 8 : index
    %c0_30 = arith.constant 0 : index
    %30 = vector.load %arg15[%c8_29, %c0_30] : memref<192x192xf32, #tpu.memory_space<vmem>>, vector<8x192xf32>
    tpu.vector_store %arg15[%c8_29, %c0_30], %29 {strides = array<i32>} : memref<192x192xf32, #tpu.memory_space<vmem>>, vector<8x192xf32>,
    %c32 = arith.constant 32 : index
    %c0_31 = arith.constant 0 : index
    %31 = vector.load %arg14[%c32, %c0_31] : memref<384x192xf32, #tpu.memory_space<vmem>>, vector<8x192xf32>
    %c40 = arith.constant 40 : index
    %c0_32 = arith.constant 0 : index
    %32 = vector.load %arg14[%c40, %c0_32] : memref<384x192xf32, #tpu.memory_space<vmem>>, vector<8x192xf32>
    %33 = arith.maximumf %31, %32 : vector<8x192xf32>
    %c16_33 = arith.constant 16 : index
    %c0_34 = arith.constant 0 : index
    %34 = vector.load %arg15[%c16_33, %c0_34] : memref<192x192xf32, #tpu.memory_space<vmem>>, vector<8x192xf32>
    tpu.vector_store %arg15[%c16_33, %c0_34], %33 {strides = array<i32>} : memref<192x192xf32, #tpu.memory_space<vmem>>, vector<8x192xf32>,
    %c48 = arith.constant 48 : index
    %c0_35 = arith.constant 0 : index
    %35 = vector.load %arg14[%c48, %c0_35] : memref<384x192xf32, #tpu.memory_space<vmem>>, vector<8x192xf32>
    %c56 = arith.constant 56 : index
    %c0_36 = arith.constant 0 : index
    %36 = vector.load %arg14[%c56, %c0_36] : memref<384x192xf32, #tpu.memory_space<vmem>>, vector<8x192xf32>
    %37 = arith.maximumf %35, %36 : vector<8x192xf32>
    %c24_37 = arith.constant 24 : index
    %c0_38 = arith.constant 0 : index
    %38 = vector.load %arg15[%c24_37, %c0_38] : memref<192x192xf32, #tpu.memory_space<vmem>>, vector<8x192xf32>
    tpu.vector_store %arg15[%c24_37, %c0_38], %37 {strides = array<i32>} : memref<192x192xf32, #tpu.memory_space<vmem>>, vector<8x192xf32>,
    %c64 = arith.constant 64 : index
    %c0_39 = arith.constant 0 : index
    %39 = vector.load %arg14[%c64, %c0_39] : memref<384x192xf32, #tpu.memory_space<vmem>>, vector<8x192xf32>
    %c72 = arith.constant 72 : index
    %c0_40 = arith.constant 0 : index
    %40 = vector.load %arg14[%c72, %c0_40] : memref<384x192xf32, #tpu.memory_space<vmem>>, vector<8x192xf32>
    %41 = arith.maximumf %39, %40 : vector<8x192xf32>
    %c32_41 = arith.constant 32 : index
    %c0_42 = arith.constant 0 : index
    %42 = vector.load %arg15[%c32_41, %c0_42] : memref<192x192xf32, #tpu.memory_space<vmem>>, vector<8x192xf32>
    tpu.vector_store %arg15[%c32_41, %c0_42], %41 {strides = array<i32>} : memref<192x192xf32, #tpu.memory_space<vmem>>, vector<8x192xf32>,
    %c80 = arith.constant 80 : index
    %c0_43 = arith.constant 0 : index
    %43 = vector.load %arg14[%c80, %c0_43] : memref<384x192xf32, #tpu.memory_space<vmem>>, vector<8x192xf32>
    %c88 = arith.constant 88 : index
    %c0_44 = arith.constant 0 : index
    %44 = vector.load %arg14[%c88, %c0_44] : memref<384x192xf32, #tpu.memory_space<vmem>>, vector<8x192xf32>
    %45 = arith.maximumf %43, %44 : vector<8x192xf32>
    %c40_45 = arith.constant 40 : index
    %c0_46 = arith.constant 0 : index
    %46 = vector.load %arg15[%c40_45, %c0_46] : memref<192x192xf32, #tpu.memory_space<vmem>>, vector<8x192xf32>
    tpu.vector_store %arg15[%c40_45, %c0_46], %45 {strides = array<i32>} : memref<192x192xf32, #tpu.memory_space<vmem>>, vector<8x192xf32>,
    %c96 = arith.constant 96 : index
    %c0_47 = arith.constant 0 : index
    %47 = vector.load %arg14[%c96, %c0_47] : memref<384x192xf32, #tpu.memory_space<vmem>>, vector<8x192xf32>
    %c104 = arith.constant 104 : index
    %c0_48 = arith.constant 0 : index
    %48 = vector.load %arg14[%c104, %c0_48] : memref<384x192xf32, #tpu.memory_space<vmem>>, vector<8x192xf32>
    %49 = arith.maximumf %47, %48 : vector<8x192xf32>
    %c48_49 = arith.constant 48 : index
    %c0_50 = arith.constant 0 : index
    %50 = vector.load %arg15[%c48_49, %c0_50] : memref<192x192xf32, #tpu.memory_space<vmem>>, vector<8x192xf32>
    tpu.vector_store %arg15[%c48_49, %c0_50], %49 {strides = array<i32>} : memref<192x192xf32, #tpu.memory_space<vmem>>, vector<8x192xf32>,
    %c112 = arith.constant 112 : index
    %c0_51 = arith.constant 0 : index
    %51 = vector.load %arg14[%c112, %c0_51] : memref<384x192xf32, #tpu.memory_space<vmem>>, vector<8x192xf32>
    %c120 = arith.constant 120 : index
    %c0_52 = arith.constant 0 : index
    %52 = vector.load %arg14[%c120, %c0_52] : memref<384x192xf32, #tpu.memory_space<vmem>>, vector<8x192xf32>
    %53 = arith.maximumf %51, %52 : vector<8x192xf32>
    %c56_53 = arith.constant 56 : index
    %c0_54 = arith.constant 0 : index
    %54 = vector.load %arg15[%c56_53, %c0_54] : memref<192x192xf32, #tpu.memory_space<vmem>>, vector<8x192xf32>
    tpu.vector_store %arg15[%c56_53, %c0_54], %53 {strides = array<i32>} : memref<192x192xf32, #tpu.memory_space<vmem>>, vector<8x192xf32>,
    %c128 = arith.constant 128 : index
    %c0_55 = arith.constant 0 : index
    %55 = vector.load %arg14[%c128, %c0_55] : memref<384x192xf32, #tpu.memory_space<vmem>>, vector<8x192xf32>
    %c136 = arith.constant 136 : index
    %c0_56 = arith.constant 0 : index
    %56 = vector.load %arg14[%c136, %c0_56] : memref<384x192xf32, #tpu.memory_space<vmem>>, vector<8x192xf32>
    %57 = arith.maximumf %55, %56 : vector<8x192xf32>
    %c64_57 = arith.constant 64 : index
    %c0_58 = arith.constant 0 : index
    %58 = vector.load %arg15[%c64_57, %c0_58] : memref<192x192xf32, #tpu.memory_space<vmem>>, vector<8x192xf32>
    tpu.vector_store %arg15[%c64_57, %c0_58], %57 {strides = array<i32>} : memref<192x192xf32, #tpu.memory_space<vmem>>, vector<8x192xf32>,
    %c144 = arith.constant 144 : index
    %c0_59 = arith.constant 0 : index
    %59 = vector.load %arg14[%c144, %c0_59] : memref<384x192xf32, #tpu.memory_space<vmem>>, vector<8x192xf32>
    %c152 = arith.constant 152 : index
    %c0_60 = arith.constant 0 : index
    %60 = vector.load %arg14[%c152, %c0_60] : memref<384x192xf32, #tpu.memory_space<vmem>>, vector<8x192xf32>
    %61 = arith.maximumf %59, %60 : vector<8x192xf32>
    %c72_61 = arith.constant 72 : index
    %c0_62 = arith.constant 0 : index
    %62 = vector.load %arg15[%c72_61, %c0_62] : memref<192x192xf32, #tpu.memory_space<vmem>>, vector<8x192xf32>
    tpu.vector_store %arg15[%c72_61, %c0_62], %61 {strides = array<i32>} : memref<192x192xf32, #tpu.memory_space<vmem>>, vector<8x192xf32>,
    %c160 = arith.constant 160 : index
    %c0_63 = arith.constant 0 : index
    %63 = vector.load %arg14[%c160, %c0_63] : memref<384x192xf32, #tpu.memory_space<vmem>>, vector<8x192xf32>
    %c168 = arith.constant 168 : index
    %c0_64 = arith.constant 0 : index
    %64 = vector.load %arg14[%c168, %c0_64] : memref<384x192xf32, #tpu.memory_space<vmem>>, vector<8x192xf32>
    %65 = arith.maximumf %63, %64 : vector<8x192xf32>
    %c80_65 = arith.constant 80 : index
    %c0_66 = arith.constant 0 : index
    %66 = vector.load %arg15[%c80_65, %c0_66] : memref<192x192xf32, #tpu.memory_space<vmem>>, vector<8x192xf32>
    tpu.vector_store %arg15[%c80_65, %c0_66], %65 {strides = array<i32>} : memref<192x192xf32, #tpu.memory_space<vmem>>, vector<8x192xf32>,
    %c176 = arith.constant 176 : index
    %c0_67 = arith.constant 0 : index
    %67 = vector.load %arg14[%c176, %c0_67] : memref<384x192xf32, #tpu.memory_space<vmem>>, vector<8x192xf32>
    %c184 = arith.constant 184 : index
    %c0_68 = arith.constant 0 : index
    %68 = vector.load %arg14[%c184, %c0_68] : memref<384x192xf32, #tpu.memory_space<vmem>>, vector<8x192xf32>
    %69 = arith.maximumf %67, %68 : vector<8x192xf32>
    %c88_69 = arith.constant 88 : index
    %c0_70 = arith.constant 0 : index
    %70 = vector.load %arg15[%c88_69, %c0_70] : memref<192x192xf32, #tpu.memory_space<vmem>>, vector<8x192xf32>
    tpu.vector_store %arg15[%c88_69, %c0_70], %69 {strides = array<i32>} : memref<192x192xf32, #tpu.memory_space<vmem>>, vector<8x192xf32>,
    %c192 = arith.constant 192 : index
    %c0_71 = arith.constant 0 : index
    %71 = vector.load %arg14[%c192, %c0_71] : memref<384x192xf32, #tpu.memory_space<vmem>>, vector<8x192xf32>
    %c200 = arith.constant 200 : index
    %c0_72 = arith.constant 0 : index
    %72 = vector.load %arg14[%c200, %c0_72] : memref<384x192xf32, #tpu.memory_space<vmem>>, vector<8x192xf32>
    %73 = arith.maximumf %71, %72 : vector<8x192xf32>
    %c96_73 = arith.constant 96 : index
    %c0_74 = arith.constant 0 : index
    %74 = vector.load %arg15[%c96_73, %c0_74] : memref<192x192xf32, #tpu.memory_space<vmem>>, vector<8x192xf32>
    tpu.vector_store %arg15[%c96_73, %c0_74], %73 {strides = array<i32>} : memref<192x192xf32, #tpu.memory_space<vmem>>, vector<8x192xf32>,
    %c208 = arith.constant 208 : index
    %c0_75 = arith.constant 0 : index
    %75 = vector.load %arg14[%c208, %c0_75] : memref<384x192xf32, #tpu.memory_space<vmem>>, vector<8x192xf32>
    %c216 = arith.constant 216 : index
    %c0_76 = arith.constant 0 : index
    %76 = vector.load %arg14[%c216, %c0_76] : memref<384x192xf32, #tpu.memory_space<vmem>>, vector<8x192xf32>
    %77 = arith.maximumf %75, %76 : vector<8x192xf32>
    %c104_77 = arith.constant 104 : index
    %c0_78 = arith.constant 0 : index
    %78 = vector.load %arg15[%c104_77, %c0_78] : memref<192x192xf32, #tpu.memory_space<vmem>>, vector<8x192xf32>
    tpu.vector_store %arg15[%c104_77, %c0_78], %77 {strides = array<i32>} : memref<192x192xf32, #tpu.memory_space<vmem>>, vector<8x192xf32>,
    %c224 = arith.constant 224 : index
    %c0_79 = arith.constant 0 : index
    %79 = vector.load %arg14[%c224, %c0_79] : memref<384x192xf32, #tpu.memory_space<vmem>>, vector<8x192xf32>
    %c232 = arith.constant 232 : index
    %c0_80 = arith.constant 0 : index
    %80 = vector.load %arg14[%c232, %c0_80] : memref<384x192xf32, #tpu.memory_space<vmem>>, vector<8x192xf32>
    %81 = arith.maximumf %79, %80 : vector<8x192xf32>
    %c112_81 = arith.constant 112 : index
    %c0_82 = arith.constant 0 : index
    %82 = vector.load %arg15[%c112_81, %c0_82] : memref<192x192xf32, #tpu.memory_space<vmem>>, vector<8x192xf32>
    tpu.vector_store %arg15[%c112_81, %c0_82], %81 {strides = array<i32>} : memref<192x192xf32, #tpu.memory_space<vmem>>, vector<8x192xf32>,
    %c240 = arith.constant 240 : index
    %c0_83 = arith.constant 0 : index
    %83 = vector.load %arg14[%c240, %c0_83] : memref<384x192xf32, #tpu.memory_space<vmem>>, vector<8x192xf32>
    %c248 = arith.constant 248 : index
    %c0_84 = arith.constant 0 : index
    %84 = vector.load %arg14[%c248, %c0_84] : memref<384x192xf32, #tpu.memory_space<vmem>>, vector<8x192xf32>
    %85 = arith.maximumf %83, %84 : vector<8x192xf32>
    %c120_85 = arith.constant 120 : index
    %c0_86 = arith.constant 0 : index
    %86 = vector.load %arg15[%c120_85, %c0_86] : memref<192x192xf32, #tpu.memory_space<vmem>>, vector<8x192xf32>
    tpu.vector_store %arg15[%c120_85, %c0_86], %85 {strides = array<i32>} : memref<192x192xf32, #tpu.memory_space<vmem>>, vector<8x192xf32>,
    %c256 = arith.constant 256 : index
    %c0_87 = arith.constant 0 : index
    %87 = vector.load %arg14[%c256, %c0_87] : memref<384x192xf32, #tpu.memory_space<vmem>>, vector<8x192xf32>
    %c264 = arith.constant 264 : index
    %c0_88 = arith.constant 0 : index
    %88 = vector.load %arg14[%c264, %c0_88] : memref<384x192xf32, #tpu.memory_space<vmem>>, vector<8x192xf32>
    %89 = arith.maximumf %87, %88 : vector<8x192xf32>
    %c128_89 = arith.constant 128 : index
    %c0_90 = arith.constant 0 : index
    %90 = vector.load %arg15[%c128_89, %c0_90] : memref<192x192xf32, #tpu.memory_space<vmem>>, vector<8x192xf32>
    tpu.vector_store %arg15[%c128_89, %c0_90], %89 {strides = array<i32>} : memref<192x192xf32, #tpu.memory_space<vmem>>, vector<8x192xf32>,
    %c272 = arith.constant 272 : index
    %c0_91 = arith.constant 0 : index
    %91 = vector.load %arg14[%c272, %c0_91] : memref<384x192xf32, #tpu.memory_space<vmem>>, vector<8x192xf32>
    %c280 = arith.constant 280 : index
    %c0_92 = arith.constant 0 : index
    %92 = vector.load %arg14[%c280, %c0_92] : memref<384x192xf32, #tpu.memory_space<vmem>>, vector<8x192xf32>
    %93 = arith.maximumf %91, %92 : vector<8x192xf32>
    %c136_93 = arith.constant 136 : index
    %c0_94 = arith.constant 0 : index
    %94 = vector.load %arg15[%c136_93, %c0_94] : memref<192x192xf32, #tpu.memory_space<vmem>>, vector<8x192xf32>
    tpu.vector_store %arg15[%c136_93, %c0_94], %93 {strides = array<i32>} : memref<192x192xf32, #tpu.memory_space<vmem>>, vector<8x192xf32>,
    %c288 = arith.constant 288 : index
    %c0_95 = arith.constant 0 : index
    %95 = vector.load %arg14[%c288, %c0_95] : memref<384x192xf32, #tpu.memory_space<vmem>>, vector<8x192xf32>
    %c296 = arith.constant 296 : index
    %c0_96 = arith.constant 0 : index
    %96 = vector.load %arg14[%c296, %c0_96] : memref<384x192xf32, #tpu.memory_space<vmem>>, vector<8x192xf32>
    %97 = arith.maximumf %95, %96 : vector<8x192xf32>
    %c144_97 = arith.constant 144 : index
    %c0_98 = arith.constant 0 : index
    %98 = vector.load %arg15[%c144_97, %c0_98] : memref<192x192xf32, #tpu.memory_space<vmem>>, vector<8x192xf32>
    tpu.vector_store %arg15[%c144_97, %c0_98], %97 {strides = array<i32>} : memref<192x192xf32, #tpu.memory_space<vmem>>, vector<8x192xf32>,
    %c304 = arith.constant 304 : index
    %c0_99 = arith.constant 0 : index
    %99 = vector.load %arg14[%c304, %c0_99] : memref<384x192xf32, #tpu.memory_space<vmem>>, vector<8x192xf32>
    %c312 = arith.constant 312 : index
    %c0_100 = arith.constant 0 : index
    %100 = vector.load %arg14[%c312, %c0_100] : memref<384x192xf32, #tpu.memory_space<vmem>>, vector<8x192xf32>
    %101 = arith.maximumf %99, %100 : vector<8x192xf32>
    %c152_101 = arith.constant 152 : index
    %c0_102 = arith.constant 0 : index
    %102 = vector.load %arg15[%c152_101, %c0_102] : memref<192x192xf32, #tpu.memory_space<vmem>>, vector<8x192xf32>
    tpu.vector_store %arg15[%c152_101, %c0_102], %101 {strides = array<i32>} : memref<192x192xf32, #tpu.memory_space<vmem>>, vector<8x192xf32>,
    %c320 = arith.constant 320 : index
    %c0_103 = arith.constant 0 : index
    %103 = vector.load %arg14[%c320, %c0_103] : memref<384x192xf32, #tpu.memory_space<vmem>>, vector<8x192xf32>
    %c328 = arith.constant 328 : index
    %c0_104 = arith.constant 0 : index
    %104 = vector.load %arg14[%c328, %c0_104] : memref<384x192xf32, #tpu.memory_space<vmem>>, vector<8x192xf32>
    %105 = arith.maximumf %103, %104 : vector<8x192xf32>
    %c160_105 = arith.constant 160 : index
    %c0_106 = arith.constant 0 : index
    %106 = vector.load %arg15[%c160_105, %c0_106] : memref<192x192xf32, #tpu.memory_space<vmem>>, vector<8x192xf32>
    tpu.vector_store %arg15[%c160_105, %c0_106], %105 {strides = array<i32>} : memref<192x192xf32, #tpu.memory_space<vmem>>, vector<8x192xf32>,
    %c336 = arith.constant 336 : index
    %c0_107 = arith.constant 0 : index
    %107 = vector.load %arg14[%c336, %c0_107] : memref<384x192xf32, #tpu.memory_space<vmem>>, vector<8x192xf32>
    %c344 = arith.constant 344 : index
    %c0_108 = arith.constant 0 : index
    %108 = vector.load %arg14[%c344, %c0_108] : memref<384x192xf32, #tpu.memory_space<vmem>>, vector<8x192xf32>
    %109 = arith.maximumf %107, %108 : vector<8x192xf32>
    %c168_109 = arith.constant 168 : index
    %c0_110 = arith.constant 0 : index
    %110 = vector.load %arg15[%c168_109, %c0_110] : memref<192x192xf32, #tpu.memory_space<vmem>>, vector<8x192xf32>
    tpu.vector_store %arg15[%c168_109, %c0_110], %109 {strides = array<i32>} : memref<192x192xf32, #tpu.memory_space<vmem>>, vector<8x192xf32>,
    %c352 = arith.constant 352 : index
    %c0_111 = arith.constant 0 : index
    %111 = vector.load %arg14[%c352, %c0_111] : memref<384x192xf32, #tpu.memory_space<vmem>>, vector<8x192xf32>
    %c360 = arith.constant 360 : index
    %c0_112 = arith.constant 0 : index
    %112 = vector.load %arg14[%c360, %c0_112] : memref<384x192xf32, #tpu.memory_space<vmem>>, vector<8x192xf32>
    %113 = arith.maximumf %111, %112 : vector<8x192xf32>
    %c176_113 = arith.constant 176 : index
    %c0_114 = arith.constant 0 : index
    %114 = vector.load %arg15[%c176_113, %c0_114] : memref<192x192xf32, #tpu.memory_space<vmem>>, vector<8x192xf32>
    tpu.vector_store %arg15[%c176_113, %c0_114], %113 {strides = array<i32>} : memref<192x192xf32, #tpu.memory_space<vmem>>, vector<8x192xf32>,
    %c368 = arith.constant 368 : index
    %c0_115 = arith.constant 0 : index
    %115 = vector.load %arg14[%c368, %c0_115] : memref<384x192xf32, #tpu.memory_space<vmem>>, vector<8x192xf32>
    %c376 = arith.constant 376 : index
    %c0_116 = arith.constant 0 : index
    %116 = vector.load %arg14[%c376, %c0_116] : memref<384x192xf32, #tpu.memory_space<vmem>>, vector<8x192xf32>
    %117 = arith.maximumf %115, %116 : vector<8x192xf32>
    %c184_117 = arith.constant 184 : index
    %c0_118 = arith.constant 0 : index
    %118 = vector.load %arg15[%c184_117, %c0_118] : memref<192x192xf32, #tpu.memory_space<vmem>>, vector<8x192xf32>
    tpu.vector_store %arg15[%c184_117, %c0_118], %117 {strides = array<i32>} : memref<192x192xf32, #tpu.memory_space<vmem>>, vector<8x192xf32>,
    %c0_119 = arith.constant 0 : index
    %c0_120 = arith.constant 0 : index
    %119 = vector.load %arg15[%c0_119, %c0_120] : memref<192x192xf32, #tpu.memory_space<vmem>>, vector<192x192xf32>
    %c0_121 = arith.constant 0 : index
    %c0_122 = arith.constant 0 : index
    %c0_123 = arith.constant 0 : index
    %120 = vector.load %arg4[%c0_121, %c0_122, %c0_123] : memref<2x192x96xf32, #tpu.memory_space<vmem>>, vector<1x192x96xf32>
    %121 = vector.shape_cast %120 : vector<1x192x96xf32> to vector<192x96xf32>
    %cst_124 = arith.constant dense<0.000000e+00> : vector<192x96xf32>
    %122 = tpu.matmul %119, %121, %cst_124 {dimension_numbers = #tpu.dot_dimension_numbers<[1], [0], [0], [1], [0, 0, 1, 1], [], []>} : vector<192x192xf32>, vector<192x96xf32>, vector<192x96xf32> -> vector<192x96xf32>
    %c1_125 = arith.constant 1 : index
    %c0_126 = arith.constant 0 : index
    %c0_127 = arith.constant 0 : index
    %123 = vector.load %arg4[%c1_125, %c0_126, %c0_127] : memref<2x192x96xf32, #tpu.memory_space<vmem>>, vector<1x192x96xf32>
    %124 = vector.shape_cast %123 : vector<1x192x96xf32> to vector<192x96xf32>
    %cst_128 = arith.constant dense<0.000000e+00> : vector<192x96xf32>
    %125 = tpu.matmul %119, %124, %cst_128 {dimension_numbers = #tpu.dot_dimension_numbers<[1], [0], [0], [1], [0, 0, 1, 1], [], []>} : vector<192x192xf32>, vector<192x96xf32>, vector<192x96xf32> -> vector<192x96xf32>
    %126 = arith.maximumf %122, %125 : vector<192x96xf32>
    %127 = vector.extract_strided_slice %126 {offsets = [0, 0], sizes = [176, 96], strides = [1, 1]} : vector<192x96xf32> to vector<176x96xf32>
    %c0_129 = arith.constant 0 : index
    %c0_130 = arith.constant 0 : index
    %c0_131 = arith.constant 0 : index
    %128 = vector.load %arg5[%c0_129, %c0_130, %c0_131] : memref<3x96x88xf32, #tpu.memory_space<vmem>>, vector<1x96x88xf32>
    %129 = vector.shape_cast %128 : vector<1x96x88xf32> to vector<96x88xf32>
    %cst_132 = arith.constant dense<0.000000e+00> : vector<176x88xf32>
    %130 = tpu.matmul %127, %129, %cst_132 {dimension_numbers = #tpu.dot_dimension_numbers<[1], [0], [0], [1], [0, 0, 1, 1], [], []>} : vector<176x96xf32>, vector<96x88xf32>, vector<176x88xf32> -> vector<176x88xf32>
    %131 = vector.extract_strided_slice %126 {offsets = [8, 0], sizes = [176, 96], strides = [1, 1]} : vector<192x96xf32> to vector<176x96xf32>
    %c1_133 = arith.constant 1 : index
    %c0_134 = arith.constant 0 : index
    %c0_135 = arith.constant 0 : index
    %132 = vector.load %arg5[%c1_133, %c0_134, %c0_135] : memref<3x96x88xf32, #tpu.memory_space<vmem>>, vector<1x96x88xf32>
    %133 = vector.shape_cast %132 : vector<1x96x88xf32> to vector<96x88xf32>
    %cst_136 = arith.constant dense<0.000000e+00> : vector<176x88xf32>
    %134 = tpu.matmul %131, %133, %cst_136 {dimension_numbers = #tpu.dot_dimension_numbers<[1], [0], [0], [1], [0, 0, 1, 1], [], []>} : vector<176x96xf32>, vector<96x88xf32>, vector<176x88xf32> -> vector<176x88xf32>
    %135 = arith.addf %130, %134 : vector<176x88xf32>
    %136 = vector.extract_strided_slice %126 {offsets = [16, 0], sizes = [176, 96], strides = [1, 1]} : vector<192x96xf32> to vector<176x96xf32>
    %c2_137 = arith.constant 2 : index
    %c0_138 = arith.constant 0 : index
    %c0_139 = arith.constant 0 : index
    %137 = vector.load %arg5[%c2_137, %c0_138, %c0_139] : memref<3x96x88xf32, #tpu.memory_space<vmem>>, vector<1x96x88xf32>
    %138 = vector.shape_cast %137 : vector<1x96x88xf32> to vector<96x88xf32>
    %cst_140 = arith.constant dense<0.000000e+00> : vector<176x88xf32>
    %139 = tpu.matmul %136, %138, %cst_140 {dimension_numbers = #tpu.dot_dimension_numbers<[1], [0], [0], [1], [0, 0, 1, 1], [], []>} : vector<176x96xf32>, vector<96x88xf32>, vector<176x88xf32> -> vector<176x88xf32>
    %140 = arith.addf %135, %139 : vector<176x88xf32>
    %c0_141 = arith.constant 0 : index
    %c0_142 = arith.constant 0 : index
    %141 = vector.load %arg6[%c0_141, %c0_142] : memref<1x88xf32, #tpu.memory_space<vmem>>, vector<1x88xf32>
    %142 = vector.broadcast %141 : vector<1x88xf32> to vector<176x88xf32>
    %143 = arith.addf %140, %142 : vector<176x88xf32>
    %cst_143 = arith.constant 0.000000e+00 : f32
    %144 = vector.broadcast %cst_143 : f32 to vector<176x88xf32>
    %145 = arith.maximumf %143, %144 : vector<176x88xf32>
    %c0_144 = arith.constant 0 : index
    %c0_145 = arith.constant 0 : index
    %146 = vector.load %arg16[%c0_144, %c0_145] : memref<176x88xf32, #tpu.memory_space<vmem>>, vector<176x88xf32>
    tpu.vector_store %arg16[%c0_144, %c0_145], %145 {strides = array<i32>} : memref<176x88xf32, #tpu.memory_space<vmem>>, vector<176x88xf32>,
    %c0_146 = arith.constant 0 : index
    %c0_147 = arith.constant 0 : index
    %147 = vector.load %arg16[%c0_146, %c0_147] : memref<176x88xf32, #tpu.memory_space<vmem>>, vector<8x88xf32>
    %c8_148 = arith.constant 8 : index
    %c0_149 = arith.constant 0 : index
    %148 = vector.load %arg16[%c8_148, %c0_149] : memref<176x88xf32, #tpu.memory_space<vmem>>, vector<8x88xf32>
    %149 = arith.maximumf %147, %148 : vector<8x88xf32>
    %c0_150 = arith.constant 0 : index
    %c0_151 = arith.constant 0 : index
    %150 = vector.load %arg17[%c0_150, %c0_151] : memref<88x88xf32, #tpu.memory_space<vmem>>, vector<8x88xf32>
    tpu.vector_store %arg17[%c0_150, %c0_151], %149 {strides = array<i32>} : memref<88x88xf32, #tpu.memory_space<vmem>>, vector<8x88xf32>,
    %c16_152 = arith.constant 16 : index
    %c0_153 = arith.constant 0 : index
    %151 = vector.load %arg16[%c16_152, %c0_153] : memref<176x88xf32, #tpu.memory_space<vmem>>, vector<8x88xf32>
    %c24_154 = arith.constant 24 : index
    %c0_155 = arith.constant 0 : index
    %152 = vector.load %arg16[%c24_154, %c0_155] : memref<176x88xf32, #tpu.memory_space<vmem>>, vector<8x88xf32>
    %153 = arith.maximumf %151, %152 : vector<8x88xf32>
    %c8_156 = arith.constant 8 : index
    %c0_157 = arith.constant 0 : index
    %154 = vector.load %arg17[%c8_156, %c0_157] : memref<88x88xf32, #tpu.memory_space<vmem>>, vector<8x88xf32>
    tpu.vector_store %arg17[%c8_156, %c0_157], %153 {strides = array<i32>} : memref<88x88xf32, #tpu.memory_space<vmem>>, vector<8x88xf32>,
    %c32_158 = arith.constant 32 : index
    %c0_159 = arith.constant 0 : index
    %155 = vector.load %arg16[%c32_158, %c0_159] : memref<176x88xf32, #tpu.memory_space<vmem>>, vector<8x88xf32>
    %c40_160 = arith.constant 40 : index
    %c0_161 = arith.constant 0 : index
    %156 = vector.load %arg16[%c40_160, %c0_161] : memref<176x88xf32, #tpu.memory_space<vmem>>, vector<8x88xf32>
    %157 = arith.maximumf %155, %156 : vector<8x88xf32>
    %c16_162 = arith.constant 16 : index
    %c0_163 = arith.constant 0 : index
    %158 = vector.load %arg17[%c16_162, %c0_163] : memref<88x88xf32, #tpu.memory_space<vmem>>, vector<8x88xf32>
    tpu.vector_store %arg17[%c16_162, %c0_163], %157 {strides = array<i32>} : memref<88x88xf32, #tpu.memory_space<vmem>>, vector<8x88xf32>,
    %c48_164 = arith.constant 48 : index
    %c0_165 = arith.constant 0 : index
    %159 = vector.load %arg16[%c48_164, %c0_165] : memref<176x88xf32, #tpu.memory_space<vmem>>, vector<8x88xf32>
    %c56_166 = arith.constant 56 : index
    %c0_167 = arith.constant 0 : index
    %160 = vector.load %arg16[%c56_166, %c0_167] : memref<176x88xf32, #tpu.memory_space<vmem>>, vector<8x88xf32>
    %161 = arith.maximumf %159, %160 : vector<8x88xf32>
    %c24_168 = arith.constant 24 : index
    %c0_169 = arith.constant 0 : index
    %162 = vector.load %arg17[%c24_168, %c0_169] : memref<88x88xf32, #tpu.memory_space<vmem>>, vector<8x88xf32>
    tpu.vector_store %arg17[%c24_168, %c0_169], %161 {strides = array<i32>} : memref<88x88xf32, #tpu.memory_space<vmem>>, vector<8x88xf32>,
    %c64_170 = arith.constant 64 : index
    %c0_171 = arith.constant 0 : index
    %163 = vector.load %arg16[%c64_170, %c0_171] : memref<176x88xf32, #tpu.memory_space<vmem>>, vector<8x88xf32>
    %c72_172 = arith.constant 72 : index
    %c0_173 = arith.constant 0 : index
    %164 = vector.load %arg16[%c72_172, %c0_173] : memref<176x88xf32, #tpu.memory_space<vmem>>, vector<8x88xf32>
    %165 = arith.maximumf %163, %164 : vector<8x88xf32>
    %c32_174 = arith.constant 32 : index
    %c0_175 = arith.constant 0 : index
    %166 = vector.load %arg17[%c32_174, %c0_175] : memref<88x88xf32, #tpu.memory_space<vmem>>, vector<8x88xf32>
    tpu.vector_store %arg17[%c32_174, %c0_175], %165 {strides = array<i32>} : memref<88x88xf32, #tpu.memory_space<vmem>>, vector<8x88xf32>,
    %c80_176 = arith.constant 80 : index
    %c0_177 = arith.constant 0 : index
    %167 = vector.load %arg16[%c80_176, %c0_177] : memref<176x88xf32, #tpu.memory_space<vmem>>, vector<8x88xf32>
    %c88_178 = arith.constant 88 : index
    %c0_179 = arith.constant 0 : index
    %168 = vector.load %arg16[%c88_178, %c0_179] : memref<176x88xf32, #tpu.memory_space<vmem>>, vector<8x88xf32>
    %169 = arith.maximumf %167, %168 : vector<8x88xf32>
    %c40_180 = arith.constant 40 : index
    %c0_181 = arith.constant 0 : index
    %170 = vector.load %arg17[%c40_180, %c0_181] : memref<88x88xf32, #tpu.memory_space<vmem>>, vector<8x88xf32>
    tpu.vector_store %arg17[%c40_180, %c0_181], %169 {strides = array<i32>} : memref<88x88xf32, #tpu.memory_space<vmem>>, vector<8x88xf32>,
    %c96_182 = arith.constant 96 : index
    %c0_183 = arith.constant 0 : index
    %171 = vector.load %arg16[%c96_182, %c0_183] : memref<176x88xf32, #tpu.memory_space<vmem>>, vector<8x88xf32>
    %c104_184 = arith.constant 104 : index
    %c0_185 = arith.constant 0 : index
    %172 = vector.load %arg16[%c104_184, %c0_185] : memref<176x88xf32, #tpu.memory_space<vmem>>, vector<8x88xf32>
    %173 = arith.maximumf %171, %172 : vector<8x88xf32>
    %c48_186 = arith.constant 48 : index
    %c0_187 = arith.constant 0 : index
    %174 = vector.load %arg17[%c48_186, %c0_187] : memref<88x88xf32, #tpu.memory_space<vmem>>, vector<8x88xf32>
    tpu.vector_store %arg17[%c48_186, %c0_187], %173 {strides = array<i32>} : memref<88x88xf32, #tpu.memory_space<vmem>>, vector<8x88xf32>,
    %c112_188 = arith.constant 112 : index
    %c0_189 = arith.constant 0 : index
    %175 = vector.load %arg16[%c112_188, %c0_189] : memref<176x88xf32, #tpu.memory_space<vmem>>, vector<8x88xf32>
    %c120_190 = arith.constant 120 : index
    %c0_191 = arith.constant 0 : index
    %176 = vector.load %arg16[%c120_190, %c0_191] : memref<176x88xf32, #tpu.memory_space<vmem>>, vector<8x88xf32>
    %177 = arith.maximumf %175, %176 : vector<8x88xf32>
    %c56_192 = arith.constant 56 : index
    %c0_193 = arith.constant 0 : index
    %178 = vector.load %arg17[%c56_192, %c0_193] : memref<88x88xf32, #tpu.memory_space<vmem>>, vector<8x88xf32>
    tpu.vector_store %arg17[%c56_192, %c0_193], %177 {strides = array<i32>} : memref<88x88xf32, #tpu.memory_space<vmem>>, vector<8x88xf32>,
    %c128_194 = arith.constant 128 : index
    %c0_195 = arith.constant 0 : index
    %179 = vector.load %arg16[%c128_194, %c0_195] : memref<176x88xf32, #tpu.memory_space<vmem>>, vector<8x88xf32>
    %c136_196 = arith.constant 136 : index
    %c0_197 = arith.constant 0 : index
    %180 = vector.load %arg16[%c136_196, %c0_197] : memref<176x88xf32, #tpu.memory_space<vmem>>, vector<8x88xf32>
    %181 = arith.maximumf %179, %180 : vector<8x88xf32>
    %c64_198 = arith.constant 64 : index
    %c0_199 = arith.constant 0 : index
    %182 = vector.load %arg17[%c64_198, %c0_199] : memref<88x88xf32, #tpu.memory_space<vmem>>, vector<8x88xf32>
    tpu.vector_store %arg17[%c64_198, %c0_199], %181 {strides = array<i32>} : memref<88x88xf32, #tpu.memory_space<vmem>>, vector<8x88xf32>,
    %c144_200 = arith.constant 144 : index
    %c0_201 = arith.constant 0 : index
    %183 = vector.load %arg16[%c144_200, %c0_201] : memref<176x88xf32, #tpu.memory_space<vmem>>, vector<8x88xf32>
    %c152_202 = arith.constant 152 : index
    %c0_203 = arith.constant 0 : index
    %184 = vector.load %arg16[%c152_202, %c0_203] : memref<176x88xf32, #tpu.memory_space<vmem>>, vector<8x88xf32>
    %185 = arith.maximumf %183, %184 : vector<8x88xf32>
    %c72_204 = arith.constant 72 : index
    %c0_205 = arith.constant 0 : index
    %186 = vector.load %arg17[%c72_204, %c0_205] : memref<88x88xf32, #tpu.memory_space<vmem>>, vector<8x88xf32>
    tpu.vector_store %arg17[%c72_204, %c0_205], %185 {strides = array<i32>} : memref<88x88xf32, #tpu.memory_space<vmem>>, vector<8x88xf32>,
    %c160_206 = arith.constant 160 : index
    %c0_207 = arith.constant 0 : index
    %187 = vector.load %arg16[%c160_206, %c0_207] : memref<176x88xf32, #tpu.memory_space<vmem>>, vector<8x88xf32>
    %c168_208 = arith.constant 168 : index
    %c0_209 = arith.constant 0 : index
    %188 = vector.load %arg16[%c168_208, %c0_209] : memref<176x88xf32, #tpu.memory_space<vmem>>, vector<8x88xf32>
    %189 = arith.maximumf %187, %188 : vector<8x88xf32>
    %c80_210 = arith.constant 80 : index
    %c0_211 = arith.constant 0 : index
    %190 = vector.load %arg17[%c80_210, %c0_211] : memref<88x88xf32, #tpu.memory_space<vmem>>, vector<8x88xf32>
    tpu.vector_store %arg17[%c80_210, %c0_211], %189 {strides = array<i32>} : memref<88x88xf32, #tpu.memory_space<vmem>>, vector<8x88xf32>,
    %c0_212 = arith.constant 0 : index
    %c0_213 = arith.constant 0 : index
    %191 = vector.load %arg17[%c0_212, %c0_213] : memref<88x88xf32, #tpu.memory_space<vmem>>, vector<88x88xf32>
    %c0_214 = arith.constant 0 : index
    %c0_215 = arith.constant 0 : index
    %c0_216 = arith.constant 0 : index
    %192 = vector.load %arg7[%c0_214, %c0_215, %c0_216] : memref<2x88x44xf32, #tpu.memory_space<vmem>>, vector<1x88x44xf32>
    %193 = vector.shape_cast %192 : vector<1x88x44xf32> to vector<88x44xf32>
    %cst_217 = arith.constant dense<0.000000e+00> : vector<88x44xf32>
    %194 = tpu.matmul %191, %193, %cst_217 {dimension_numbers = #tpu.dot_dimension_numbers<[1], [0], [0], [1], [0, 0, 1, 1], [], []>} : vector<88x88xf32>, vector<88x44xf32>, vector<88x44xf32> -> vector<88x44xf32>
    %c1_218 = arith.constant 1 : index
    %c0_219 = arith.constant 0 : index
    %c0_220 = arith.constant 0 : index
    %195 = vector.load %arg7[%c1_218, %c0_219, %c0_220] : memref<2x88x44xf32, #tpu.memory_space<vmem>>, vector<1x88x44xf32>
    %196 = vector.shape_cast %195 : vector<1x88x44xf32> to vector<88x44xf32>
    %cst_221 = arith.constant dense<0.000000e+00> : vector<88x44xf32>
    %197 = tpu.matmul %191, %196, %cst_221 {dimension_numbers = #tpu.dot_dimension_numbers<[1], [0], [0], [1], [0, 0, 1, 1], [], []>} : vector<88x88xf32>, vector<88x44xf32>, vector<88x44xf32> -> vector<88x44xf32>
    %198 = arith.maximumf %194, %197 : vector<88x44xf32>
    %199 = vector.extract_strided_slice %198 {offsets = [0, 0], sizes = [72, 44], strides = [1, 1]} : vector<88x44xf32> to vector<72x44xf32>
    %c0_222 = arith.constant 0 : index
    %c0_223 = arith.constant 0 : index
    %c0_224 = arith.constant 0 : index
    %200 = vector.load %arg8[%c0_222, %c0_223, %c0_224] : memref<3x44x36xf32, #tpu.memory_space<vmem>>, vector<1x44x36xf32>
    %201 = vector.shape_cast %200 : vector<1x44x36xf32> to vector<44x36xf32>
    %cst_225 = arith.constant dense<0.000000e+00> : vector<72x36xf32>
    %202 = tpu.matmul %199, %201, %cst_225 {dimension_numbers = #tpu.dot_dimension_numbers<[1], [0], [0], [1], [0, 0, 1, 1], [], []>} : vector<72x44xf32>, vector<44x36xf32>, vector<72x36xf32> -> vector<72x36xf32>
    %203 = vector.extract_strided_slice %198 {offsets = [8, 0], sizes = [72, 44], strides = [1, 1]} : vector<88x44xf32> to vector<72x44xf32>
    %c1_226 = arith.constant 1 : index
    %c0_227 = arith.constant 0 : index
    %c0_228 = arith.constant 0 : index
    %204 = vector.load %arg8[%c1_226, %c0_227, %c0_228] : memref<3x44x36xf32, #tpu.memory_space<vmem>>, vector<1x44x36xf32>
    %205 = vector.shape_cast %204 : vector<1x44x36xf32> to vector<44x36xf32>
    %cst_229 = arith.constant dense<0.000000e+00> : vector<72x36xf32>
    %206 = tpu.matmul %203, %205, %cst_229 {dimension_numbers = #tpu.dot_dimension_numbers<[1], [0], [0], [1], [0, 0, 1, 1], [], []>} : vector<72x44xf32>, vector<44x36xf32>, vector<72x36xf32> -> vector<72x36xf32>
    %207 = arith.addf %202, %206 : vector<72x36xf32>
    %208 = vector.extract_strided_slice %198 {offsets = [16, 0], sizes = [72, 44], strides = [1, 1]} : vector<88x44xf32> to vector<72x44xf32>
    %c2_230 = arith.constant 2 : index
    %c0_231 = arith.constant 0 : index
    %c0_232 = arith.constant 0 : index
    %209 = vector.load %arg8[%c2_230, %c0_231, %c0_232] : memref<3x44x36xf32, #tpu.memory_space<vmem>>, vector<1x44x36xf32>
    %210 = vector.shape_cast %209 : vector<1x44x36xf32> to vector<44x36xf32>
    %cst_233 = arith.constant dense<0.000000e+00> : vector<72x36xf32>
    %211 = tpu.matmul %208, %210, %cst_233 {dimension_numbers = #tpu.dot_dimension_numbers<[1], [0], [0], [1], [0, 0, 1, 1], [], []>} : vector<72x44xf32>, vector<44x36xf32>, vector<72x36xf32> -> vector<72x36xf32>
    %212 = arith.addf %207, %211 : vector<72x36xf32>
    %c0_234 = arith.constant 0 : index
    %c0_235 = arith.constant 0 : index
    %213 = vector.load %arg9[%c0_234, %c0_235] : memref<1x36xf32, #tpu.memory_space<vmem>>, vector<1x36xf32>
    %214 = vector.broadcast %213 : vector<1x36xf32> to vector<72x36xf32>
    %215 = arith.addf %212, %214 : vector<72x36xf32>
    %cst_236 = arith.constant 0.000000e+00 : f32
    %216 = vector.broadcast %cst_236 : f32 to vector<72x36xf32>
    %217 = arith.maximumf %215, %216 : vector<72x36xf32>
    %c0_237 = arith.constant 0 : index
    %c0_238 = arith.constant 0 : index
    %218 = vector.load %arg18[%c0_237, %c0_238] : memref<72x36xf32, #tpu.memory_space<vmem>>, vector<72x36xf32>
    tpu.vector_store %arg18[%c0_237, %c0_238], %217 {strides = array<i32>} : memref<72x36xf32, #tpu.memory_space<vmem>>, vector<72x36xf32>,
    %c0_239 = arith.constant 0 : index
    %c0_240 = arith.constant 0 : index
    %219 = vector.load %arg18[%c0_239, %c0_240] : memref<72x36xf32, #tpu.memory_space<vmem>>, vector<8x36xf32>
    %c8_241 = arith.constant 8 : index
    %c0_242 = arith.constant 0 : index
    %220 = vector.load %arg18[%c8_241, %c0_242] : memref<72x36xf32, #tpu.memory_space<vmem>>, vector<8x36xf32>
    %221 = arith.maximumf %219, %220 : vector<8x36xf32>
    %c0_243 = arith.constant 0 : index
    %c0_244 = arith.constant 0 : index
    %222 = vector.load %arg19[%c0_243, %c0_244] : memref<32x36xf32, #tpu.memory_space<vmem>>, vector<8x36xf32>
    tpu.vector_store %arg19[%c0_243, %c0_244], %221 {strides = array<i32>} : memref<32x36xf32, #tpu.memory_space<vmem>>, vector<8x36xf32>,
    %c16_245 = arith.constant 16 : index
    %c0_246 = arith.constant 0 : index
    %223 = vector.load %arg18[%c16_245, %c0_246] : memref<72x36xf32, #tpu.memory_space<vmem>>, vector<8x36xf32>
    %c24_247 = arith.constant 24 : index
    %c0_248 = arith.constant 0 : index
    %224 = vector.load %arg18[%c24_247, %c0_248] : memref<72x36xf32, #tpu.memory_space<vmem>>, vector<8x36xf32>
    %225 = arith.maximumf %223, %224 : vector<8x36xf32>
    %c8_249 = arith.constant 8 : index
    %c0_250 = arith.constant 0 : index
    %226 = vector.load %arg19[%c8_249, %c0_250] : memref<32x36xf32, #tpu.memory_space<vmem>>, vector<8x36xf32>
    tpu.vector_store %arg19[%c8_249, %c0_250], %225 {strides = array<i32>} : memref<32x36xf32, #tpu.memory_space<vmem>>, vector<8x36xf32>,
    %c32_251 = arith.constant 32 : index
    %c0_252 = arith.constant 0 : index
    %227 = vector.load %arg18[%c32_251, %c0_252] : memref<72x36xf32, #tpu.memory_space<vmem>>, vector<8x36xf32>
    %c40_253 = arith.constant 40 : index
    %c0_254 = arith.constant 0 : index
    %228 = vector.load %arg18[%c40_253, %c0_254] : memref<72x36xf32, #tpu.memory_space<vmem>>, vector<8x36xf32>
    %229 = arith.maximumf %227, %228 : vector<8x36xf32>
    %c16_255 = arith.constant 16 : index
    %c0_256 = arith.constant 0 : index
    %230 = vector.load %arg19[%c16_255, %c0_256] : memref<32x36xf32, #tpu.memory_space<vmem>>, vector<8x36xf32>
    tpu.vector_store %arg19[%c16_255, %c0_256], %229 {strides = array<i32>} : memref<32x36xf32, #tpu.memory_space<vmem>>, vector<8x36xf32>,
    %c48_257 = arith.constant 48 : index
    %c0_258 = arith.constant 0 : index
    %231 = vector.load %arg18[%c48_257, %c0_258] : memref<72x36xf32, #tpu.memory_space<vmem>>, vector<8x36xf32>
    %c56_259 = arith.constant 56 : index
    %c0_260 = arith.constant 0 : index
    %232 = vector.load %arg18[%c56_259, %c0_260] : memref<72x36xf32, #tpu.memory_space<vmem>>, vector<8x36xf32>
    %233 = arith.maximumf %231, %232 : vector<8x36xf32>
    %c24_261 = arith.constant 24 : index
    %c0_262 = arith.constant 0 : index
    %234 = vector.load %arg19[%c24_261, %c0_262] : memref<32x36xf32, #tpu.memory_space<vmem>>, vector<8x36xf32>
    tpu.vector_store %arg19[%c24_261, %c0_262], %233 {strides = array<i32>} : memref<32x36xf32, #tpu.memory_space<vmem>>, vector<8x36xf32>,
    %c0_263 = arith.constant 0 : index
    %c0_264 = arith.constant 0 : index
    %235 = vector.load %arg19[%c0_263, %c0_264] : memref<32x36xf32, #tpu.memory_space<vmem>>, vector<32x36xf32>
    %c0_265 = arith.constant 0 : index
    %c0_266 = arith.constant 0 : index
    %c0_267 = arith.constant 0 : index
    %236 = vector.load %arg10[%c0_265, %c0_266, %c0_267] : memref<2x36x16xf32, #tpu.memory_space<vmem>>, vector<1x36x16xf32>
    %237 = vector.shape_cast %236 : vector<1x36x16xf32> to vector<36x16xf32>
    %cst_268 = arith.constant dense<0.000000e+00> : vector<32x16xf32>
    %238 = tpu.matmul %235, %237, %cst_268 {dimension_numbers = #tpu.dot_dimension_numbers<[1], [0], [0], [1], [0, 0, 1, 1], [], []>} : vector<32x36xf32>, vector<36x16xf32>, vector<32x16xf32> -> vector<32x16xf32>
    %c1_269 = arith.constant 1 : index
    %c0_270 = arith.constant 0 : index
    %c0_271 = arith.constant 0 : index
    %239 = vector.load %arg10[%c1_269, %c0_270, %c0_271] : memref<2x36x16xf32, #tpu.memory_space<vmem>>, vector<1x36x16xf32>
    %240 = vector.shape_cast %239 : vector<1x36x16xf32> to vector<36x16xf32>
    %cst_272 = arith.constant dense<0.000000e+00> : vector<32x16xf32>
    %241 = tpu.matmul %235, %240, %cst_272 {dimension_numbers = #tpu.dot_dimension_numbers<[1], [0], [0], [1], [0, 0, 1, 1], [], []>} : vector<32x36xf32>, vector<36x16xf32>, vector<32x16xf32> -> vector<32x16xf32>
    %242 = arith.maximumf %238, %241 : vector<32x16xf32>
    %c0_273 = arith.constant 0 : index
    %c0_274 = arith.constant 0 : index
    %243 = vector.load %arg12[%c0_273, %c0_274] : memref<1x32xf32, #tpu.memory_space<vmem>>, vector<1x32xf32>
    %244 = vector.extract_strided_slice %242 {offsets = [0, 0], sizes = [8, 16], strides = [1, 1]} : vector<32x16xf32> to vector<8x16xf32>
    %c0_275 = arith.constant 0 : index
    %c0_276 = arith.constant 0 : index
    %c0_277 = arith.constant 0 : index
    %245 = vector.load %arg11[%c0_275, %c0_276, %c0_277] : memref<4x16x32xf32, #tpu.memory_space<vmem>>, vector<1x16x32xf32>
    %246 = vector.shape_cast %245 : vector<1x16x32xf32> to vector<16x32xf32>
    %cst_278 = arith.constant dense<0.000000e+00> : vector<8x32xf32>
    %247 = tpu.matmul %244, %246, %cst_278 {dimension_numbers = #tpu.dot_dimension_numbers<[1], [0], [0], [1], [0, 0, 1, 1], [], []>} : vector<8x16xf32>, vector<16x32xf32>, vector<8x32xf32> -> vector<8x32xf32>
    %248 = vector.broadcast %243 : vector<1x32xf32> to vector<8x32xf32>
    %249 = arith.addf %248, %247 : vector<8x32xf32>
    %250 = vector.extract_strided_slice %242 {offsets = [8, 0], sizes = [8, 16], strides = [1, 1]} : vector<32x16xf32> to vector<8x16xf32>
    %c1_279 = arith.constant 1 : index
    %c0_280 = arith.constant 0 : index
    %c0_281 = arith.constant 0 : index
    %251 = vector.load %arg11[%c1_279, %c0_280, %c0_281] : memref<4x16x32xf32, #tpu.memory_space<vmem>>, vector<1x16x32xf32>
    %252 = vector.shape_cast %251 : vector<1x16x32xf32> to vector<16x32xf32>
    %cst_282 = arith.constant dense<0.000000e+00> : vector<8x32xf32>
    %253 = tpu.matmul %250, %252, %cst_282 {dimension_numbers = #tpu.dot_dimension_numbers<[1], [0], [0], [1], [0, 0, 1, 1], [], []>} : vector<8x16xf32>, vector<16x32xf32>, vector<8x32xf32> -> vector<8x32xf32>
    %254 = arith.addf %249, %253 : vector<8x32xf32>
    %255 = vector.extract_strided_slice %242 {offsets = [16, 0], sizes = [8, 16], strides = [1, 1]} : vector<32x16xf32> to vector<8x16xf32>
    %c2_283 = arith.constant 2 : index
    %c0_284 = arith.constant 0 : index
    %c0_285 = arith.constant 0 : index
    %256 = vector.load %arg11[%c2_283, %c0_284, %c0_285] : memref<4x16x32xf32, #tpu.memory_space<vmem>>, vector<1x16x32xf32>
    %257 = vector.shape_cast %256 : vector<1x16x32xf32> to vector<16x32xf32>
    %cst_286 = arith.constant dense<0.000000e+00> : vector<8x32xf32>
    %258 = tpu.matmul %255, %257, %cst_286 {dimension_numbers = #tpu.dot_dimension_numbers<[1], [0], [0], [1], [0, 0, 1, 1], [], []>} : vector<8x16xf32>, vector<16x32xf32>, vector<8x32xf32> -> vector<8x32xf32>
    %259 = arith.addf %254, %258 : vector<8x32xf32>
    %260 = vector.extract_strided_slice %242 {offsets = [24, 0], sizes = [8, 16], strides = [1, 1]} : vector<32x16xf32> to vector<8x16xf32>
    %c3 = arith.constant 3 : index
    %c0_287 = arith.constant 0 : index
    %c0_288 = arith.constant 0 : index
    %261 = vector.load %arg11[%c3, %c0_287, %c0_288] : memref<4x16x32xf32, #tpu.memory_space<vmem>>, vector<1x16x32xf32>
    %262 = vector.shape_cast %261 : vector<1x16x32xf32> to vector<16x32xf32>
    %cst_289 = arith.constant dense<0.000000e+00> : vector<8x32xf32>
    %263 = tpu.matmul %260, %262, %cst_289 {dimension_numbers = #tpu.dot_dimension_numbers<[1], [0], [0], [1], [0, 0, 1, 1], [], []>} : vector<8x16xf32>, vector<16x32xf32>, vector<8x32xf32> -> vector<8x32xf32>
    %264 = arith.addf %259, %263 : vector<8x32xf32>
    %c0_290 = arith.constant 0 : index
    %c0_291 = arith.constant 0 : index
    %265 = vector.load %arg13[%c0_290, %c0_291] : memref<8x32xf32, #tpu.memory_space<vmem>>, vector<8x32xf32>
    tpu.vector_store %arg13[%c0_290, %c0_291], %264 {strides = array<i32>} : memref<8x32xf32, #tpu.memory_space<vmem>>, vector<8x32xf32>,
    return
  }
  func.func @transform_0(%arg0: i32) -> (i32, i32, i32) {
    %c0_i32 = arith.constant 0 : i32
    %c0_i32_0 = arith.constant 0 : i32
    %c0_i32_1 = arith.constant 0 : i32
    return %arg0, %c0_i32, %c0_i32_0 : i32, i32, i32
  }
  func.func @transform_1(%arg0: i32) -> (i32, i32, i32) {
    %c0_i32 = arith.constant 0 : i32
    %c0_i32_0 = arith.constant 0 : i32
    %c0_i32_1 = arith.constant 0 : i32
    %c0_i32_2 = arith.constant 0 : i32
    return %c0_i32, %c0_i32_0, %c0_i32_1 : i32, i32, i32
  }
  func.func @transform_2(%arg0: i32) -> (i32, i32) {
    %c0_i32 = arith.constant 0 : i32
    %c0_i32_0 = arith.constant 0 : i32
    %c0_i32_1 = arith.constant 0 : i32
    return %c0_i32, %c0_i32_0 : i32, i32
  }
  func.func @transform_3(%arg0: i32) -> (i32, i32, i32) {
    %c0_i32 = arith.constant 0 : i32
    %c0_i32_0 = arith.constant 0 : i32
    %c0_i32_1 = arith.constant 0 : i32
    %c0_i32_2 = arith.constant 0 : i32
    return %c0_i32, %c0_i32_0, %c0_i32_1 : i32, i32, i32
  }
  func.func @transform_4(%arg0: i32) -> (i32, i32, i32) {
    %c0_i32 = arith.constant 0 : i32
    %c0_i32_0 = arith.constant 0 : i32
    %c0_i32_1 = arith.constant 0 : i32
    %c0_i32_2 = arith.constant 0 : i32
    return %c0_i32, %c0_i32_0, %c0_i32_1 : i32, i32, i32
  }
  func.func @transform_5(%arg0: i32) -> (i32, i32) {
    %c0_i32 = arith.constant 0 : i32
    %c0_i32_0 = arith.constant 0 : i32
    %c0_i32_1 = arith.constant 0 : i32
    return %c0_i32, %c0_i32_0 : i32, i32
  }
  func.func @transform_6(%arg0: i32) -> (i32, i32, i32) {
    %c0_i32 = arith.constant 0 : i32
    %c0_i32_0 = arith.constant 0 : i32
    %c0_i32_1 = arith.constant 0 : i32
    %c0_i32_2 = arith.constant 0 : i32
    return %c0_i32, %c0_i32_0, %c0_i32_1 : i32, i32, i32
  }
  func.func @transform_7(%arg0: i32) -> (i32, i32, i32) {
    %c0_i32 = arith.constant 0 : i32
    %c0_i32_0 = arith.constant 0 : i32
    %c0_i32_1 = arith.constant 0 : i32
    %c0_i32_2 = arith.constant 0 : i32
    return %c0_i32, %c0_i32_0, %c0_i32_1 : i32, i32, i32
  }
  func.func @transform_8(%arg0: i32) -> (i32, i32) {
    %c0_i32 = arith.constant 0 : i32
    %c0_i32_0 = arith.constant 0 : i32
    %c0_i32_1 = arith.constant 0 : i32
    return %c0_i32, %c0_i32_0 : i32, i32
  }
  func.func @transform_9(%arg0: i32) -> (i32, i32, i32) {
    %c0_i32 = arith.constant 0 : i32
    %c0_i32_0 = arith.constant 0 : i32
    %c0_i32_1 = arith.constant 0 : i32
    %c0_i32_2 = arith.constant 0 : i32
    return %c0_i32, %c0_i32_0, %c0_i32_1 : i32, i32, i32
  }
  func.func @transform_10(%arg0: i32) -> (i32, i32, i32) {
    %c0_i32 = arith.constant 0 : i32
    %c0_i32_0 = arith.constant 0 : i32
    %c0_i32_1 = arith.constant 0 : i32
    %c0_i32_2 = arith.constant 0 : i32
    return %c0_i32, %c0_i32_0, %c0_i32_1 : i32, i32, i32
  }
  func.func @transform_11(%arg0: i32) -> (i32, i32) {
    %c0_i32 = arith.constant 0 : i32
    %c0_i32_0 = arith.constant 0 : i32
    %c0_i32_1 = arith.constant 0 : i32
    return %c0_i32, %c0_i32_0 : i32, i32
  }
  func.func @transform_12(%arg0: i32) -> (i32, i32) {
    %c0_i32 = arith.constant 0 : i32
    %c0_i32_0 = arith.constant 0 : i32
    return %arg0, %c0_i32 : i32, i32
  }
}

</mosaic_0001>

<bundles_post_ra>
// kernel: tile.18
= control target key start
LH: loop header
LB: loop body
LE: loop exit
PB: predicated region body
PF: predicated region fallthrough
CT: control target
= control target key end

     0   :  { %s52_s0 = inlined_call_operand.vmem [shape: f32[4], index: 0, kind: input, shape index: {}]   ;;  %s53_s1 = inlined_call_operand.vmem [shape: f32[48,4], index: 1, kind: output, shape index: {}]  }
   0x1   :  { %v4_v0 = vld [vmem:[%s52_s0] ss:$0 sm:$0xff] }
   0x2   :  { %5 = vst [vmem:[%s53_s1] sm:$0xff] %v4_v0  ;;  %16 = vst [vmem:[%s53_s1 + $0x8] sm:$0xff] %v4_v0 }
   0x3   :  { %17 = vst [vmem:[%s53_s1 + $0x10] sm:$0xff] %v4_v0  ;;  %18 = vst [vmem:[%s53_s1 + $0x18] sm:$0xff] %v4_v0 }
   0x4   :  { %19 = vst [vmem:[%s53_s1 + $0x20] sm:$0xff] %v4_v0  ;;  %20 = vst [vmem:[%s53_s1 + $0x28] sm:$0xff] %v4_v0 }

// kernel: tile.19
= control target key start
LH: loop header
LB: loop body
LE: loop exit
PB: predicated region body
PF: predicated region fallthrough
CT: control target
= control target key end

     0   :  { %s345_s10 = smov 124   ;;  %s346_s11 = smov 116   ;;  %vm7_vm0 = vcmask 31744   ;;  %vm5_vm1 = vcmask 1041409   ;;  %vm13_vm2 = vcmask 1048544   ;;  %vm19_vm3 = vcmask 1015744   ;;  %s552_s0 = inlined_call_operand.vmem [shape: f32[48,4], index: 0, kind: input, shape index: {}]   ;;  %s553_s1 = inlined_call_operand.vmem [shape: f32[1,192], index: 1, kind: output, shape index: {}]  }
   0x1   :  { %v267_v0 = vld [vmem:[%s552_s0 + $0x1f] sm:$0x1]   ;;  %v269_v1 = vld [vmem:[%s552_s0 + $0x1d] sm:$0x1]   ;;  %v268_v2 = vld [vmem:[%s552_s0 + $0x1e] sm:$0x1]  }
   0x2   :  { %11 = vrot.lane.b32.xlu0 %v267_v0, %s345_s10  ;;  %23 = vrot.lane.b32.xlu1 %v269_v1, %s346_s11  ;;  %v270_v3 = vld [vmem:[%s552_s0 + $0x1c] sm:$0x1]   ;;  %s347_s16 = smov 120   ;;  %s348_s17 = smov 112   ;;  %v271_v4 = vld [vmem:[%s552_s0 + $0x1b] sm:$0x1]  }
   0x3   :  { %v272_v5 = vld [vmem:[%s552_s0 + $0x1a] sm:$0x1]   ;;  %s349_s22 = smov 108   ;;  %s350_s23 = smov 104   ;;  %v273_v6 = vld [vmem:[%s552_s0 + $0x19] sm:$0x1]  }
   0x4   :  { %v274_v7 = vld [vmem:[%s552_s0 + $0x18] sm:$0x1]   ;;  %s351_s28 = smov 100   ;;  %s352_s29 = smov 96   ;;  %v275_v8 = vld [vmem:[%s552_s0 + $0x17] sm:$0x1]  }
   0x5   :  { %v276_v9 = vld [vmem:[%s552_s0 + $0x16] sm:$0x1]   ;;  %s353_s5 = smov 92   ;;  %s354_s6 = smov 88   ;;  %v277_v10 = vld [vmem:[%s552_s0 + $0x15] sm:$0x1]  }
   0x6   :  { %17 = vrot.lane.b32.xlu0 %v268_v2, %s347_s16  ;;  %29 = vrot.lane.b32.xlu1 %v270_v3, %s348_s17  ;;  %v278_v11 = vld [vmem:[%s552_s0 + $0x14] sm:$0x1]   ;;  %s355_s11 = smov 84   ;;  %s356_s12 = smov 80   ;;  %v2_v12 = vld [vmem:[%s552_s0] sm:$0x1]  }
   0x7   :  { %v266_v13 = vld [vmem:[%s552_s0 + $0x1f] sm:$0x2]   ;;  %v279_v14 = vld [vmem:[%s552_s0 + $0x13] sm:$0x1]   ;;  %v280_v15 = vld [vmem:[%s552_s0 + $0x12] sm:$0x1]  }
   0x8   :  { %v6_v16 = vsel %vm5_vm1, %v266_v13, %v2_v12  ;;  %s357_s21 = smov 76   ;;  %v281_v17 = vld [vmem:[%s552_s0 + $0x11] sm:$0x1]   ;;  %v282_v18 = vld [vmem:[%s552_s0 + $0x10] sm:$0x1]   ;;  %s360_s7 = smov 64  }
   0x9   :  { %8 = vst.msk [vmem:[#allocation0] ss:$8 sm:$0x3] %vm7_vm0, %v6_v16   ;;  %v283_v19 = vld [vmem:[%s552_s0 + $0xf] sm:$0x1]   ;;  %s361_s16 = smov 60  }
   0xa   :  { %35 = vrot.lane.b32.xlu0 %v271_v4, %s349_s22  ;;  %41 = vrot.lane.b32.xlu1 %v272_v5, %s350_s23  ;;  %s358_s22 = smov 72   ;;  %v284_v20 = vld [vmem:[%s552_s0 + $0x2e] sm:$0x2]   ;;  %v285_v21 = vld [vmem:[%s552_s0 + $0xe] sm:$0x1]   ;;  %s362_s17 = smov 56  }
   0xb   :  { %v286_v22 = vld [vmem:[%s552_s0 + $0x2d] sm:$0x2]   ;;  %v110_v23 = vsel %vm5_vm1, %v284_v20, %v283_v19  ;;  %v287_v25 = vld [vmem:[%s552_s0 + $0xd] sm:$0x1]   ;;  %v289_v27 = vld [vmem:[%s552_s0 + $0xc] sm:$0x1]  }
   0xc   :  { %v120_v24 = vsel %vm5_vm1, %v286_v22, %v285_v21  ;;  %v288_v26 = vld [vmem:[%s552_s0 + $0x2c] sm:$0x2]   ;;  %v290_v28 = vld [vmem:[%s552_s0 + $0x2b] sm:$0x2]   ;;  %v291_v31 = vld [vmem:[%s552_s0 + $0xb] sm:$0x1]  }
   0xd   :  { %v130_v29 = vsel %vm5_vm1, %v288_v26, %v287_v25  ;;  %v140_v30 = vsel %vm5_vm1, %v290_v28, %v289_v27  ;;  %v292_v32 = vld [vmem:[%s552_s0 + $0x2a] sm:$0x2]   ;;  %v293_v33 = vld [vmem:[%s552_s0 + $0xa] sm:$0x1]   ;;  %s363_s26 = smov 52   ;;  %s364_s27 = smov 48  }
   0xe   :  { %47 = vrot.lane.b32.xlu0 %v273_v6, %s351_s28  ;;  %53 = vrot.lane.b32.xlu1 %v274_v7, %s352_s29  ;;  %v294_v34 = vld [vmem:[%s552_s0 + $0x29] sm:$0x2]   ;;  %v150_v35 = vsel %vm5_vm1, %v292_v32, %v291_v31  ;;  %v295_v37 = vld [vmem:[%s552_s0 + $0x9] sm:$0x1]   ;;  %s366_s8 = smov 40   ;;  %s368_s18 = smov 32  }
   0xf   :  { %v160_v36 = vsel %vm5_vm1, %v294_v34, %v293_v33  ;;  %v296_v38 = vld [vmem:[%s552_s0 + $0x28] sm:$0x2]   ;;  %v297_v39 = vld [vmem:[%s552_s0 + $0x8] sm:$0x1]   ;;  %v299_v43 = vld [vmem:[%s552_s0 + $0x7] sm:$0x1]  }
  0x10   :  { %v298_v40 = vld [vmem:[%s552_s0 + $0x27] sm:$0x2]   ;;  %v170_v41 = vsel %vm5_vm1, %v296_v38, %v295_v37  ;;  %v300_v44 = vld [vmem:[%s552_s0 + $0x26] sm:$0x2]   ;;  %v301_v45 = vld [vmem:[%s552_s0 + $0x6] sm:$0x1]  }
  0x11   :  { %v180_v42 = vsel %vm5_vm1, %v298_v40, %v297_v39  ;;  %v302_v46 = vld [vmem:[%s552_s0 + $0x25] sm:$0x2]   ;;  %v190_v47 = vsel %vm5_vm1, %v300_v44, %v299_v43  ;;  %v303_v49 = vld [vmem:[%s552_s0 + $0x5] sm:$0x1]   ;;  %v305_v51 = vld [vmem:[%s552_s0 + $0x4] sm:$0x1]  }
  0x12   :  { %59 = vrot.lane.b32.xlu0 %v275_v8, %s353_s5  ;;  %65 = vrot.lane.b32.xlu1 %v276_v9, %s354_s6  ;;  %s359_s6 = smov 68   ;;  %v200_v48 = vsel %vm5_vm1, %v302_v46, %v301_v45  ;;  %v304_v50 = vld [vmem:[%s552_s0 + $0x24] sm:$0x2]   ;;  %v306_v52 = vld [vmem:[%s552_s0 + $0x23] sm:$0x2]   ;;  %s370_s28 = smov 24  }
  0x13   :  { %v210_v53 = vsel %vm5_vm1, %v304_v50, %v303_v49  ;;  %v220_v54 = vsel %vm5_vm1, %v306_v52, %v305_v51  ;;  %v307_v55 = vld [vmem:[%s552_s0 + $0x3] sm:$0x1]   ;;  %v309_v57 = vld [vmem:[%s552_s0 + $0x2] sm:$0x1]   ;;  %s372_s9 = smov 16   ;;  %s374_s14 = smov 8  }
  0x14   :  { %v308_v56 = vld [vmem:[%s552_s0 + $0x22] sm:$0x2]   ;;  %v310_v58 = vld [vmem:[%s552_s0 + $0x21] sm:$0x2]   ;;  %v311_v61 = vld [vmem:[%s552_s0 + $0x1] sm:$0x1]  }
  0x15   :  { %v230_v59 = vsel %vm5_vm1, %v308_v56, %v307_v55  ;;  %v240_v60 = vsel %vm5_vm1, %v310_v58, %v309_v57  ;;  %v312_v62 = vld [vmem:[%s552_s0 + $0x20] sm:$0x2]   ;;  %s373_s0 = smov 12   ;;  %s375_s15 = smov 4   ;;  %vm25_vm4 = vcmask 982944   ;;  %vm31_vm5 = vcmask 950144  }
  0x16   :  { %71 = vrot.lane.b32.xlu0 %v277_v10, %s355_s11  ;;  %77 = vrot.lane.b32.xlu1 %v278_v11, %s356_s12  ;;  %v250_v63 = vsel %vm5_vm1, %v312_v62, %v311_v61  ;;  %vm37_vm6 = vcmask 917344   ;;  %vm43_vm7 = vcmask 884544   ;;  %vm49_vm8 = vcmask 851744  }
  0x17   :  { %vm55_vm9 = vcmask 818944   ;;  %vm61_vm10 = vcmask 786144   ;;  %vm67_vm11 = vcmask 753344   ;;  %vm73_vm12 = vcmask 720544  }
  0x18   :  { %vm79_vm13 = vcmask 687744   ;;  %vm85_vm14 = vcmask 654944   ;;  %vm91_vm15 = vcmask 622144   ;;  %vm97_vm0 = vcmask 589344  }
  0x19   :  { %vm103_vm1 = vcmask 556544  }
  0x1a   :  { %83 = vrot.lane.b32.xlu0 %v279_v14, %s357_s21  ;;  %89 = vrot.lane.b32.xlu1 %v280_v15, %s358_s22 }
  0x1e   :  { %95 = vrot.lane.b32.xlu0 %v281_v17, %s359_s6  ;;  %101 = vrot.lane.b32.xlu1 %v282_v18, %s360_s7  ;;  %s365_s7 = smov 44  }
  0x22   :  { %111 = vrot.lane.b32.xlu0 %v110_v23, %s361_s16  ;;  %121 = vrot.lane.b32.xlu1 %v120_v24, %s362_s17  ;;  %s367_s17 = smov 36  }
  0x26   :  { %131 = vrot.lane.b32.xlu0 %v130_v29, %s363_s26  ;;  %141 = vrot.lane.b32.xlu1 %v140_v30, %s364_s27  ;;  %s369_s27 = smov 28  }
  0x2a   :  { %151 = vrot.lane.b32.xlu0 %v150_v35, %s365_s7  ;;  %161 = vrot.lane.b32.xlu1 %v160_v36, %s366_s8  ;;  %s371_s8 = smov 20  }
  0x2e   :  { %171 = vrot.lane.b32.xlu0 %v170_v41, %s367_s17  ;;  %181 = vrot.lane.b32.xlu1 %v180_v42, %s368_s18 }
  0x32   :  { %191 = vrot.lane.b32.xlu0 %v190_v47, %s369_s27  ;;  %201 = vrot.lane.b32.xlu1 %v200_v48, %s370_s28 }
  0x36   :  { %211 = vrot.lane.b32.xlu0 %v210_v53, %s371_s8  ;;  %221 = vrot.lane.b32.xlu1 %v220_v54, %s372_s9 }
  0x3a   :  { %231 = vrot.lane.b32.xlu0 %v230_v59, %s373_s0  ;;  %241 = vrot.lane.b32.xlu1 %v240_v60, %s374_s14 }
  0x3e   :  { %251 = vrot.lane.b32.xlu0 %v250_v63, %s375_s15 }
  0x74   :  { %v12_v0 = vpop.permute.xlu0 %11   ;;  %v24_v1 = vpop.permute.xlu1 %23  }
  0x75   :  { %14 = vst.msk [vmem:[#allocation0] sm:$0x1] %vm13_vm2, %v12_v0   ;;  %vm113_vm2 = vcmask 523744  }
  0x78   :  { %v18_v2 = vpop.permute.xlu0 %17   ;;  %v30_v3 = vpop.permute.xlu1 %29  }
  0x79   :  { %20 = vst.msk [vmem:[#allocation0] sm:$0x1] %vm19_vm3, %v18_v2   ;;  %vm123_vm3 = vcmask 490944  }
  0x7a   :  { %26 = vst.msk [vmem:[#allocation0] sm:$0x1] %vm25_vm4, %v24_v1   ;;  %vm133_vm4 = vcmask 458144  }
  0x7b   :  { %32 = vst.msk [vmem:[#allocation0] sm:$0x1] %vm31_vm5, %v30_v3   ;;  %vm143_vm5 = vcmask 425344  }
  0x7c   :  { %v36_v4 = vpop.permute.xlu0 %35   ;;  %v42_v5 = vpop.permute.xlu1 %41  }
  0x7d   :  { %38 = vst.msk [vmem:[#allocation0] sm:$0x1] %vm37_vm6, %v36_v4   ;;  %vm153_vm6 = vcmask 392544  }
  0x7e   :  { %44 = vst.msk [vmem:[#allocation0] sm:$0x1] %vm43_vm7, %v42_v5   ;;  %vm163_vm7 = vcmask 359744  }
  0x80   :  { %v48_v6 = vpop.permute.xlu0 %47   ;;  %v54_v7 = vpop.permute.xlu1 %53  }
  0x81   :  { %50 = vst.msk [vmem:[#allocation0] sm:$0x1] %vm49_vm8, %v48_v6   ;;  %vm173_vm8 = vcmask 326944  }
  0x82   :  { %56 = vst.msk [vmem:[#allocation0] sm:$0x1] %vm55_vm9, %v54_v7   ;;  %vm183_vm9 = vcmask 294144  }
  0x84   :  { %v60_v8 = vpop.permute.xlu0 %59   ;;  %v66_v9 = vpop.permute.xlu1 %65  }
  0x85   :  { %62 = vst.msk [vmem:[#allocation0] sm:$0x1] %vm61_vm10, %v60_v8   ;;  %vm193_vm10 = vcmask 261344  }
  0x86   :  { %68 = vst.msk [vmem:[#allocation0] sm:$0x1] %vm67_vm11, %v66_v9   ;;  %vm203_vm11 = vcmask 228544  }
  0x88   :  { %v72_v10 = vpop.permute.xlu0 %71   ;;  %v78_v11 = vpop.permute.xlu1 %77  }
  0x89   :  { %74 = vst.msk [vmem:[#allocation0] sm:$0x1] %vm73_vm12, %v72_v10   ;;  %vm213_vm12 = vcmask 195744  }
  0x8a   :  { %80 = vst.msk [vmem:[#allocation0] sm:$0x1] %vm79_vm13, %v78_v11   ;;  %vm223_vm13 = vcmask 162944  }
  0x8c   :  { %v84_v12 = vpop.permute.xlu0 %83   ;;  %v90_v13 = vpop.permute.xlu1 %89  }
  0x8d   :  { %86 = vst.msk [vmem:[#allocation0] sm:$0x1] %vm85_vm14, %v84_v12   ;;  %vm233_vm14 = vcmask 130144  }
  0x8e   :  { %92 = vst.msk [vmem:[#allocation0] sm:$0x1] %vm91_vm15, %v90_v13   ;;  %vm243_vm15 = vcmask 97344  }
  0x90   :  { %v96_v14 = vpop.permute.xlu0 %95   ;;  %v102_v15 = vpop.permute.xlu1 %101  }
  0x91   :  { %98 = vst.msk [vmem:[#allocation0] sm:$0x1] %vm97_vm0, %v96_v14   ;;  %vm253_vm0 = vcmask 64544  }
  0x92   :  { %104 = vst.msk [vmem:[#allocation0] sm:$0x1] %vm103_vm1, %v102_v15  }
  0x94   :  { %v112_v16 = vpop.permute.xlu0 %111   ;;  %v122_v17 = vpop.permute.xlu1 %121  }
  0x95   :  { %114 = vst.msk [vmem:[#allocation0] ss:$8 sm:$0x3] %vm113_vm2, %v112_v16  }
  0x96   :  { %124 = vst.msk [vmem:[#allocation0] ss:$8 sm:$0x3] %vm123_vm3, %v122_v17  }
  0x98   :  { %v132_v18 = vpop.permute.xlu0 %131   ;;  %v142_v19 = vpop.permute.xlu1 %141  }
  0x99   :  { %134 = vst.msk [vmem:[#allocation0] ss:$8 sm:$0x3] %vm133_vm4, %v132_v18  }
  0x9a   :  { %144 = vst.msk [vmem:[#allocation0] ss:$8 sm:$0x3] %vm143_vm5, %v142_v19  }
  0x9c   :  { %v152_v20 = vpop.permute.xlu0 %151   ;;  %v162_v21 = vpop.permute.xlu1 %161  }
  0x9d   :  { %154 = vst.msk [vmem:[#allocation0] ss:$8 sm:$0x3] %vm153_vm6, %v152_v20  }
  0x9e   :  { %164 = vst.msk [vmem:[#allocation0] ss:$8 sm:$0x3] %vm163_vm7, %v162_v21  }
  0xa0   :  { %v172_v22 = vpop.permute.xlu0 %171   ;;  %v182_v23 = vpop.permute.xlu1 %181  }
  0xa1   :  { %174 = vst.msk [vmem:[#allocation0] ss:$8 sm:$0x3] %vm173_vm8, %v172_v22  }
  0xa2   :  { %184 = vst.msk [vmem:[#allocation0] ss:$8 sm:$0x3] %vm183_vm9, %v182_v23  }
  0xa4   :  { %v192_v24 = vpop.permute.xlu0 %191   ;;  %v202_v25 = vpop.permute.xlu1 %201  }
  0xa5   :  { %194 = vst.msk [vmem:[#allocation0] ss:$8 sm:$0x3] %vm193_vm10, %v192_v24  }
  0xa6   :  { %204 = vst.msk [vmem:[#allocation0] ss:$8 sm:$0x3] %vm203_vm11, %v202_v25  }
  0xa8   :  { %v212_v26 = vpop.permute.xlu0 %211   ;;  %v222_v27 = vpop.permute.xlu1 %221  }
  0xa9   :  { %214 = vst.msk [vmem:[#allocation0] ss:$8 sm:$0x3] %vm213_vm12, %v212_v26  }
  0xaa   :  { %224 = vst.msk [vmem:[#allocation0] ss:$8 sm:$0x3] %vm223_vm13, %v222_v27  }
  0xac   :  { %v232_v28 = vpop.permute.xlu0 %231   ;;  %v242_v29 = vpop.permute.xlu1 %241  }
  0xad   :  { %234 = vst.msk [vmem:[#allocation0] ss:$8 sm:$0x3] %vm233_vm14, %v232_v28  }
  0xae   :  { %244 = vst.msk [vmem:[#allocation0] ss:$8 sm:$0x3] %vm243_vm15, %v242_v29  }
  0xb0   :  { %v252_v30 = vpop.permute.xlu0 %251  }
  0xb1   :  { %254 = vst.msk [vmem:[#allocation0] ss:$8 sm:$0x3] %vm253_vm0, %v252_v30  }
  0xb8   :  { %v258_v31 = vld [vmem:[#allocation0] sm:$0x1]  ;;  %v262_v32 = vld [vmem:[#allocation0 + $0x8] sm:$0x1] }
  0xb9   :  { %260 = vst [vmem:[%s553_s1] sm:$0x1] %v258_v31  ;;  %313 = vst [vmem:[%s553_s1 + $0x1] sm:$0x1] %v262_v32 }

// kernel: tile.23
= control target key start
LH: loop header
LB: loop body
LE: loop exit
PB: predicated region body
PF: predicated region fallthrough
CT: control target
= control target key end

     0   :  { %s34_s0 = inlined_call_operand.vmem [shape: f32[4], index: 0, kind: input, shape index: {}]   ;;  %s35_s1 = inlined_call_operand.vmem [shape: f32[22,4], index: 1, kind: output, shape index: {}]  }
   0x1   :  { %v4_v0 = vld [vmem:[%s34_s0] ss:$0 sm:$0xff] }
   0x2   :  { %5 = vst [vmem:[%s35_s1] sm:$0xff] %v4_v0  ;;  %10 = vst [vmem:[%s35_s1 + $0x8] sm:$0xff] %v4_v0 }
   0x3   :  { %11 = vst [vmem:[%s35_s1 + $0x10] sm:$0xff] %v4_v0 }

// kernel: tile.24
= control target key start
LH: loop header
LB: loop body
LE: loop exit
PB: predicated region body
PF: predicated region fallthrough
CT: control target
= control target key end

     0   :  { %s179_s10 = smov 84   ;;  %s180_s11 = smov 76   ;;  %vm3_vm0 = vcmask 31744   ;;  %vm9_vm1 = vcmask 720544   ;;  %vm15_vm2 = vcmask 687744   ;;  %vm21_vm3 = vcmask 654944   ;;  %s279_s0 = inlined_call_operand.vmem [shape: f32[22,4], index: 0, kind: input, shape index: {}]   ;;  %s280_s1 = inlined_call_operand.vmem [shape: f32[1,88], index: 1, kind: output, shape index: {}]  }
   0x1   :  { %v137_v0 = vld [vmem:[%s279_s0 + $0x15] sm:$0x1]   ;;  %v139_v1 = vld [vmem:[%s279_s0 + $0x13] sm:$0x1]   ;;  %v138_v2 = vld [vmem:[%s279_s0 + $0x14] sm:$0x1]  }
   0x2   :  { %7 = vrot.lane.b32.xlu0 %v137_v0, %s179_s10  ;;  %19 = vrot.lane.b32.xlu1 %v139_v1, %s180_s11  ;;  %v140_v3 = vld [vmem:[%s279_s0 + $0x12] sm:$0x1]   ;;  %s181_s16 = smov 80   ;;  %s182_s17 = smov 72   ;;  %v141_v4 = vld [vmem:[%s279_s0 + $0x11] sm:$0x1]  }
   0x3   :  { %v142_v5 = vld [vmem:[%s279_s0 + $0x10] sm:$0x1]   ;;  %s183_s22 = smov 68   ;;  %s184_s23 = smov 64   ;;  %v143_v6 = vld [vmem:[%s279_s0 + $0xf] sm:$0x1]  }
   0x4   :  { %v144_v7 = vld [vmem:[%s279_s0 + $0xe] sm:$0x1]   ;;  %v2_v8 = vld [vmem:[%s279_s0] sm:$0x1]   ;;  %s185_s30 = smov 60   ;;  %s186_s2 = smov 56  }
   0x5   :  { %4 = vst.msk [vmem:[#allocation0] sm:$0x1] %vm3_vm0, %v2_v8   ;;  %v145_v9 = vld [vmem:[%s279_s0 + $0xd] sm:$0x1]   ;;  %v146_v10 = vld [vmem:[%s279_s0 + $0xc] sm:$0x1]  }
   0x6   :  { %13 = vrot.lane.b32.xlu0 %v138_v2, %s181_s16  ;;  %25 = vrot.lane.b32.xlu1 %v140_v3, %s182_s17  ;;  %s187_s7 = smov 52   ;;  %s188_s8 = smov 48   ;;  %v147_v11 = vld [vmem:[%s279_s0 + $0xb] sm:$0x1]   ;;  %v148_v12 = vld [vmem:[%s279_s0 + $0xa] sm:$0x1]  }
   0x7   :  { %s189_s13 = smov 44   ;;  %s190_s14 = smov 40   ;;  %v149_v13 = vld [vmem:[%s279_s0 + $0x9] sm:$0x1]   ;;  %v150_v14 = vld [vmem:[%s279_s0 + $0x8] sm:$0x1]  }
   0x8   :  { %s191_s19 = smov 36   ;;  %s192_s20 = smov 32   ;;  %v151_v15 = vld [vmem:[%s279_s0 + $0x7] sm:$0x1]   ;;  %v152_v16 = vld [vmem:[%s279_s0 + $0x6] sm:$0x1]  }
   0x9   :  { %s193_s25 = smov 28   ;;  %s194_s26 = smov 24   ;;  %v153_v17 = vld [vmem:[%s279_s0 + $0x5] sm:$0x1]   ;;  %v154_v18 = vld [vmem:[%s279_s0 + $0x4] sm:$0x1]  }
   0xa   :  { %31 = vrot.lane.b32.xlu0 %v141_v4, %s183_s22  ;;  %37 = vrot.lane.b32.xlu1 %v142_v5, %s184_s23  ;;  %s196_s3 = smov 16   ;;  %v155_v19 = vld [vmem:[%s279_s0 + $0x3] sm:$0x1]   ;;  %v156_v20 = vld [vmem:[%s279_s0 + $0x2] sm:$0x1]   ;;  %s198_s9 = smov 8  }
   0xb   :  { %v157_v21 = vld [vmem:[%s279_s0 + $0x1] sm:$0x1]   ;;  %s199_s0 = smov 4   ;;  %vm27_vm4 = vcmask 622144   ;;  %vm33_vm5 = vcmask 589344   ;;  %vm39_vm6 = vcmask 556544  }
   0xc   :  { %vm45_vm7 = vcmask 523744   ;;  %vm51_vm8 = vcmask 490944   ;;  %vm57_vm9 = vcmask 458144   ;;  %vm63_vm10 = vcmask 425344  }
   0xd   :  { %vm69_vm11 = vcmask 392544   ;;  %vm75_vm12 = vcmask 359744   ;;  %vm81_vm13 = vcmask 326944   ;;  %vm87_vm14 = vcmask 294144  }
   0xe   :  { %43 = vrot.lane.b32.xlu0 %v143_v6, %s185_s30  ;;  %49 = vrot.lane.b32.xlu1 %v144_v7, %s186_s2  ;;  %s195_s2 = smov 20   ;;  %vm93_vm15 = vcmask 261344   ;;  %vm99_vm0 = vcmask 228544  }
  0x12   :  { %55 = vrot.lane.b32.xlu0 %v145_v9, %s187_s7  ;;  %61 = vrot.lane.b32.xlu1 %v146_v10, %s188_s8  ;;  %s197_s8 = smov 12  }
  0x16   :  { %67 = vrot.lane.b32.xlu0 %v147_v11, %s189_s13  ;;  %73 = vrot.lane.b32.xlu1 %v148_v12, %s190_s14 }
  0x1a   :  { %79 = vrot.lane.b32.xlu0 %v149_v13, %s191_s19  ;;  %85 = vrot.lane.b32.xlu1 %v150_v14, %s192_s20 }
  0x1e   :  { %91 = vrot.lane.b32.xlu0 %v151_v15, %s193_s25  ;;  %97 = vrot.lane.b32.xlu1 %v152_v16, %s194_s26 }
  0x22   :  { %103 = vrot.lane.b32.xlu0 %v153_v17, %s195_s2  ;;  %109 = vrot.lane.b32.xlu1 %v154_v18, %s196_s3 }
  0x26   :  { %115 = vrot.lane.b32.xlu0 %v155_v19, %s197_s8  ;;  %121 = vrot.lane.b32.xlu1 %v156_v20, %s198_s9 }
  0x2a   :  { %127 = vrot.lane.b32.xlu0 %v157_v21, %s199_s0 }
  0x74   :  { %v8_v22 = vpop.permute.xlu0 %7   ;;  %v20_v23 = vpop.permute.xlu1 %19  }
  0x75   :  { %10 = vst.msk [vmem:[#allocation0] sm:$0x1] %vm9_vm1, %v8_v22   ;;  %vm105_vm1 = vcmask 195744  }
  0x78   :  { %v14_v24 = vpop.permute.xlu0 %13   ;;  %v26_v25 = vpop.permute.xlu1 %25  }
  0x79   :  { %16 = vst.msk [vmem:[#allocation0] sm:$0x1] %vm15_vm2, %v14_v24   ;;  %vm111_vm2 = vcmask 162944  }
  0x7a   :  { %22 = vst.msk [vmem:[#allocation0] sm:$0x1] %vm21_vm3, %v20_v23   ;;  %vm117_vm3 = vcmask 130144  }
  0x7b   :  { %28 = vst.msk [vmem:[#allocation0] sm:$0x1] %vm27_vm4, %v26_v25   ;;  %vm123_vm4 = vcmask 97344  }
  0x7c   :  { %v32_v26 = vpop.permute.xlu0 %31   ;;  %v38_v27 = vpop.permute.xlu1 %37  }
  0x7d   :  { %34 = vst.msk [vmem:[#allocation0] sm:$0x1] %vm33_vm5, %v32_v26   ;;  %vm129_vm5 = vcmask 64544  }
  0x7e   :  { %40 = vst.msk [vmem:[#allocation0] sm:$0x1] %vm39_vm6, %v38_v27  }
  0x80   :  { %v44_v28 = vpop.permute.xlu0 %43   ;;  %v50_v29 = vpop.permute.xlu1 %49  }
  0x81   :  { %46 = vst.msk [vmem:[#allocation0] sm:$0x1] %vm45_vm7, %v44_v28  }
  0x82   :  { %52 = vst.msk [vmem:[#allocation0] sm:$0x1] %vm51_vm8, %v50_v29  }
  0x84   :  { %v56_v30 = vpop.permute.xlu0 %55   ;;  %v62_v31 = vpop.permute.xlu1 %61  }
  0x85   :  { %58 = vst.msk [vmem:[#allocation0] sm:$0x1] %vm57_vm9, %v56_v30  }
  0x86   :  { %64 = vst.msk [vmem:[#allocation0] sm:$0x1] %vm63_vm10, %v62_v31  }
  0x88   :  { %v68_v32 = vpop.permute.xlu0 %67   ;;  %v74_v33 = vpop.permute.xlu1 %73  }
  0x89   :  { %70 = vst.msk [vmem:[#allocation0] sm:$0x1] %vm69_vm11, %v68_v32  }
  0x8a   :  { %76 = vst.msk [vmem:[#allocation0] sm:$0x1] %vm75_vm12, %v74_v33  }
  0x8c   :  { %v80_v34 = vpop.permute.xlu0 %79   ;;  %v86_v35 = vpop.permute.xlu1 %85  }
  0x8d   :  { %82 = vst.msk [vmem:[#allocation0] sm:$0x1] %vm81_vm13, %v80_v34  }
  0x8e   :  { %88 = vst.msk [vmem:[#allocation0] sm:$0x1] %vm87_vm14, %v86_v35  }
  0x90   :  { %v92_v36 = vpop.permute.xlu0 %91   ;;  %v98_v37 = vpop.permute.xlu1 %97  }
  0x91   :  { %94 = vst.msk [vmem:[#allocation0] sm:$0x1] %vm93_vm15, %v92_v36  }
  0x92   :  { %100 = vst.msk [vmem:[#allocation0] sm:$0x1] %vm99_vm0, %v98_v37  }
  0x94   :  { %v104_v38 = vpop.permute.xlu0 %103   ;;  %v110_v39 = vpop.permute.xlu1 %109  }
  0x95   :  { %106 = vst.msk [vmem:[#allocation0] sm:$0x1] %vm105_vm1, %v104_v38  }
  0x96   :  { %112 = vst.msk [vmem:[#allocation0] sm:$0x1] %vm111_vm2, %v110_v39  }
  0x98   :  { %v116_v40 = vpop.permute.xlu0 %115   ;;  %v122_v41 = vpop.permute.xlu1 %121  }
  0x99   :  { %118 = vst.msk [vmem:[#allocation0] sm:$0x1] %vm117_vm3, %v116_v40  }
  0x9a   :  { %124 = vst.msk [vmem:[#allocation0] sm:$0x1] %vm123_vm4, %v122_v41  }
  0x9c   :  { %v128_v42 = vpop.permute.xlu0 %127  }
  0x9d   :  { %130 = vst.msk [vmem:[#allocation0] sm:$0x1] %vm129_vm5, %v128_v42  }
  0xa4   :  { %v134_v43 = vld [vmem:[#allocation0] sm:$0x1] }
  0xa5   :  { %136 = vst [vmem:[%s280_s1] sm:$0x1] %v134_v43 }

// kernel: tile.28
= control target key start
LH: loop header
LB: loop body
LE: loop exit
PB: predicated region body
PF: predicated region fallthrough
CT: control target
= control target key end

     0   :  { %s28_s0 = inlined_call_operand.vmem [shape: f32[4], index: 0, kind: input, shape index: {}]   ;;  %s29_s1 = inlined_call_operand.vmem [shape: f32[9,4], index: 1, kind: output, shape index: {}]  }
   0x1   :  { %v4_v0 = vld [vmem:[%s28_s0] ss:$0 sm:$0xff] }
   0x2   :  { %5 = vst [vmem:[%s29_s1] sm:$0xff] %v4_v0  ;;  %8 = vst [vmem:[%s29_s1 + $0x8] sm:$0xff] %v4_v0 }

// kernel: tile.29
= control target key start
LH: loop header
LB: loop body
LE: loop exit
PB: predicated region body
PF: predicated region fallthrough
CT: control target
= control target key end

     0   :  { %s75_s10 = smov 32   ;;  %s76_s11 = smov 24   ;;  %vm3_vm0 = vcmask 31744   ;;  %vm9_vm1 = vcmask 294144   ;;  %vm15_vm2 = vcmask 261344   ;;  %vm21_vm3 = vcmask 228544   ;;  %s123_s0 = inlined_call_operand.vmem [shape: f32[9,4], index: 0, kind: input, shape index: {}]   ;;  %s124_s1 = inlined_call_operand.vmem [shape: f32[1,36], index: 1, kind: output, shape index: {}]  }
   0x1   :  { %v59_v0 = vld [vmem:[%s123_s0 + $0x8] sm:$0x1]   ;;  %v61_v1 = vld [vmem:[%s123_s0 + $0x6] sm:$0x1]   ;;  %v60_v2 = vld [vmem:[%s123_s0 + $0x7] sm:$0x1]  }
   0x2   :  { %7 = vrot.lane.b32.xlu0 %v59_v0, %s75_s10  ;;  %19 = vrot.lane.b32.xlu1 %v61_v1, %s76_s11  ;;  %v62_v3 = vld [vmem:[%s123_s0 + $0x5] sm:$0x1]   ;;  %v2_v4 = vld [vmem:[%s123_s0] sm:$0x1]   ;;  %s77_s18 = smov 28   ;;  %s78_s19 = smov 20  }
   0x3   :  { %4 = vst.msk [vmem:[#allocation0] sm:$0x1] %vm3_vm0, %v2_v4   ;;  %v63_v5 = vld [vmem:[%s123_s0 + $0x4] sm:$0x1]   ;;  %v64_v6 = vld [vmem:[%s123_s0 + $0x3] sm:$0x1]  }
   0x4   :  { %s79_s24 = smov 16   ;;  %s80_s25 = smov 12   ;;  %v65_v7 = vld [vmem:[%s123_s0 + $0x2] sm:$0x1]   ;;  %v66_v8 = vld [vmem:[%s123_s0 + $0x1] sm:$0x1]  }
   0x5   :  { %s81_s0 = smov 8   ;;  %s82_s30 = smov 4   ;;  %vm27_vm4 = vcmask 195744   ;;  %vm33_vm5 = vcmask 162944   ;;  %vm39_vm6 = vcmask 130144   ;;  %vm45_vm7 = vcmask 97344  }
   0x6   :  { %13 = vrot.lane.b32.xlu0 %v60_v2, %s77_s18  ;;  %25 = vrot.lane.b32.xlu1 %v62_v3, %s78_s19  ;;  %vm51_vm8 = vcmask 64544  }
   0xa   :  { %31 = vrot.lane.b32.xlu0 %v63_v5, %s79_s24  ;;  %37 = vrot.lane.b32.xlu1 %v64_v6, %s80_s25 }
   0xe   :  { %43 = vrot.lane.b32.xlu0 %v65_v7, %s81_s0  ;;  %49 = vrot.lane.b32.xlu1 %v66_v8, %s82_s30 }
  0x74   :  { %v8_v9 = vpop.permute.xlu0 %7   ;;  %v20_v10 = vpop.permute.xlu1 %19  }
  0x75   :  { %10 = vst.msk [vmem:[#allocation0] sm:$0x1] %vm9_vm1, %v8_v9  }
  0x78   :  { %v14_v11 = vpop.permute.xlu0 %13   ;;  %v26_v12 = vpop.permute.xlu1 %25  }
  0x79   :  { %16 = vst.msk [vmem:[#allocation0] sm:$0x1] %vm15_vm2, %v14_v11  }
  0x7a   :  { %22 = vst.msk [vmem:[#allocation0] sm:$0x1] %vm21_vm3, %v20_v10  }
  0x7b   :  { %28 = vst.msk [vmem:[#allocation0] sm:$0x1] %vm27_vm4, %v26_v12  }
  0x7c   :  { %v32_v13 = vpop.permute.xlu0 %31   ;;  %v38_v14 = vpop.permute.xlu1 %37  }
  0x7d   :  { %34 = vst.msk [vmem:[#allocation0] sm:$0x1] %vm33_vm5, %v32_v13  }
  0x7e   :  { %40 = vst.msk [vmem:[#allocation0] sm:$0x1] %vm39_vm6, %v38_v14  }
  0x80   :  { %v44_v15 = vpop.permute.xlu0 %43   ;;  %v50_v16 = vpop.permute.xlu1 %49  }
  0x81   :  { %46 = vst.msk [vmem:[#allocation0] sm:$0x1] %vm45_vm7, %v44_v15  }
  0x82   :  { %52 = vst.msk [vmem:[#allocation0] sm:$0x1] %vm51_vm8, %v50_v16  }
  0x89   :  { %v56_v17 = vld [vmem:[#allocation0] sm:$0x1] }
  0x8a   :  { %58 = vst [vmem:[%s124_s1] sm:$0x1] %v56_v17 }

// kernel: img_enc_forward.1
= control target key start
LH: loop header
LB: loop body
LE: loop exit
PB: predicated region body
PF: predicated region fallthrough
CT: control target
= control target key end

     0   :  { %vm216_vm0 = vcmask 179200   ;;  %vm361_vm1 = vcmask 1045504   ;;  %vm2022_vm2 = vcmask 523264   ;;  %vm2898_vm3 = vcmask 785408   ;;  %s9509_s1 = inlined_call_operand.vmem [shape: f32[3,150,192], index: 1, kind: input, shape index: {}]   ;;  %s9510_s0 = inlined_call_operand.vmem [shape: f32[1,400,150], index: 0, kind: input, shape index: {}]   ;;  %s9511_s3 = inlined_call_operand.vmem [shape: f32[2,192,96], index: 3, kind: input, shape index: {}]   ;;  %s9512_s2 = inlined_call_operand.vmem [shape: f32[1,192], index: 2, kind: input, shape index: {}]   ;;  %s9513_s4 = inlined_call_operand.vmem [shape: f32[3,96,88], index: 4, kind: input, shape index: {}]   ;;  %s9514_s6 = inlined_call_operand.vmem [shape: f32[2,88,44], index: 6, kind: input, shape index: {}]   ;;  %s9515_s5 = inlined_call_operand.vmem [shape: f32[1,88], index: 5, kind: input, shape index: {}]   ;;  %s9516_s7 = inlined_call_operand.vmem [shape: f32[3,44,36], index: 7, kind: input, shape index: {}]   ;;  %s9517_s9 = inlined_call_operand.vmem [shape: f32[2,36,16], index: 9, kind: input, shape index: {}]   ;;  %s9518_s8 = inlined_call_operand.vmem [shape: f32[1,36], index: 8, kind: input, shape index: {}]   ;;  %s9519_s10 = inlined_call_operand.vmem [shape: f32[4,16,32], index: 10, kind: input, shape index: {}]   ;;  %s9520_s11 = inlined_call_operand.vmem [shape: f32[1,32], index: 11, kind: input, shape index: {}]   ;;  %s9521_s12 = inlined_call_operand.vmem [shape: f32[8,32], index: 12, kind: output, shape index: {}]  }
   0x1   :  { %v4950_v0 = vld [vmem:[%s9509_s1 + $0x138] sm:$0xff]  ;;  %v4952_v1 = vld [vmem:[%s9509_s1 + $0x148] sm:$0xff]  ;;  %v4949_v2 = vld [vmem:[%s9509_s1 + $0x130] sm:$0xff]  ;;  %vm6716_vm4 = vmmov 0   ;;  %vm3582_vm5 = vcmask 719872   ;;  %vm4008_vm6 = vcmask 1043456  }
   0x2   :  { %v6119_v3 = vpack.c.bf16 %v4952_v1, %v4950_v0  ;;  %v4951_v4 = vld [vmem:[%s9509_s1 + $0x140] sm:$0xff]  ;;  %v4954_v5 = vld [vmem:[%s9509_s1 + $0x158] sm:$0xff]  ;;  %v4956_v6 = vld [vmem:[%s9509_s1 + $0x168] sm:$0xff]  ;;  %vm6717_vm7 = vmmov 1   ;;  %vm3980_vm9 = vcmask 359424   ;;  %vm4395_vm10 = vcmask 293888  }
   0x3   :  { %v6121_v7 = vpack.c.bf16 %v4951_v4, %v4949_v2  ;;  %v6123_v8 = vpack.c.bf16 %v4956_v6, %v4954_v5  ;;  %v4953_v9 = vld [vmem:[%s9509_s1 + $0x150] sm:$0xff]  ;;  %v4955_v10 = vld [vmem:[%s9509_s1 + $0x160] sm:$0xff]  ;;  %v4958_v11 = vld [vmem:[%s9509_s1 + $0x178] sm:$0xff]  ;;  %vm4631_vm11 = vcmask 130048   ;;  %vm4943_vm12 = vcmask 261120  }
   0x4   :  { %6120 = vmatprep.subr.bf16.mxu0 %v6119_v3  ;;  %v4960_v12 = vld [vmem:[%s9509_s1 + $0x188] sm:$0xff]  ;;  %v6125_v13 = vpack.c.bf16 %v4955_v10, %v4953_v9  ;;  %v4957_v15 = vld [vmem:[%s9509_s1 + $0x170] sm:$0xff]  ;;  %v4959_v16 = vld [vmem:[%s9509_s1 + $0x180] sm:$0xff] }
   0x5   :  { %6122 = vmatpush1.bf16.msra.mxu0 %v6121_v7  ;;  %v6127_v14 = vpack.c.bf16 %v4960_v12, %v4958_v11  ;;  %v4962_v17 = vld [vmem:[%s9509_s1 + $0x198] sm:$0xff]  ;;  %v4964_v18 = vld [vmem:[%s9509_s1 + $0x1a8] sm:$0xff]  ;;  %v6129_v19 = vpack.c.bf16 %v4959_v16, %v4957_v15  ;;  %v4961_v21 = vld [vmem:[%s9509_s1 + $0x190] sm:$0xff] }
   0x6   :  { %6124 = vmatprep.subr.bf16.mxu0 %v6123_v8  ;;  %v6131_v20 = vpack.c.bf16 %v4964_v18, %v4962_v17  ;;  %v4963_v22 = vld [vmem:[%s9509_s1 + $0x1a0] sm:$0xff]  ;;  %v4966_v23 = vld [vmem:[%s9509_s1 + $0x1b8] sm:$0xff]  ;;  %v4968_v24 = vld [vmem:[%s9509_s1 + $0x1c8] sm:$0xff] }
   0x7   :  { %v6133_v25 = vpack.c.bf16 %v4963_v22, %v4961_v21  ;;  %v6840_v26 = vld [vmem:[%s9510_s0 + $0x18] sm:$0xff]  ;;  %v6135_v27 = vpack.c.bf16 %v4968_v24, %v4966_v23  ;;  %v4965_v28 = vld [vmem:[%s9509_s1 + $0x1b0] sm:$0xff]  ;;  %v4967_v29 = vld [vmem:[%s9509_s1 + $0x1c0] sm:$0xff] }
   0x8   :  { %4989 = vmatprep.mubr.msk.f32.mxu0 %vm216_vm0, %v6840_v26  ;;  %v4970_v30 = vld [vmem:[%s9509_s1 + $0x1d8] sm:$0xff]  ;;  %v4972_v31 = vld [vmem:[%s9509_s1 + $0x1e8] sm:$0xff]  ;;  %v6137_v32 = vpack.c.bf16 %v4967_v29, %v4965_v28  ;;  %v4969_v34 = vld [vmem:[%s9509_s1 + $0x1d0] sm:$0xff] }
   0x9   :  { %6126 = vmatpush1.bf16.msra.mxu0 %v6125_v13  ;;  %v6139_v33 = vpack.c.bf16 %v4972_v31, %v4970_v30  ;;  %v4971_v35 = vld [vmem:[%s9509_s1 + $0x1e0] sm:$0xff]  ;;  %v4974_v36 = vld [vmem:[%s9509_s1 + $0x1f8] sm:$0xff]  ;;  %v4976_v37 = vld [vmem:[%s9509_s1 + $0x208] sm:$0xff] }
   0xa   :  { %6128 = vmatprep.subr.bf16.mxu0 %v6127_v14  ;;  %v6141_v38 = vpack.c.bf16 %v4971_v35, %v4969_v34  ;;  %v6143_v39 = vpack.c.bf16 %v4976_v37, %v4974_v36  ;;  %v4973_v40 = vld [vmem:[%s9509_s1 + $0x1f0] sm:$0xff]  ;;  %v4975_v41 = vld [vmem:[%s9509_s1 + $0x200] sm:$0xff]  ;;  %v4978_v42 = vld [vmem:[%s9509_s1 + $0x218] sm:$0xff] }
   0xb   :  { %v4980_v43 = vld [vmem:[%s9509_s1 + $0x228] sm:$0xff]  ;;  %v6145_v44 = vpack.c.bf16 %v4975_v41, %v4973_v40  ;;  %v4977_v46 = vld [vmem:[%s9509_s1 + $0x210] sm:$0xff]  ;;  %v4979_v47 = vld [vmem:[%s9509_s1 + $0x220] sm:$0xff] }
   0xc   :  { %v6147_v45 = vpack.c.bf16 %v4980_v43, %v4978_v42  ;;  %v4982_v48 = vld [vmem:[%s9509_s1 + $0x238] sm:$0xff]  ;;  %v4984_v49 = vld [vmem:[%s9509_s1 + $0x248] sm:$0xff]  ;;  %v6149_v50 = vpack.c.bf16 %v4979_v47, %v4977_v46  ;;  %v4981_v52 = vld [vmem:[%s9509_s1 + $0x230] sm:$0xff] }
   0xd   :  { %6130 = vmatpush1.bf16.msra.mxu0 %v6129_v19  ;;  %v6151_v51 = vpack.c.bf16 %v4984_v49, %v4982_v48  ;;  %v4983_v53 = vld [vmem:[%s9509_s1 + $0x240] sm:$0xff]  ;;  %v4986_v55 = vld [vmem:[%s9509_s1 + $0x258] sm:$0x3f]  ;;  %v138_v56 = vld [vmem:[%s9509_s1 + $0x8] sm:$0xff] }
   0xe   :  { %6132 = vmatprep.subr.bf16.mxu0 %v6131_v20  ;;  %v6153_v54 = vpack.c.bf16 %v4983_v53, %v4981_v52  ;;  %v140_v57 = vld [vmem:[%s9509_s1 + $0x18] sm:$0xff]  ;;  %v137_v58 = vld [vmem:[%s9509_s1] sm:$0xff]  ;;  %v139_v59 = vld [vmem:[%s9509_s1 + $0x10] sm:$0xff] }
   0xf   :  { %v142_v60 = vld [vmem:[%s9509_s1 + $0x28] sm:$0xff]  ;;  %v144_v61 = vld [vmem:[%s9509_s1 + $0x38] sm:$0xff]  ;;  %v4985_v62 = vld [vmem:[%s9509_s1 + $0x250] sm:$0x3f]  ;;  %v6155_v63 = vpack.c.bf16 %v140_v57, %v138_v56  ;;  %v6157_v1 = vpack.c.bf16 %v139_v59, %v137_v58 }
  0x10   :  { %v6926_v0 = vld [vmem:[%s9510_s0 + $0x10] sm:$0xff]  ;;  %v6931_v2 = vld [vmem:[%s9510_s0 + $0x28] sm:$0xff]  ;;  %v6159_v3 = vpack.c.bf16 %v144_v61, %v142_v60  ;;  %v141_v4 = vld [vmem:[%s9509_s1 + $0x20] sm:$0xff] }
  0x11   :  { %6134 = vmatpush1.bf16.msra.mxu0 %v6133_v25  ;;  %v143_v5 = vld [vmem:[%s9509_s1 + $0x30] sm:$0xff]  ;;  %v146_v6 = vld [vmem:[%s9509_s1 + $0x48] sm:$0xff]  ;;  %v148_v7 = vld [vmem:[%s9509_s1 + $0x58] sm:$0xff] }
  0x12   :  { %6136 = vmatprep.subr.bf16.mxu0 %v6135_v27  ;;  %v6952_v8 = vld [vmem:[%s9510_s0 + $0x20] sm:$0xff]  ;;  %v6161_v9 = vpack.c.bf16 %v143_v5, %v141_v4  ;;  %v6957_v10 = vld [vmem:[%s9510_s0 + $0x38] sm:$0xff]  ;;  %v6163_v11 = vpack.c.bf16 %v148_v7, %v146_v6  ;;  %v147_v13 = vld [vmem:[%s9509_s1 + $0x50] sm:$0xff] }
  0x13   :  { %v145_v12 = vld [vmem:[%s9509_s1 + $0x40] sm:$0xff]  ;;  %v150_v14 = vld [vmem:[%s9509_s1 + $0x68] sm:$0xff]  ;;  %v152_v15 = vld [vmem:[%s9509_s1 + $0x78] sm:$0xff] }
  0x14   :  { %v6977_v16 = vld [vmem:[%s9510_s0 + $0x30] sm:$0xff]  ;;  %v6165_v17 = vpack.c.bf16 %v147_v13, %v145_v12  ;;  %v6982_v18 = vld [vmem:[%s9510_s0 + $0x48] sm:$0xff]  ;;  %v6167_v19 = vpack.c.bf16 %v152_v15, %v150_v14  ;;  %v149_v20 = vld [vmem:[%s9509_s1 + $0x60] sm:$0xff] }
  0x15   :  { %6138 = vmatpush1.bf16.msra.mxu0 %v6137_v32  ;;  %v151_v21 = vld [vmem:[%s9509_s1 + $0x70] sm:$0xff]  ;;  %v154_v22 = vld [vmem:[%s9509_s1 + $0x88] sm:$0xff]  ;;  %v156_v23 = vld [vmem:[%s9509_s1 + $0x98] sm:$0xff] }
  0x16   :  { %6140 = vmatprep.subr.bf16.mxu0 %v6139_v33  ;;  %v7002_v24 = vld [vmem:[%s9510_s0 + $0x40] sm:$0xff]  ;;  %v6169_v25 = vpack.c.bf16 %v151_v21, %v149_v20  ;;  %v7007_v27 = vld [vmem:[%s9510_s0 + $0x58] sm:$0xff]  ;;  %v6171_v28 = vpack.c.bf16 %v156_v23, %v154_v22  ;;  %v155_v30 = vld [vmem:[%s9509_s1 + $0x90] sm:$0xff] }
  0x17   :  { %v153_v29 = vld [vmem:[%s9509_s1 + $0x80] sm:$0xff]  ;;  %v158_v31 = vld [vmem:[%s9509_s1 + $0xa8] sm:$0xff]  ;;  %v160_v32 = vld [vmem:[%s9509_s1 + $0xb8] sm:$0xff] }
  0x18   :  { %v7027_v33 = vld [vmem:[%s9510_s0 + $0x50] sm:$0xff]  ;;  %v6173_v34 = vpack.c.bf16 %v155_v30, %v153_v29  ;;  %v7032_v35 = vld [vmem:[%s9510_s0 + $0x68] sm:$0xff]  ;;  %v6175_v36 = vpack.c.bf16 %v160_v32, %v158_v31  ;;  %v157_v37 = vld [vmem:[%s9509_s1 + $0xa0] sm:$0xff] }
  0x19   :  { %6142 = vmatpush1.bf16.msra.mxu0 %v6141_v38  ;;  %v159_v38 = vld [vmem:[%s9509_s1 + $0xb0] sm:$0xff]  ;;  %v164_v40 = vld [vmem:[%s9509_s1 + $0xd8] sm:$0xff]  ;;  %v7052_v41 = vld [vmem:[%s9510_s0 + $0x60] sm:$0xff] }
  0x1a   :  { %6144 = vmatprep.subr.bf16.mxu0 %v6143_v39  ;;  %v162_v39 = vld [vmem:[%s9509_s1 + $0xc8] sm:$0xff]  ;;  %v6177_v42 = vpack.c.bf16 %v159_v38, %v157_v37  ;;  %v7057_v43 = vld [vmem:[%s9510_s0 + $0x78] sm:$0xff]  ;;  %v163_v46 = vld [vmem:[%s9509_s1 + $0xd0] sm:$0xff] }
  0x1b   :  { %v166_v47 = vld [vmem:[%s9509_s1 + $0xe8] sm:$0xff]  ;;  %v168_v48 = vld [vmem:[%s9509_s1 + $0xf8] sm:$0xff]  ;;  %v7077_v49 = vld [vmem:[%s9510_s0 + $0x70] sm:$0xff] }
  0x1c   :  { %v6183_v52 = vpack.c.bf16 %v168_v48, %v166_v47  ;;  %v165_v53 = vld [vmem:[%s9509_s1 + $0xe0] sm:$0xff]  ;;  %v172_v56 = vld [vmem:[%s9509_s1 + $0x118] sm:$0xff]  ;;  %v7147_v6 = vld [vmem:[%s9510_s0 + $0xb0] sm:$0xff] }
  0x1d   :  { %6146 = vmatpush1.bf16.msra.mxu0 %v6145_v44  ;;  %v6179_v44 = vpack.c.bf16 %v164_v40, %v162_v39  ;;  %v7102_v57 = vld [vmem:[%s9510_s0 + $0x80] sm:$0xff]  ;;  %v7107_v59 = vld [vmem:[%s9510_s0 + $0x98] sm:$0xff]  ;;  %v7152_v7 = vld [vmem:[%s9510_s0 + $0xc8] sm:$0xff] }
  0x1e   :  { %6148 = vmatprep.subr.bf16.mxu0 %v6147_v45  ;;  %v161_v45 = vld [vmem:[%s9509_s1 + $0xc0] sm:$0xff]  ;;  %v7139_v5 = vld [vmem:[%s9510_s0 + $0xb8] sm:$0xff]  ;;  %v174_v12 = vld [vmem:[%s9509_s1 + $0x128] sm:$0x3f] }
  0x1f   :  { %v169_v61 = vld [vmem:[%s9509_s1 + $0x100] sm:$0xff]  ;;  %v7179_v14 = vld [vmem:[%s9510_s0 + $0xd0] sm:$0xff]  ;;  %v7185_v15 = vld [vmem:[%s9510_s0 + $0xe8] sm:$0xff] }
  0x20   :  { %v7134_v4 = vld [vmem:[%s9510_s0 + $0xa0] sm:$0xff]  ;;  %v7207_v20 = vld [vmem:[%s9510_s0 + $0xf0] sm:$0xff]  ;;  %v7212_v21 = vld [vmem:[%s9510_s0 + $0x108] sm:$0xff] }
  0x21   :  { %6150 = vmatpush1.bf16.msra.mxu0 %v6149_v50  ;;  %v6181_v50 = vpack.c.bf16 %v163_v46, %v161_v45  ;;  %v173_v13 = vld [vmem:[%s9509_s1 + $0x120] sm:$0x3f]  ;;  %v7225_v23 = vld [vmem:[%s9510_s0 + $0x118] sm:$0xff]  ;;  %v5088_v29 = vld [vmem:[%s9509_s1 + $0x268] sm:$0xff] }
  0x22   :  { %6152 = vmatprep.subr.bf16.mxu0 %v6151_v51  ;;  %v7082_v51 = vld [vmem:[%s9510_s0 + $0x88] sm:$0xff]  ;;  %v7220_v22 = vld [vmem:[%s9510_s0 + $0x100] sm:$0xff]  ;;  %v5090_v30 = vld [vmem:[%s9509_s1 + $0x278] sm:$0xff] }
  0x23   :  { %v7252_v31 = vld [vmem:[%s9510_s0 + $0x120] sm:$0xff]  ;;  %v6191_v32 = vpack.c.bf16 %v5090_v30, %v5088_v29  ;;  %v7270_v37 = vld [vmem:[%s9510_s0 + $0x148] sm:$0xff]  ;;  %v7283_v39 = vld [vmem:[%s9510_s0 + $0x158] sm:$0xff] }
  0x24   :  { %v7278_v38 = vld [vmem:[%s9510_s0 + $0x140] sm:$0xff]  ;;  %v7291_v40 = vld [vmem:[%s9510_s0 + $0x150] sm:$0xff]  ;;  %v7309_v45 = vld [vmem:[%s9510_s0 + $0x178] sm:$0xff] }
  0x25   :  { %6154 = vmatpush1.bf16.msra.mxu0 %v6153_v54  ;;  %v167_v54 = vld [vmem:[%s9509_s1 + $0xf0] sm:$0xff]  ;;  %v7322_v47 = vld [vmem:[%s9510_s0 + $0x188] sm:$0xff]  ;;  %v7330_v48 = vld [vmem:[%s9510_s0 + $0x180] sm:$0xff] }
  0x26   :  { %4987 = vmatprep.subr.msk.mxu0 %vm361_vm1, %v4986_v55  ;;  %v170_v55 = vld [vmem:[%s9509_s1 + $0x108] sm:$0xff]  ;;  %v6185_v58 = vpack.c.bf16 %v167_v54, %v165_v53  ;;  %v7317_v46 = vld [vmem:[%s9510_s0 + $0x170] sm:$0xff]  ;;  %v7356_v54 = vld [vmem:[%s9510_s0 + $0x1a0] sm:$0xff] }
  0x27   :  { %v6187_v60 = vpack.c.bf16 %v172_v56, %v170_v55  ;;  %v7348_v53 = vld [vmem:[%s9510_s0 + $0x1a8] sm:$0xff]  ;;  %v7361_v55 = vld [vmem:[%s9510_s0 + $0x1b8] sm:$0xff]  ;;  %v7369_v56 = vld [vmem:[%s9510_s0 + $0x1b0] sm:$0xff] }
  0x28   :  { %9608 = vst [vmem:[#allocation8_spill] sm:$0xff] %v7361_v55  ;;  %9609 = vst [vmem:[#allocation9_spill] sm:$0xff] %v7369_v56  ;;  %v7421_v29 = vld [vmem:[%s9510_s0 + $0x1f0] sm:$0xff]  ;;  %v7426_v30 = vld [vmem:[%s9510_s0 + $0x208] sm:$0xff] }
  0x29   :  { %4988 = vmatpush1.msk.msra.mxu0 %vm361_vm1, %v4985_v62  ;;  %v171_v62 = vld [vmem:[%s9509_s1 + $0x110] sm:$0xff]  ;;  %9617 = vst [vmem:[#allocation17_spill] sm:$0xff] %v7421_v29  ;;  %9618 = vst [vmem:[#allocation18_spill] sm:$0xff] %v7426_v30 }
  0x2a   :  { %433 = vmatmul.mubr.f32.vlgmr.msra.gmra.mrb[0].mxu0 %v6926_v0  ;;  %6156 = vmatprep.subr.bf16.mxu0 %v6155_v63  ;;  %v7121_v63 = vld [vmem:[%s9510_s0 + $0x90] sm:$0xff]  ;;  %vm9232_vm8 = vmpackc.low %vm4008_vm6, %vm6717_vm7 }
  0x2b   :  { %6158 = vmatpush1.bf16.msra.mxu0 %v6157_v1  ;;  %4990 = vmatprep.mubr.msk.f32.mxu0 %vm216_vm0, %v6931_v2  ;;  %v6189_v1 = vpack.c.bf16 %v171_v62, %v169_v61  ;;  %v7387_v61 = vld [vmem:[%s9510_s0 + $0x1d8] sm:$0xff]  ;;  %v7395_v62 = vld [vmem:[%s9510_s0 + $0x1d0] sm:$0xff] }
  0x2c   :  { %6160 = vmatprep.subr.bf16.mxu0 %v6159_v3  ;;  %v7126_v3 = vld [vmem:[%s9510_s0 + $0xa8] sm:$0xff]  ;;  %9612 = vst [vmem:[#allocation12_spill] sm:$0xff] %v7387_v61  ;;  %9613 = vst [vmem:[#allocation13_spill] sm:$0xff] %v7395_v62 }
  0x2e   :  { %439 = vmatmul.mubr.f32.gmra.mrb[2].mxu0 %v6952_v8 }
  0x2f   :  { %4991 = vmatprep.mubr.msk.f32.mxu0 %vm216_vm0, %v6957_v10  ;;  %6162 = vmatpush1.bf16.msra.mxu0 %v6161_v9  ;;  %v7160_v9 = vld [vmem:[%s9510_s0 + $0xc0] sm:$0xff] }
  0x30   :  { %6164 = vmatprep.subr.bf16.mxu0 %v6163_v11  ;;  %v7165_v11 = vld [vmem:[%s9510_s0 + $0xd8] sm:$0xff] }
  0x32   :  { %445 = vmatmul.mubr.f32.gmra.mrb[4].mxu0 %v6977_v16 }
  0x33   :  { %4992 = vmatprep.mubr.msk.f32.mxu0 %vm216_vm0, %v6982_v18  ;;  %6166 = vmatpush1.bf16.msra.mxu0 %v6165_v17  ;;  %v7194_v17 = vld [vmem:[%s9510_s0 + $0xe0] sm:$0xff] }
  0x34   :  { %6168 = vmatprep.subr.bf16.mxu0 %v6167_v19  ;;  %v7199_v19 = vld [vmem:[%s9510_s0 + $0xf8] sm:$0xff] }
  0x36   :  { %451 = vmatmul.mubr.f32.gmra.mrb[6].mxu0 %v7002_v24 }
  0x37   :  { %4993 = vmatprep.mubr.msk.f32.mxu0 %vm216_vm0, %v7007_v27  ;;  %6170 = vmatpush1.bf16.msra.mxu0 %v6169_v25  ;;  %v7233_v25 = vld [vmem:[%s9510_s0 + $0x110] sm:$0xff] }
  0x38   :  { %6172 = vmatprep.subr.bf16.mxu0 %v6171_v28  ;;  %v7238_v28 = vld [vmem:[%s9510_s0 + $0x128] sm:$0xff] }
  0x3a   :  { %457 = vmatmul.mubr.f32.gmra.mrb[8].mxu0 %v7027_v33 }
  0x3b   :  { %4994 = vmatprep.mubr.msk.f32.mxu0 %vm216_vm0, %v7032_v35  ;;  %6174 = vmatpush1.bf16.msra.mxu0 %v6173_v34  ;;  %v7257_v34 = vld [vmem:[%s9510_s0 + $0x138] sm:$0xff] }
  0x3c   :  { %6176 = vmatprep.subr.bf16.mxu0 %v6175_v36  ;;  %v7265_v36 = vld [vmem:[%s9510_s0 + $0x130] sm:$0xff] }
  0x3e   :  { %463 = vmatmul.mubr.f32.gmra.mrb[10].mxu0 %v7052_v41 }
  0x3f   :  { %4995 = vmatprep.mubr.msk.f32.mxu0 %vm216_vm0, %v7057_v43  ;;  %6178 = vmatpush1.bf16.msra.mxu0 %v6177_v42  ;;  %v7296_v42 = vld [vmem:[%s9510_s0 + $0x168] sm:$0xff] }
  0x40   :  { %6180 = vmatprep.subr.bf16.mxu0 %v6179_v44  ;;  %v7304_v44 = vld [vmem:[%s9510_s0 + $0x160] sm:$0xff] }
  0x42   :  { %469 = vmatmul.mubr.f32.gmra.mrb[12].mxu0 %v7077_v49 }
  0x43   :  { %4996 = vmatprep.mubr.msk.f32.mxu0 %vm216_vm0, %v7082_v51  ;;  %6182 = vmatpush1.bf16.msra.mxu0 %v6181_v50  ;;  %v7335_v50 = vld [vmem:[%s9510_s0 + $0x198] sm:$0xff] }
  0x44   :  { %6184 = vmatprep.subr.bf16.mxu0 %v6183_v52  ;;  %v7343_v52 = vld [vmem:[%s9510_s0 + $0x190] sm:$0xff] }
  0x46   :  { %475 = vmatmul.mubr.f32.gmra.mrb[14].mxu0 %v7102_v57 }
  0x47   :  { %4997 = vmatprep.mubr.msk.f32.mxu0 %vm216_vm0, %v7107_v59  ;;  %6186 = vmatpush1.bf16.msra.mxu0 %v6185_v58  ;;  %v7374_v58 = vld [vmem:[%s9510_s0 + $0x1c8] sm:$0xff] }
  0x48   :  { %6188 = vmatprep.subr.bf16.mxu0 %v6187_v60  ;;  %9610 = vst [vmem:[#allocation10_spill] sm:$0xff] %v7374_v58  ;;  %v7382_v60 = vld [vmem:[%s9510_s0 + $0x1c0] sm:$0xff] }
  0x49   :  { %9611 = vst [vmem:[#allocation11_spill] sm:$0xff] %v7382_v60 }
  0x4a   :  { %481 = vmatmul.mubr.f32.gmra.mrb[16].mxu0 %v7121_v63 }
  0x4b   :  { %4998 = vmatprep.mubr.msk.f32.mxu0 %vm216_vm0, %v7126_v3  ;;  %6190 = vmatpush1.bf16.msra.mxu0 %v6189_v1  ;;  %v7400_v1 = vld [vmem:[%s9510_s0 + $0x1e8] sm:$0xff] }
  0x4c   :  { %5037 = vmatprep.subr.msk.mxu0 %vm361_vm1, %v174_v12  ;;  %9614 = vst [vmem:[#allocation14_spill] sm:$0xff] %v7400_v1  ;;  %v7408_v12 = vld [vmem:[%s9510_s0 + $0x1e0] sm:$0xff] }
  0x4d   :  { %9615 = vst [vmem:[#allocation15_spill] sm:$0xff] %v7408_v12 }
  0x4e   :  { %487 = vmatmul.mubr.f32.gmra.mrb[18].mxu0 %v7134_v4 }
  0x4f   :  { %4999 = vmatprep.mubr.msk.f32.mxu0 %vm216_vm0, %v7139_v5  ;;  %5038 = vmatpush1.msk.msra.mxu0 %vm361_vm1, %v173_v13  ;;  %v7413_v13 = vld [vmem:[%s9510_s0 + $0x1f8] sm:$0xff] }
  0x50   :  { %6192 = vmatprep.subr.bf16.mxu0 %v6191_v32  ;;  %9616 = vst [vmem:[#allocation16_spill] sm:$0xff] %v7413_v13  ;;  %v7434_v32 = vld [vmem:[%s9510_s0 + $0x200] sm:$0xff] }
  0x51   :  { %9619 = vst [vmem:[#allocation19_spill] sm:$0xff] %v7434_v32 }
  0x52   :  { %493 = vmatmul.mubr.f32.gmra.mrb[20].mxu0 %v7147_v6 }
  0x53   :  { %5000 = vmatprep.mubr.msk.f32.mxu0 %vm216_vm0, %v7152_v7 }
  0x56   :  { %499 = vmatmul.mubr.f32.gmra.mrb[22].mxu0 %v7160_v9 }
  0x57   :  { %5001 = vmatprep.mubr.msk.f32.mxu0 %vm216_vm0, %v7165_v11 }
  0x5a   :  { %505 = vmatmul.mubr.f32.gmra.mrb[24].mxu0 %v7179_v14 }
  0x5b   :  { %5002 = vmatprep.mubr.msk.f32.mxu0 %vm216_vm0, %v7185_v15 }
  0x5e   :  { %511 = vmatmul.mubr.f32.gmra.mrb[26].mxu0 %v7194_v17 }
  0x5f   :  { %5003 = vmatprep.mubr.msk.f32.mxu0 %vm216_vm0, %v7199_v19 }
  0x62   :  { %517 = vmatmul.mubr.f32.gmra.mrb[28].mxu0 %v7207_v20 }
  0x63   :  { %5004 = vmatprep.mubr.msk.f32.mxu0 %vm216_vm0, %v7212_v21 }
  0x66   :  { %523 = vmatmul.mubr.f32.gmra.mrb[30].mxu0 %v7220_v22 }
  0x67   :  { %5005 = vmatprep.mubr.msk.f32.mxu0 %vm216_vm0, %v7225_v23 }
  0x6a   :  { %529 = vmatmul.mubr.f32.gmra.mrb[32].mxu0 %v7233_v25 }
  0x6b   :  { %5006 = vmatprep.mubr.msk.f32.mxu0 %vm216_vm0, %v7238_v28 }
  0x6e   :  { %535 = vmatmul.mubr.f32.gmra.mrb[34].mxu0 %v7252_v31 }
  0x6f   :  { %5007 = vmatprep.mubr.msk.f32.mxu0 %vm216_vm0, %v7257_v34 }
  0x72   :  { %541 = vmatmul.mubr.f32.gmra.mrb[36].mxu0 %v7265_v36 }
  0x73   :  { %5008 = vmatprep.mubr.msk.f32.mxu0 %vm216_vm0, %v7270_v37 }
  0x76   :  { %547 = vmatmul.mubr.f32.gmra.mrb[38].mxu0 %v7278_v38 }
  0x77   :  { %5009 = vmatprep.mubr.msk.f32.mxu0 %vm216_vm0, %v7283_v39 }
  0x7a   :  { %553 = vmatmul.mubr.f32.gmra.mrb[40].mxu0 %v7291_v40 }
  0x7b   :  { %5010 = vmatprep.mubr.msk.f32.mxu0 %vm216_vm0, %v7296_v42 }
  0x7e   :  { %559 = vmatmul.mubr.f32.gmra.mrb[42].mxu0 %v7304_v44 }
  0x7f   :  { %5011 = vmatprep.mubr.msk.f32.mxu0 %vm216_vm0, %v7309_v45 }
  0x82   :  { %565 = vmatmul.mubr.f32.gmra.mrb[44].mxu0 %v7317_v46 }
  0x83   :  { %5012 = vmatprep.mubr.msk.f32.mxu0 %vm216_vm0, %v7322_v47 }
  0x86   :  { %571 = vmatmul.mubr.f32.gmra.mrb[46].mxu0 %v7330_v48 }
  0x87   :  { %5013 = vmatprep.mubr.msk.f32.mxu0 %vm216_vm0, %v7335_v50 }
  0x8a   :  { %577 = vmatmul.mubr.f32.gmra.mrb[48].mxu0 %v7343_v52 }
  0x8b   :  { %5014 = vmatprep.mubr.msk.f32.mxu0 %vm216_vm0, %v7348_v53 }
  0x8e   :  { %583 = vmatmul.mubr.f32.gmra.mrb[50].mxu0 %v7356_v54 }
  0x8f   :  { %5015 = vmatprep.mubr.msk.f32.mxu0 %vm216_vm0, %v7361_v55  ;;  %v5100_v55 = vld [vmem:[%s9509_s1 + $0x2c8] sm:$0xff] }
  0x92   :  { %589 = vmatmul.mubr.f32.gmra.mrb[52].mxu0 %v7369_v56  ;;  %v5093_v56 = vld [vmem:[%s9509_s1 + $0x290] sm:$0xff] }
  0x93   :  { %5016 = vmatprep.mubr.msk.f32.mxu0 %vm216_vm0, %v7374_v58  ;;  %v5091_v58 = vld [vmem:[%s9509_s1 + $0x280] sm:$0xff] }
  0x96   :  { %595 = vmatmul.mubr.f32.gmra.mrb[54].mxu0 %v7382_v60 }
  0x97   :  { %5017 = vmatprep.mubr.msk.f32.mxu0 %vm216_vm0, %v7387_v61 }
  0x9a   :  { %601 = vmatmul.mubr.f32.gmra.mrb[56].mxu0 %v7395_v62  ;;  %v41_v62 = vld [vmem:[%s9510_s0] sm:$0xff] }
  0x9b   :  { %5018 = vmatprep.mubr.msk.f32.mxu0 %vm216_vm0, %v7400_v1  ;;  %v5094_v1 = vld [vmem:[%s9509_s1 + $0x298] sm:$0xff] }
  0x9e   :  { %607 = vmatmul.mubr.f32.gmra.mrb[58].mxu0 %v7408_v12  ;;  %v5087_v12 = vld [vmem:[%s9509_s1 + $0x260] sm:$0xff] }
  0x9f   :  { %5019 = vmatprep.mubr.msk.f32.mxu0 %vm216_vm0, %v7413_v13  ;;  %v7439_v13 = vld [vmem:[%s9510_s0 + $0x218] sm:$0xff] }
  0xa0   :  { %9620 = vst [vmem:[#allocation20_spill] sm:$0xff] %v7439_v13 }
  0xa2   :  { %613 = vmatmul.mubr.f32.gmra.mrb[60].mxu0 %v7421_v29  ;;  %v7447_v29 = vld [vmem:[%s9510_s0 + $0x210] sm:$0xff] }
  0xa3   :  { %5020 = vmatprep.mubr.msk.f32.mxu0 %vm216_vm0, %v7426_v30  ;;  %9621 = vst [vmem:[#allocation21_spill] sm:$0xff] %v7447_v29  ;;  %v7452_v30 = vld [vmem:[%s9510_s0 + $0x228] sm:$0xff] }
  0xa4   :  { %9622 = vst [vmem:[#allocation22_spill] sm:$0xff] %v7452_v30 }
  0xa6   :  { %619 = vmatmul.mubr.f32.gmra.mrb[62].mxu0 %v7434_v32  ;;  %v7460_v32 = vld [vmem:[%s9510_s0 + $0x220] sm:$0xff] }
  0xa7   :  { %5021 = vmatprep.mubr.msk.f32.mxu0 %vm216_vm0, %v7439_v13  ;;  %9623 = vst [vmem:[#allocation23_spill] sm:$0xff] %v7460_v32  ;;  %v7465_v13 = vld [vmem:[%s9510_s0 + $0x238] sm:$0xff] }
  0xa8   :  { %9624 = vst [vmem:[#allocation24_spill] sm:$0xff] %v7465_v13 }
  0xaa   :  { %625 = vmatmul.mubr.f32.gmra.mrb[64].mxu0 %v7447_v29  ;;  %v7473_v29 = vld [vmem:[%s9510_s0 + $0x230] sm:$0xff] }
  0xab   :  { %5022 = vmatprep.mubr.msk.f32.mxu0 %vm216_vm0, %v7452_v30  ;;  %9625 = vst [vmem:[#allocation25_spill] sm:$0xff] %v7473_v29  ;;  %v7478_v30 = vld [vmem:[%s9510_s0 + $0x248] sm:$0xff] }
  0xac   :  { %9626 = vst [vmem:[#allocation26_spill] sm:$0xff] %v7478_v30 }
  0xae   :  { %631 = vmatmul.mubr.f32.gmra.mrb[66].mxu0 %v7460_v32  ;;  %v7486_v32 = vld [vmem:[%s9510_s0 + $0x240] sm:$0xff] }
  0xaf   :  { %5023 = vmatprep.mubr.msk.f32.mxu0 %vm216_vm0, %v7465_v13  ;;  %9627 = vst [vmem:[#allocation27_spill] sm:$0xff] %v7486_v32  ;;  %v7491_v13 = vld [vmem:[%s9510_s0 + $0x258] sm:$0xff] }
  0xb0   :  { %9628 = vst [vmem:[#allocation28_spill] sm:$0xff] %v7491_v13 }
  0xb2   :  { %637 = vmatmul.mubr.f32.gmra.mrb[68].mxu0 %v7473_v29  ;;  %v7499_v29 = vld [vmem:[%s9510_s0 + $0x250] sm:$0xff] }
  0xb3   :  { %5024 = vmatprep.mubr.msk.f32.mxu0 %vm216_vm0, %v7478_v30  ;;  %9629 = vst [vmem:[#allocation29_spill] sm:$0xff] %v7499_v29  ;;  %v7504_v30 = vld [vmem:[%s9510_s0 + $0x268] sm:$0xff] }
  0xb4   :  { %9630 = vst [vmem:[#allocation30_spill] sm:$0xff] %v7504_v30 }
  0xb6   :  { %643 = vmatmul.mubr.f32.gmra.mrb[70].mxu0 %v7486_v32  ;;  %v7512_v32 = vld [vmem:[%s9510_s0 + $0x260] sm:$0xff] }
  0xb7   :  { %5025 = vmatprep.mubr.msk.f32.mxu0 %vm216_vm0, %v7491_v13  ;;  %9631 = vst [vmem:[#allocation31_spill] sm:$0xff] %v7512_v32  ;;  %v7517_v13 = vld [vmem:[%s9510_s0 + $0x278] sm:$0xff] }
  0xb8   :  { %9632 = vst [vmem:[#allocation32_spill] sm:$0xff] %v7517_v13 }
  0xba   :  { %649 = vmatmul.mubr.f32.gmra.mrb[72].mxu0 %v7499_v29  ;;  %v7525_v29 = vld [vmem:[%s9510_s0 + $0x270] sm:$0xff] }
  0xbb   :  { %5026 = vmatprep.mubr.msk.f32.mxu0 %vm216_vm0, %v7504_v30  ;;  %9633 = vst [vmem:[#allocation33_spill] sm:$0xff] %v7525_v29  ;;  %v7530_v30 = vld [vmem:[%s9510_s0 + $0x288] sm:$0xff] }
  0xbc   :  { %9634 = vst [vmem:[#allocation34_spill] sm:$0xff] %v7530_v30 }
  0xbe   :  { %655 = vmatmul.mubr.f32.gmra.mrb[74].mxu0 %v7512_v32  ;;  %v7538_v32 = vld [vmem:[%s9510_s0 + $0x280] sm:$0xff] }
  0xbf   :  { %5027 = vmatprep.mubr.msk.f32.mxu0 %vm216_vm0, %v7517_v13  ;;  %9635 = vst [vmem:[#allocation35_spill] sm:$0xff] %v7538_v32  ;;  %v7543_v13 = vld [vmem:[%s9510_s0 + $0x298] sm:$0xff] }
  0xc0   :  { %9636 = vst [vmem:[#allocation36_spill] sm:$0xff] %v7543_v13 }
  0xc2   :  { %661 = vmatmul.mubr.f32.gmra.mrb[76].mxu0 %v7525_v29  ;;  %v7551_v29 = vld [vmem:[%s9510_s0 + $0x290] sm:$0xff] }
  0xc3   :  { %5028 = vmatprep.mubr.msk.f32.mxu0 %vm216_vm0, %v7530_v30  ;;  %9637 = vst [vmem:[#allocation37_spill] sm:$0xff] %v7551_v29  ;;  %v7556_v30 = vld [vmem:[%s9510_s0 + $0x2a8] sm:$0xff] }
  0xc4   :  { %9638 = vst [vmem:[#allocation38_spill] sm:$0xff] %v7556_v30 }
  0xc6   :  { %667 = vmatmul.mubr.f32.gmra.mrb[78].mxu0 %v7538_v32  ;;  %v7564_v32 = vld [vmem:[%s9510_s0 + $0x2a0] sm:$0xff] }
  0xc7   :  { %5029 = vmatprep.mubr.msk.f32.mxu0 %vm216_vm0, %v7543_v13  ;;  %9639 = vst [vmem:[#allocation39_spill] sm:$0xff] %v7564_v32  ;;  %v7569_v13 = vld [vmem:[%s9510_s0 + $0x2b8] sm:$0xff] }
  0xc8   :  { %9640 = vst [vmem:[#allocation40_spill] sm:$0xff] %v7569_v13 }
  0xca   :  { %673 = vmatmul.mubr.f32.gmra.mrb[80].mxu0 %v7551_v29  ;;  %v7577_v29 = vld [vmem:[%s9510_s0 + $0x2b0] sm:$0xff] }
  0xcb   :  { %5030 = vmatprep.mubr.msk.f32.mxu0 %vm216_vm0, %v7556_v30  ;;  %9641 = vst [vmem:[#allocation41_spill] sm:$0xff] %v7577_v29  ;;  %v7582_v30 = vld [vmem:[%s9510_s0 + $0x2c8] sm:$0xff] }
  0xcc   :  { %9642 = vst [vmem:[#allocation42_spill] sm:$0xff] %v7582_v30 }
  0xce   :  { %679 = vmatmul.mubr.f32.gmra.mrb[82].mxu0 %v7564_v32  ;;  %v7590_v32 = vld [vmem:[%s9510_s0 + $0x2c0] sm:$0xff] }
  0xcf   :  { %5031 = vmatprep.mubr.msk.f32.mxu0 %vm216_vm0, %v7569_v13  ;;  %9643 = vst [vmem:[#allocation43_spill] sm:$0xff] %v7590_v32  ;;  %v7595_v13 = vld [vmem:[%s9510_s0 + $0x2d8] sm:$0xff] }
  0xd0   :  { %9644 = vst [vmem:[#allocation44_spill] sm:$0xff] %v7595_v13 }
  0xd2   :  { %685 = vmatmul.mubr.f32.gmra.mrb[84].mxu0 %v7577_v29  ;;  %v7603_v29 = vld [vmem:[%s9510_s0 + $0x2d0] sm:$0xff] }
  0xd3   :  { %5032 = vmatprep.mubr.msk.f32.mxu0 %vm216_vm0, %v7582_v30  ;;  %9645 = vst [vmem:[#allocation45_spill] sm:$0xff] %v7603_v29  ;;  %v7608_v30 = vld [vmem:[%s9510_s0 + $0x2e8] sm:$0xff] }
  0xd4   :  { %9646 = vst [vmem:[#allocation46_spill] sm:$0xff] %v7608_v30 }
  0xd6   :  { %691 = vmatmul.mubr.f32.gmra.mrb[86].mxu0 %v7590_v32  ;;  %v7616_v32 = vld [vmem:[%s9510_s0 + $0x2e0] sm:$0xff] }
  0xd7   :  { %5033 = vmatprep.mubr.msk.f32.mxu0 %vm216_vm0, %v7595_v13  ;;  %9647 = vst [vmem:[#allocation47_spill] sm:$0xff] %v7616_v32  ;;  %v7621_v13 = vld [vmem:[%s9510_s0 + $0x2f8] sm:$0xff] }
  0xd8   :  { %9648 = vst [vmem:[#allocation48_spill] sm:$0xff] %v7621_v13 }
  0xda   :  { %697 = vmatmul.mubr.f32.gmra.mrb[88].mxu0 %v7603_v29  ;;  %v7629_v29 = vld [vmem:[%s9510_s0 + $0x2f0] sm:$0xff] }
  0xdb   :  { %5034 = vmatprep.mubr.msk.f32.mxu0 %vm216_vm0, %v7608_v30  ;;  %9649 = vst [vmem:[#allocation49_spill] sm:$0xff] %v7629_v29  ;;  %v7634_v30 = vld [vmem:[%s9510_s0 + $0x308] sm:$0xff] }
  0xdc   :  { %9650 = vst [vmem:[#allocation50_spill] sm:$0xff] %v7634_v30 }
  0xde   :  { %703 = vmatmul.mubr.f32.gmra.mrb[90].mxu0 %v7616_v32  ;;  %v7642_v32 = vld [vmem:[%s9510_s0 + $0x300] sm:$0xff] }
  0xdf   :  { %5035 = vmatprep.mubr.msk.f32.mxu0 %vm216_vm0, %v7621_v13  ;;  %9651 = vst [vmem:[#allocation51_spill] sm:$0xff] %v7642_v32  ;;  %v42_v13 = vld [vmem:[%s9510_s0 + $0x8] sm:$0xff] }
  0xe2   :  { %709 = vmatmul.mubr.f32.gmra.mrb[92].mxu0 %v7629_v29  ;;  %v5089_v29 = vld [vmem:[%s9509_s1 + $0x270] sm:$0xff] }
  0xe3   :  { %5036 = vmatprep.mubr.msk.f32.mxu0 %vm216_vm0, %v7634_v30  ;;  %v5092_v30 = vld [vmem:[%s9509_s1 + $0x288] sm:$0xff]  ;;  %v6193_v61 = vpack.c.bf16 %v5089_v29, %v5087_v12  ;;  %v5095_v29 = vld [vmem:[%s9509_s1 + $0x2a0] sm:$0xff] }
  0xe4   :  { %v6195_v60 = vpack.c.bf16 %v5094_v1, %v5092_v30  ;;  %v6197_v1 = vpack.c.bf16 %v5093_v56, %v5091_v58  ;;  %v5097_v30 = vld [vmem:[%s9509_s1 + $0x2b0] sm:$0xff]  ;;  %v5099_v58 = vld [vmem:[%s9509_s1 + $0x2c0] sm:$0xff] }
  0xe6   :  { %715 = vmatmul.mubr.f32.gmra.mrb[94].mxu0 %v7642_v32  ;;  %v5096_v32 = vld [vmem:[%s9509_s1 + $0x2a8] sm:$0xff] }
  0xe7   :  { %5039 = vmatprep.mubr.msk.f32.mxu0 %vm216_vm0, %v42_v13  ;;  %v5098_v13 = vld [vmem:[%s9509_s1 + $0x2b8] sm:$0xff] }
  0xe8   :  { %v6199_v12 = vpack.c.bf16 %v5098_v13, %v5096_v32  ;;  %v5103_v13 = vld [vmem:[%s9509_s1 + $0x2e0] sm:$0xff] }
  0xea   :  { %795 = vmatmul.mubr.f32.vlgmr.msra.gmra.mrb[0].mxu0 %v41_v62  ;;  %v5104_v62 = vld [vmem:[%s9509_s1 + $0x2e8] sm:$0xff] }
  0xeb   :  { %6194 = vmatpush1.bf16.msra.mxu0 %v6193_v61  ;;  %5040 = vmatprep.mubr.msk.f32.mxu0 %vm216_vm0, %v6840_v26  ;;  %v5102_v61 = vld [vmem:[%s9509_s1 + $0x2d8] sm:$0xff]  ;;  %v6201_v26 = vpack.c.bf16 %v5097_v30, %v5095_v29 }
  0xec   :  { %6196 = vmatprep.subr.bf16.mxu0 %v6195_v60  ;;  %v6203_v56 = vpack.c.bf16 %v5102_v61, %v5100_v55  ;;  %v5101_v60 = vld [vmem:[%s9509_s1 + $0x2d0] sm:$0xff]  ;;  %v5110_v29 = vld [vmem:[%s9509_s1 + $0x318] sm:$0xff] }
  0xed   :  { %v6205_v55 = vpack.c.bf16 %v5101_v60, %v5099_v58  ;;  %v5112_v58 = vld [vmem:[%s9509_s1 + $0x328] sm:$0xff]  ;;  %v5114_v60 = vld [vmem:[%s9509_s1 + $0x338] sm:$0xff] }
  0xee   :  { %801 = vmatmul.mubr.f32.gmra.mrb[2].mxu0 %v6926_v0  ;;  %v5106_v0 = vld [vmem:[%s9509_s1 + $0x2f8] sm:$0xff] }
  0xef   :  { %5041 = vmatprep.mubr.msk.f32.mxu0 %vm216_vm0, %v6931_v2  ;;  %6198 = vmatpush1.bf16.msra.mxu0 %v6197_v1  ;;  %v6207_v32 = vpack.c.bf16 %v5106_v0, %v5104_v62  ;;  %v5105_v1 = vld [vmem:[%s9509_s1 + $0x2f0] sm:$0xff]  ;;  %v6215_v0 = vpack.c.bf16 %v5114_v60, %v5112_v58 }
  0xf0   :  { %6200 = vmatprep.subr.bf16.mxu0 %v6199_v12  ;;  %v5108_v12 = vld [vmem:[%s9509_s1 + $0x308] sm:$0xff]  ;;  %v6209_v30 = vpack.c.bf16 %v5105_v1, %v5103_v13  ;;  %v5118_v1 = vld [vmem:[%s9509_s1 + $0x358] sm:$0xff] }
  0xf1   :  { %v6211_v61 = vpack.c.bf16 %v5110_v29, %v5108_v12  ;;  %v5116_v13 = vld [vmem:[%s9509_s1 + $0x348] sm:$0xff] }
  0xf2   :  { %807 = vmatmul.mubr.f32.gmra.mrb[4].mxu0 %v6952_v8  ;;  %v6219_v29 = vpack.c.bf16 %v5118_v1, %v5116_v13  ;;  %v5123_v13 = vld [vmem:[%s9509_s1 + $0x380] sm:$0x3f]  ;;  %v9652_v1 = vld [vmem:[#allocation8_spill] sm:$0xff] }
  0xf3   :  { %5042 = vmatprep.mubr.msk.f32.mxu0 %vm216_vm0, %v6957_v10  ;;  %6202 = vmatpush1.bf16.msra.mxu0 %v6201_v26  ;;  %v5107_v26 = vld [vmem:[%s9509_s1 + $0x300] sm:$0xff] }
  0xf4   :  { %6204 = vmatprep.subr.bf16.mxu0 %v6203_v56  ;;  %v5109_v56 = vld [vmem:[%s9509_s1 + $0x310] sm:$0xff] }
  0xf5   :  { %v6213_v62 = vpack.c.bf16 %v5109_v56, %v5107_v26  ;;  %v5120_v26 = vld [vmem:[%s9509_s1 + $0x368] sm:$0xff]  ;;  %v5122_v56 = vld [vmem:[%s9509_s1 + $0x378] sm:$0xff] }
  0xf6   :  { %813 = vmatmul.mubr.f32.gmra.mrb[6].mxu0 %v6977_v16  ;;  %v6223_v60 = vpack.c.bf16 %v5122_v56, %v5120_v26  ;;  %v9657_v26 = vld [vmem:[#allocation13_spill] sm:$0xff]  ;;  %v9658_v56 = vld [vmem:[#allocation14_spill] sm:$0xff] }
  0xf7   :  { %5043 = vmatprep.mubr.msk.f32.mxu0 %vm216_vm0, %v6982_v18  ;;  %6206 = vmatpush1.bf16.msra.mxu0 %v6205_v55  ;;  %v5111_v55 = vld [vmem:[%s9509_s1 + $0x320] sm:$0xff] }
  0xf8   :  { %6208 = vmatprep.subr.bf16.mxu0 %v6207_v32  ;;  %v5113_v32 = vld [vmem:[%s9509_s1 + $0x330] sm:$0xff] }
  0xf9   :  { %v6217_v12 = vpack.c.bf16 %v5113_v32, %v5111_v55  ;;  %v5124_v32 = vld [vmem:[%s9509_s1 + $0x388] sm:$0x3f] }
  0xfa   :  { %819 = vmatmul.mubr.f32.gmra.mrb[8].mxu0 %v7002_v24 }
  0xfb   :  { %5044 = vmatprep.mubr.msk.f32.mxu0 %vm216_vm0, %v7007_v27  ;;  %6210 = vmatpush1.bf16.msra.mxu0 %v6209_v30  ;;  %v5115_v30 = vld [vmem:[%s9509_s1 + $0x340] sm:$0xff] }
  0xfc   :  { %6212 = vmatprep.subr.bf16.mxu0 %v6211_v61  ;;  %v5117_v61 = vld [vmem:[%s9509_s1 + $0x350] sm:$0xff] }
  0xfd   :  { %v6221_v58 = vpack.c.bf16 %v5117_v61, %v5115_v30  ;;  %v9655_v30 = vld [vmem:[#allocation11_spill] sm:$0xff]  ;;  %v9656_v61 = vld [vmem:[#allocation12_spill] sm:$0xff] }
  0xfe   :  { %825 = vmatmul.mubr.f32.gmra.mrb[10].mxu0 %v7027_v33 }
  0xff   :  { %5045 = vmatprep.mubr.msk.f32.mxu0 %vm216_vm0, %v7032_v35  ;;  %6214 = vmatpush1.bf16.msra.mxu0 %v6213_v62  ;;  %v5119_v62 = vld [vmem:[%s9509_s1 + $0x360] sm:$0xff] }
 0x100   :  { %6216 = vmatprep.subr.bf16.mxu0 %v6215_v0  ;;  %v5121_v0 = vld [vmem:[%s9509_s1 + $0x370] sm:$0xff] }
 0x101   :  { %v6225_v55 = vpack.c.bf16 %v5121_v0, %v5119_v62  ;;  %v9661_v62 = vld [vmem:[#allocation17_spill] sm:$0xff]  ;;  %v9662_v0 = vld [vmem:[#allocation18_spill] sm:$0xff] }
 0x102   :  { %831 = vmatmul.mubr.f32.gmra.mrb[12].mxu0 %v7052_v41 }
 0x103   :  { %5046 = vmatprep.mubr.msk.f32.mxu0 %vm216_vm0, %v7057_v43  ;;  %6218 = vmatpush1.bf16.msra.mxu0 %v6217_v12  ;;  %v9653_v12 = vld [vmem:[#allocation9_spill] sm:$0xff] }
 0x104   :  { %6220 = vmatprep.subr.bf16.mxu0 %v6219_v29  ;;  %v9654_v29 = vld [vmem:[#allocation10_spill] sm:$0xff] }
 0x106   :  { %837 = vmatmul.mubr.f32.gmra.mrb[14].mxu0 %v7077_v49 }
 0x107   :  { %5047 = vmatprep.mubr.msk.f32.mxu0 %vm216_vm0, %v7082_v51  ;;  %6222 = vmatpush1.bf16.msra.mxu0 %v6221_v58  ;;  %v9659_v58 = vld [vmem:[#allocation15_spill] sm:$0xff] }
 0x108   :  { %6224 = vmatprep.subr.bf16.mxu0 %v6223_v60  ;;  %v9660_v60 = vld [vmem:[#allocation16_spill] sm:$0xff] }
 0x10a   :  { %843 = vmatmul.mubr.f32.gmra.mrb[16].mxu0 %v7102_v57 }
 0x10b   :  { %5048 = vmatprep.mubr.msk.f32.mxu0 %vm216_vm0, %v7107_v59  ;;  %6226 = vmatpush1.bf16.msra.mxu0 %v6225_v55  ;;  %v9663_v55 = vld [vmem:[#allocation19_spill] sm:$0xff] }
 0x10c   :  { %5125 = vmatprep.subr.msk.mxu0 %vm361_vm1, %v5124_v32  ;;  %v9664_v32 = vld [vmem:[#allocation20_spill] sm:$0xff] }
 0x10e   :  { %849 = vmatmul.mubr.f32.gmra.mrb[18].mxu0 %v7121_v63 }
 0x10f   :  { %5049 = vmatprep.mubr.msk.f32.mxu0 %vm216_vm0, %v7126_v3  ;;  %5126 = vmatpush1.msk.msra.mxu0 %vm361_vm1, %v5123_v13  ;;  %v9665_v13 = vld [vmem:[#allocation21_spill] sm:$0xff] }
 0x112   :  { %855 = vmatmul.mubr.f32.gmra.mrb[20].mxu0 %v7134_v4 }
 0x113   :  { %5050 = vmatprep.mubr.msk.f32.mxu0 %vm216_vm0, %v7139_v5 }
 0x116   :  { %861 = vmatmul.mubr.f32.gmra.mrb[22].mxu0 %v7147_v6 }
 0x117   :  { %5051 = vmatprep.mubr.msk.f32.mxu0 %vm216_vm0, %v7152_v7 }
 0x11a   :  { %867 = vmatmul.mubr.f32.gmra.mrb[24].mxu0 %v7160_v9 }
 0x11b   :  { %5052 = vmatprep.mubr.msk.f32.mxu0 %vm216_vm0, %v7165_v11 }
 0x11e   :  { %873 = vmatmul.mubr.f32.gmra.mrb[26].mxu0 %v7179_v14 }
 0x11f   :  { %5053 = vmatprep.mubr.msk.f32.mxu0 %vm216_vm0, %v7185_v15 }
 0x122   :  { %879 = vmatmul.mubr.f32.gmra.mrb[28].mxu0 %v7194_v17 }
 0x123   :  { %5054 = vmatprep.mubr.msk.f32.mxu0 %vm216_vm0, %v7199_v19 }
 0x126   :  { %885 = vmatmul.mubr.f32.gmra.mrb[30].mxu0 %v7207_v20 }
 0x127   :  { %5055 = vmatprep.mubr.msk.f32.mxu0 %vm216_vm0, %v7212_v21 }
 0x12a   :  { %891 = vmatmul.mubr.f32.gmra.mrb[32].mxu0 %v7220_v22 }
 0x12b   :  { %5056 = vmatprep.mubr.msk.f32.mxu0 %vm216_vm0, %v7225_v23 }
 0x12e   :  { %897 = vmatmul.mubr.f32.gmra.mrb[34].mxu0 %v7233_v25 }
 0x12f   :  { %5057 = vmatprep.mubr.msk.f32.mxu0 %vm216_vm0, %v7238_v28 }
 0x132   :  { %903 = vmatmul.mubr.f32.gmra.mrb[36].mxu0 %v7252_v31 }
 0x133   :  { %5058 = vmatprep.mubr.msk.f32.mxu0 %vm216_vm0, %v7257_v34 }
 0x136   :  { %909 = vmatmul.mubr.f32.gmra.mrb[38].mxu0 %v7265_v36 }
 0x137   :  { %5059 = vmatprep.mubr.msk.f32.mxu0 %vm216_vm0, %v7270_v37 }
 0x13a   :  { %915 = vmatmul.mubr.f32.gmra.mrb[40].mxu0 %v7278_v38 }
 0x13b   :  { %5060 = vmatprep.mubr.msk.f32.mxu0 %vm216_vm0, %v7283_v39 }
 0x13e   :  { %921 = vmatmul.mubr.f32.gmra.mrb[42].mxu0 %v7291_v40 }
 0x13f   :  { %5061 = vmatprep.mubr.msk.f32.mxu0 %vm216_vm0, %v7296_v42 }
 0x142   :  { %927 = vmatmul.mubr.f32.gmra.mrb[44].mxu0 %v7304_v44 }
 0x143   :  { %5062 = vmatprep.mubr.msk.f32.mxu0 %vm216_vm0, %v7309_v45 }
 0x146   :  { %933 = vmatmul.mubr.f32.gmra.mrb[46].mxu0 %v7317_v46 }
 0x147   :  { %5063 = vmatprep.mubr.msk.f32.mxu0 %vm216_vm0, %v7322_v47 }
 0x14a   :  { %939 = vmatmul.mubr.f32.gmra.mrb[48].mxu0 %v7330_v48 }
 0x14b   :  { %5064 = vmatprep.mubr.msk.f32.mxu0 %vm216_vm0, %v7335_v50 }
 0x14e   :  { %945 = vmatmul.mubr.f32.gmra.mrb[50].mxu0 %v7343_v52 }
 0x14f   :  { %5065 = vmatprep.mubr.msk.f32.mxu0 %vm216_vm0, %v7348_v53 }
 0x152   :  { %951 = vmatmul.mubr.f32.gmra.mrb[52].mxu0 %v7356_v54 }
 0x153   :  { %5066 = vmatprep.mubr.msk.f32.mxu0 %vm216_vm0, %v9652_v1 }
 0x156   :  { %957 = vmatmul.mubr.f32.gmra.mrb[54].mxu0 %v9653_v12 }
 0x157   :  { %5067 = vmatprep.mubr.msk.f32.mxu0 %vm216_vm0, %v9654_v29 }
 0x15a   :  { %963 = vmatmul.mubr.f32.gmra.mrb[56].mxu0 %v9655_v30 }
 0x15b   :  { %5068 = vmatprep.mubr.msk.f32.mxu0 %vm216_vm0, %v9656_v61 }
 0x15e   :  { %969 = vmatmul.mubr.f32.gmra.mrb[58].mxu0 %v9657_v26  ;;  %v9666_v26 = vld [vmem:[#allocation22_spill] sm:$0xff] }
 0x15f   :  { %5069 = vmatprep.mubr.msk.f32.mxu0 %vm216_vm0, %v9658_v56  ;;  %v9667_v56 = vld [vmem:[#allocation23_spill] sm:$0xff] }
 0x162   :  { %975 = vmatmul.mubr.f32.gmra.mrb[60].mxu0 %v9659_v58  ;;  %v9668_v58 = vld [vmem:[#allocation24_spill] sm:$0xff] }
 0x163   :  { %5070 = vmatprep.mubr.msk.f32.mxu0 %vm216_vm0, %v9660_v60  ;;  %v9669_v60 = vld [vmem:[#allocation25_spill] sm:$0xff] }
 0x166   :  { %981 = vmatmul.mubr.f32.gmra.mrb[62].mxu0 %v9661_v62  ;;  %v9670_v62 = vld [vmem:[#allocation26_spill] sm:$0xff] }
 0x167   :  { %5071 = vmatprep.mubr.msk.f32.mxu0 %vm216_vm0, %v9662_v0  ;;  %v9671_v0 = vld [vmem:[#allocation27_spill] sm:$0xff] }
 0x16a   :  { %987 = vmatmul.mubr.f32.gmra.mrb[64].mxu0 %v9663_v55  ;;  %v9672_v55 = vld [vmem:[#allocation28_spill] sm:$0xff] }
 0x16b   :  { %5072 = vmatprep.mubr.msk.f32.mxu0 %vm216_vm0, %v9664_v32  ;;  %v9673_v32 = vld [vmem:[#allocation29_spill] sm:$0xff] }
 0x16e   :  { %993 = vmatmul.mubr.f32.gmra.mrb[66].mxu0 %v9665_v13  ;;  %v9674_v13 = vld [vmem:[#allocation30_spill] sm:$0xff] }
 0x16f   :  { %5073 = vmatprep.mubr.msk.f32.mxu0 %vm216_vm0, %v9666_v26  ;;  %v9675_v26 = vld [vmem:[#allocation31_spill] sm:$0xff] }
 0x172   :  { %999 = vmatmul.mubr.f32.gmra.mrb[68].mxu0 %v9667_v56  ;;  %v9676_v56 = vld [vmem:[#allocation32_spill] sm:$0xff] }
 0x173   :  { %5074 = vmatprep.mubr.msk.f32.mxu0 %vm216_vm0, %v9668_v58  ;;  %v9677_v58 = vld [vmem:[#allocation33_spill] sm:$0xff] }
 0x176   :  { %1005 = vmatmul.mubr.f32.gmra.mrb[70].mxu0 %v9669_v60  ;;  %v9678_v60 = vld [vmem:[#allocation34_spill] sm:$0xff] }
 0x177   :  { %5075 = vmatprep.mubr.msk.f32.mxu0 %vm216_vm0, %v9670_v62  ;;  %v9679_v62 = vld [vmem:[#allocation35_spill] sm:$0xff] }
 0x17a   :  { %1011 = vmatmul.mubr.f32.gmra.mrb[72].mxu0 %v9671_v0  ;;  %v9680_v0 = vld [vmem:[#allocation36_spill] sm:$0xff] }
 0x17b   :  { %5076 = vmatprep.mubr.msk.f32.mxu0 %vm216_vm0, %v9672_v55  ;;  %v9681_v55 = vld [vmem:[#allocation37_spill] sm:$0xff] }
 0x17e   :  { %1017 = vmatmul.mubr.f32.gmra.mrb[74].mxu0 %v9673_v32  ;;  %v9682_v32 = vld [vmem:[#allocation38_spill] sm:$0xff] }
 0x17f   :  { %5077 = vmatprep.mubr.msk.f32.mxu0 %vm216_vm0, %v9674_v13  ;;  %v9683_v13 = vld [vmem:[#allocation39_spill] sm:$0xff] }
 0x182   :  { %1023 = vmatmul.mubr.f32.gmra.mrb[76].mxu0 %v9675_v26  ;;  %v9684_v26 = vld [vmem:[#allocation40_spill] sm:$0xff] }
 0x183   :  { %5078 = vmatprep.mubr.msk.f32.mxu0 %vm216_vm0, %v9676_v56  ;;  %v9685_v56 = vld [vmem:[#allocation41_spill] sm:$0xff] }
 0x186   :  { %1029 = vmatmul.mubr.f32.gmra.mrb[78].mxu0 %v9677_v58  ;;  %v9686_v58 = vld [vmem:[#allocation42_spill] sm:$0xff] }
 0x187   :  { %5079 = vmatprep.mubr.msk.f32.mxu0 %vm216_vm0, %v9678_v60  ;;  %v9687_v60 = vld [vmem:[#allocation43_spill] sm:$0xff] }
 0x18a   :  { %1035 = vmatmul.mubr.f32.gmra.mrb[80].mxu0 %v9679_v62  ;;  %v9688_v62 = vld [vmem:[#allocation44_spill] sm:$0xff] }
 0x18b   :  { %5080 = vmatprep.mubr.msk.f32.mxu0 %vm216_vm0, %v9680_v0  ;;  %v9689_v0 = vld [vmem:[#allocation45_spill] sm:$0xff] }
 0x18e   :  { %1041 = vmatmul.mubr.f32.gmra.mrb[82].mxu0 %v9681_v55  ;;  %v9690_v55 = vld [vmem:[#allocation46_spill] sm:$0xff] }
 0x18f   :  { %5081 = vmatprep.mubr.msk.f32.mxu0 %vm216_vm0, %v9682_v32  ;;  %v9691_v32 = vld [vmem:[#allocation47_spill] sm:$0xff] }
 0x192   :  { %1047 = vmatmul.mubr.f32.gmra.mrb[84].mxu0 %v9683_v13  ;;  %v9692_v13 = vld [vmem:[#allocation48_spill] sm:$0xff] }
 0x193   :  { %5082 = vmatprep.mubr.msk.f32.mxu0 %vm216_vm0, %v9684_v26  ;;  %v9693_v26 = vld [vmem:[#allocation49_spill] sm:$0xff] }
 0x196   :  { %1053 = vmatmul.mubr.f32.gmra.mrb[86].mxu0 %v9685_v56 }
 0x197   :  { %5083 = vmatprep.mubr.msk.f32.mxu0 %vm216_vm0, %v9686_v58 }
 0x19a   :  { %1059 = vmatmul.mubr.f32.gmra.mrb[88].mxu0 %v9687_v60 }
 0x19b   :  { %5084 = vmatprep.mubr.msk.f32.mxu0 %vm216_vm0, %v9688_v62 }
 0x19e   :  { %1065 = vmatmul.mubr.f32.gmra.mrb[90].mxu0 %v9689_v0 }
 0x19f   :  { %5085 = vmatprep.mubr.msk.f32.mxu0 %vm216_vm0, %v9690_v55 }
 0x1a2   :  { %1071 = vmatmul.mubr.f32.gmra.mrb[92].mxu0 %v9691_v32 }
 0x1a3   :  { %5086 = vmatprep.mubr.msk.f32.mxu0 %vm216_vm0, %v9692_v13 }
 0x1a6   :  { %1077 = vmatmul.mubr.f32.gmra.mrb[94].mxu0 %v9693_v26 }
 0x1a7   :  { %5127 = vmatprep.mubr.msk.f32.mxu0 %vm216_vm0, %v6931_v2  ;;  %v6714_v2 = vmov 0.0|0.0  }
 0x1a8   :  { %6227 = vmatprep.subr.bf16.mxu1 %v6714_v2 }
 0x1aa   :  { %1433 = vmatmul.mubr.f32.vlgmr.msra.gmra.mrb[0].mxu0 %v6952_v8  ;;  %v2358_v8 = vld [vmem:[%s9511_s3] sm:$0xff] }
 0x1ab   :  { %5128 = vmatprep.mubr.msk.f32.mxu0 %vm216_vm0, %v6957_v10  ;;  %v2359_v10 = vld [vmem:[%s9511_s3 + $0x8] sm:$0xff] }
 0x1ae   :  { %1439 = vmatmul.mubr.f32.gmra.mrb[2].mxu0 %v6977_v16  ;;  %v2360_v16 = vld [vmem:[%s9511_s3 + $0x10] sm:$0xff] }
 0x1af   :  { %5129 = vmatprep.mubr.msk.f32.mxu0 %vm216_vm0, %v6982_v18  ;;  %v6228_v18 = vpack.c.bf16 %v2359_v10, %v2358_v8  ;;  %v9712_v8 = vld [vmem:[#allocation31_spill] sm:$0xff]  ;;  %v9713_v10 = vld [vmem:[#allocation32_spill] sm:$0xff] }
 0x1b1   :  { %6229 = vmatpush1.bf16.msra.mxu1 %v6228_v18  ;;  %v9715_v18 = vld [vmem:[#allocation34_spill] sm:$0xff] }
 0x1b2   :  { %1445 = vmatmul.mubr.f32.gmra.mrb[4].mxu0 %v7002_v24  ;;  %v2361_v24 = vld [vmem:[%s9511_s3 + $0x18] sm:$0xff]  ;;  %6230 = vmatprep.subr.bf16.mxu1 %v6714_v2 }
 0x1b3   :  { %5130 = vmatprep.mubr.msk.f32.mxu0 %vm216_vm0, %v7007_v27  ;;  %v6231_v27 = vpack.c.bf16 %v2361_v24, %v2360_v16  ;;  %v9714_v16 = vld [vmem:[#allocation33_spill] sm:$0xff]  ;;  %v9716_v24 = vld [vmem:[#allocation35_spill] sm:$0xff] }
 0x1b5   :  { %6232 = vmatpush1.bf16.msra.mxu1 %v6231_v27  ;;  %v9717_v27 = vld [vmem:[#allocation36_spill] sm:$0xff] }
 0x1b6   :  { %1451 = vmatmul.mubr.f32.gmra.mrb[6].mxu0 %v7027_v33  ;;  %v2362_v33 = vld [vmem:[%s9511_s3 + $0x20] sm:$0xff]  ;;  %6233 = vmatprep.subr.bf16.mxu1 %v6714_v2 }
 0x1b7   :  { %5131 = vmatprep.mubr.msk.f32.mxu0 %vm216_vm0, %v7032_v35  ;;  %v2363_v35 = vld [vmem:[%s9511_s3 + $0x28] sm:$0xff] }
 0x1ba   :  { %1457 = vmatmul.mubr.f32.gmra.mrb[8].mxu0 %v7052_v41  ;;  %v6234_v41 = vpack.c.bf16 %v2363_v35, %v2362_v33  ;;  %v9718_v33 = vld [vmem:[#allocation37_spill] sm:$0xff]  ;;  %v9719_v35 = vld [vmem:[#allocation38_spill] sm:$0xff] }
 0x1bb   :  { %5132 = vmatprep.mubr.msk.f32.mxu0 %vm216_vm0, %v7057_v43  ;;  %v2364_v43 = vld [vmem:[%s9511_s3 + $0x30] sm:$0xff] }
 0x1bc   :  { %6235 = vmatpush1.bf16.msra.mxu1 %v6234_v41  ;;  %v9720_v41 = vld [vmem:[#allocation39_spill] sm:$0xff] }
 0x1bd   :  { %6236 = vmatprep.subr.bf16.mxu1 %v6714_v2 }
 0x1be   :  { %1463 = vmatmul.mubr.f32.gmra.mrb[10].mxu0 %v7077_v49  ;;  %v2365_v49 = vld [vmem:[%s9511_s3 + $0x38] sm:$0xff] }
 0x1bf   :  { %5133 = vmatprep.mubr.msk.f32.mxu0 %vm216_vm0, %v7082_v51  ;;  %v6237_v51 = vpack.c.bf16 %v2365_v49, %v2364_v43  ;;  %v9721_v43 = vld [vmem:[#allocation40_spill] sm:$0xff] }
 0x1c1   :  { %6238 = vmatpush1.bf16.msra.mxu1 %v6237_v51 }
 0x1c2   :  { %1469 = vmatmul.mubr.f32.gmra.mrb[12].mxu0 %v7102_v57  ;;  %v2366_v57 = vld [vmem:[%s9511_s3 + $0x40] sm:$0xff]  ;;  %6239 = vmatprep.subr.bf16.mxu1 %v6714_v2 }
 0x1c3   :  { %5134 = vmatprep.mubr.msk.f32.mxu0 %vm216_vm0, %v7107_v59  ;;  %v2367_v59 = vld [vmem:[%s9511_s3 + $0x48] sm:$0xff] }
 0x1c6   :  { %1475 = vmatmul.mubr.f32.gmra.mrb[14].mxu0 %v7121_v63  ;;  %v6240_v63 = vpack.c.bf16 %v2367_v59, %v2366_v57 }
 0x1c7   :  { %5135 = vmatprep.mubr.msk.f32.mxu0 %vm216_vm0, %v7126_v3  ;;  %v2368_v3 = vld [vmem:[%s9511_s3 + $0x50] sm:$0xff] }
 0x1c8   :  { %6241 = vmatpush1.bf16.msra.mxu1 %v6240_v63 }
 0x1c9   :  { %6242 = vmatprep.subr.bf16.mxu1 %v6714_v2 }
 0x1ca   :  { %1481 = vmatmul.mubr.f32.gmra.mrb[16].mxu0 %v7134_v4  ;;  %v2369_v4 = vld [vmem:[%s9511_s3 + $0x58] sm:$0xff] }
 0x1cb   :  { %5136 = vmatprep.mubr.msk.f32.mxu0 %vm216_vm0, %v7139_v5  ;;  %v6243_v5 = vpack.c.bf16 %v2369_v4, %v2368_v3 }
 0x1cd   :  { %6244 = vmatpush1.bf16.msra.mxu1 %v6243_v5 }
 0x1ce   :  { %1487 = vmatmul.mubr.f32.gmra.mrb[18].mxu0 %v7147_v6  ;;  %6245 = vmatprep.subr.bf16.mxu1 %v6714_v2  ;;  %v2370_v6 = vld [vmem:[%s9511_s3 + $0x60] sm:$0xff] }
 0x1cf   :  { %5137 = vmatprep.mubr.msk.f32.mxu0 %vm216_vm0, %v7152_v7  ;;  %v2371_v7 = vld [vmem:[%s9511_s3 + $0x68] sm:$0xff] }
 0x1d2   :  { %1493 = vmatmul.mubr.f32.gmra.mrb[20].mxu0 %v7160_v9  ;;  %v6246_v9 = vpack.c.bf16 %v2371_v7, %v2370_v6 }
 0x1d3   :  { %5138 = vmatprep.mubr.msk.f32.mxu0 %vm216_vm0, %v7165_v11  ;;  %v2372_v11 = vld [vmem:[%s9511_s3 + $0x70] sm:$0xff] }
 0x1d4   :  { %6247 = vmatpush1.bf16.msra.mxu1 %v6246_v9 }
 0x1d5   :  { %6248 = vmatprep.subr.bf16.mxu1 %v6714_v2 }
 0x1d6   :  { %1499 = vmatmul.mubr.f32.gmra.mrb[22].mxu0 %v7179_v14  ;;  %v2373_v14 = vld [vmem:[%s9511_s3 + $0x78] sm:$0xff] }
 0x1d7   :  { %5139 = vmatprep.mubr.msk.f32.mxu0 %vm216_vm0, %v7185_v15  ;;  %v6249_v15 = vpack.c.bf16 %v2373_v14, %v2372_v11 }
 0x1d9   :  { %6250 = vmatpush1.bf16.msra.mxu1 %v6249_v15 }
 0x1da   :  { %1505 = vmatmul.mubr.f32.gmra.mrb[24].mxu0 %v7194_v17  ;;  %6251 = vmatprep.subr.bf16.mxu1 %v6714_v2  ;;  %v2374_v17 = vld [vmem:[%s9511_s3 + $0x80] sm:$0xff] }
 0x1db   :  { %5140 = vmatprep.mubr.msk.f32.mxu0 %vm216_vm0, %v7199_v19  ;;  %v2375_v19 = vld [vmem:[%s9511_s3 + $0x88] sm:$0xff] }
 0x1de   :  { %1511 = vmatmul.mubr.f32.gmra.mrb[26].mxu0 %v7207_v20  ;;  %v6252_v20 = vpack.c.bf16 %v2375_v19, %v2374_v17 }
 0x1df   :  { %5141 = vmatprep.mubr.msk.f32.mxu0 %vm216_vm0, %v7212_v21  ;;  %v2376_v21 = vld [vmem:[%s9511_s3 + $0x90] sm:$0xff] }
 0x1e0   :  { %6253 = vmatpush1.bf16.msra.mxu1 %v6252_v20 }
 0x1e1   :  { %6254 = vmatprep.subr.bf16.mxu1 %v6714_v2 }
 0x1e2   :  { %1517 = vmatmul.mubr.f32.gmra.mrb[28].mxu0 %v7220_v22  ;;  %v2377_v22 = vld [vmem:[%s9511_s3 + $0x98] sm:$0xff] }
 0x1e3   :  { %5142 = vmatprep.mubr.msk.f32.mxu0 %vm216_vm0, %v7225_v23  ;;  %v6255_v23 = vpack.c.bf16 %v2377_v22, %v2376_v21 }
 0x1e5   :  { %6256 = vmatpush1.bf16.msra.mxu1 %v6255_v23 }
 0x1e6   :  { %1523 = vmatmul.mubr.f32.gmra.mrb[30].mxu0 %v7233_v25  ;;  %6257 = vmatprep.subr.bf16.mxu1 %v6714_v2  ;;  %v2378_v25 = vld [vmem:[%s9511_s3 + $0xa0] sm:$0xff] }
 0x1e7   :  { %5143 = vmatprep.mubr.msk.f32.mxu0 %vm216_vm0, %v7238_v28  ;;  %v2379_v28 = vld [vmem:[%s9511_s3 + $0xa8] sm:$0xff] }
 0x1ea   :  { %1529 = vmatmul.mubr.f32.gmra.mrb[32].mxu0 %v7252_v31  ;;  %v6258_v31 = vpack.c.bf16 %v2379_v28, %v2378_v25 }
 0x1eb   :  { %5144 = vmatprep.mubr.msk.f32.mxu0 %vm216_vm0, %v7257_v34  ;;  %v2380_v34 = vld [vmem:[%s9511_s3 + $0xb0] sm:$0xff] }
 0x1ec   :  { %6259 = vmatpush1.bf16.msra.mxu1 %v6258_v31 }
 0x1ed   :  { %6260 = vmatprep.subr.bf16.mxu1 %v6714_v2 }
 0x1ee   :  { %1535 = vmatmul.mubr.f32.gmra.mrb[34].mxu0 %v7265_v36  ;;  %v2381_v36 = vld [vmem:[%s9511_s3 + $0xb8] sm:$0xff] }
 0x1ef   :  { %5145 = vmatprep.mubr.msk.f32.mxu0 %vm216_vm0, %v7270_v37  ;;  %v6261_v37 = vpack.c.bf16 %v2381_v36, %v2380_v34 }
 0x1f1   :  { %6262 = vmatpush1.bf16.msra.mxu1 %v6261_v37 }
 0x1f2   :  { %1541 = vmatmul.mubr.f32.gmra.mrb[36].mxu0 %v7278_v38  ;;  %v9694_v38 = vld [vmem:[#allocation13_spill] sm:$0xff]  ;;  %6263 = vmatprep.subr.bf16.mxu1 %v6714_v2 }
 0x1f3   :  { %5146 = vmatprep.mubr.msk.f32.mxu0 %vm216_vm0, %v7283_v39  ;;  %v9695_v39 = vld [vmem:[#allocation14_spill] sm:$0xff] }
 0x1f6   :  { %1547 = vmatmul.mubr.f32.gmra.mrb[38].mxu0 %v7291_v40  ;;  %v9696_v40 = vld [vmem:[#allocation15_spill] sm:$0xff] }
 0x1f7   :  { %5147 = vmatprep.mubr.msk.f32.mxu0 %vm216_vm0, %v7296_v42  ;;  %v9697_v42 = vld [vmem:[#allocation16_spill] sm:$0xff] }
 0x1fa   :  { %1553 = vmatmul.mubr.f32.gmra.mrb[40].mxu0 %v7304_v44  ;;  %v9698_v44 = vld [vmem:[#allocation17_spill] sm:$0xff] }
 0x1fb   :  { %5148 = vmatprep.mubr.msk.f32.mxu0 %vm216_vm0, %v7309_v45  ;;  %v9699_v45 = vld [vmem:[#allocation18_spill] sm:$0xff] }
 0x1fe   :  { %1559 = vmatmul.mubr.f32.gmra.mrb[42].mxu0 %v7317_v46  ;;  %v9700_v46 = vld [vmem:[#allocation19_spill] sm:$0xff] }
 0x1ff   :  { %5149 = vmatprep.mubr.msk.f32.mxu0 %vm216_vm0, %v7322_v47  ;;  %v9701_v47 = vld [vmem:[#allocation20_spill] sm:$0xff] }
 0x202   :  { %1565 = vmatmul.mubr.f32.gmra.mrb[44].mxu0 %v7330_v48  ;;  %v9702_v48 = vld [vmem:[#allocation21_spill] sm:$0xff] }
 0x203   :  { %5150 = vmatprep.mubr.msk.f32.mxu0 %vm216_vm0, %v7335_v50  ;;  %v9703_v50 = vld [vmem:[#allocation22_spill] sm:$0xff] }
 0x206   :  { %1571 = vmatmul.mubr.f32.gmra.mrb[46].mxu0 %v7343_v52  ;;  %v9704_v52 = vld [vmem:[#allocation23_spill] sm:$0xff] }
 0x207   :  { %5151 = vmatprep.mubr.msk.f32.mxu0 %vm216_vm0, %v7348_v53  ;;  %v9705_v53 = vld [vmem:[#allocation24_spill] sm:$0xff] }
 0x20a   :  { %1577 = vmatmul.mubr.f32.gmra.mrb[48].mxu0 %v7356_v54  ;;  %v9706_v54 = vld [vmem:[#allocation25_spill] sm:$0xff] }
 0x20b   :  { %5152 = vmatprep.mubr.msk.f32.mxu0 %vm216_vm0, %v9652_v1  ;;  %v9707_v1 = vld [vmem:[#allocation26_spill] sm:$0xff] }
 0x20e   :  { %1583 = vmatmul.mubr.f32.gmra.mrb[50].mxu0 %v9653_v12  ;;  %v9708_v12 = vld [vmem:[#allocation27_spill] sm:$0xff] }
 0x20f   :  { %5153 = vmatprep.mubr.msk.f32.mxu0 %vm216_vm0, %v9654_v29  ;;  %v9709_v29 = vld [vmem:[#allocation28_spill] sm:$0xff] }
 0x212   :  { %1589 = vmatmul.mubr.f32.gmra.mrb[52].mxu0 %v9655_v30  ;;  %v9710_v30 = vld [vmem:[#allocation29_spill] sm:$0xff] }
 0x213   :  { %5154 = vmatprep.mubr.msk.f32.mxu0 %vm216_vm0, %v9656_v61  ;;  %v9711_v61 = vld [vmem:[#allocation30_spill] sm:$0xff] }
 0x216   :  { %1595 = vmatmul.mubr.f32.gmra.mrb[54].mxu0 %v9694_v38 }
 0x217   :  { %5155 = vmatprep.mubr.msk.f32.mxu0 %vm216_vm0, %v9695_v39 }
 0x21a   :  { %1601 = vmatmul.mubr.f32.gmra.mrb[56].mxu0 %v9696_v40 }
 0x21b   :  { %5156 = vmatprep.mubr.msk.f32.mxu0 %vm216_vm0, %v9697_v42 }
 0x21e   :  { %1607 = vmatmul.mubr.f32.gmra.mrb[58].mxu0 %v9698_v44 }
 0x21f   :  { %5157 = vmatprep.mubr.msk.f32.mxu0 %vm216_vm0, %v9699_v45 }
 0x222   :  { %1613 = vmatmul.mubr.f32.gmra.mrb[60].mxu0 %v9700_v46 }
 0x223   :  { %5158 = vmatprep.mubr.msk.f32.mxu0 %vm216_vm0, %v9701_v47 }
 0x226   :  { %1619 = vmatmul.mubr.f32.gmra.mrb[62].mxu0 %v9702_v48 }
 0x227   :  { %5159 = vmatprep.mubr.msk.f32.mxu0 %vm216_vm0, %v9703_v50 }
 0x22a   :  { %1625 = vmatmul.mubr.f32.gmra.mrb[64].mxu0 %v9704_v52 }
 0x22b   :  { %5160 = vmatprep.mubr.msk.f32.mxu0 %vm216_vm0, %v9705_v53 }
 0x22e   :  { %1631 = vmatmul.mubr.f32.gmra.mrb[66].mxu0 %v9706_v54 }
 0x22f   :  { %5161 = vmatprep.mubr.msk.f32.mxu0 %vm216_vm0, %v9707_v1 }
 0x232   :  { %1637 = vmatmul.mubr.f32.gmra.mrb[68].mxu0 %v9708_v12 }
 0x233   :  { %5162 = vmatprep.mubr.msk.f32.mxu0 %vm216_vm0, %v9709_v29 }
 0x236   :  { %1643 = vmatmul.mubr.f32.gmra.mrb[70].mxu0 %v9710_v30  ;;  %v5199_v30 = vld [vmem:[%s9511_s3 + $0xc0] sm:$0xff] }
 0x237   :  { %5163 = vmatprep.mubr.msk.f32.mxu0 %vm216_vm0, %v9711_v61  ;;  %v5200_v61 = vld [vmem:[%s9511_s3 + $0xc8] sm:$0xff] }
 0x23a   :  { %1649 = vmatmul.mubr.f32.gmra.mrb[72].mxu0 %v9712_v8 }
 0x23b   :  { %5164 = vmatprep.mubr.msk.f32.mxu0 %vm216_vm0, %v9713_v10 }
 0x23e   :  { %1655 = vmatmul.mubr.f32.gmra.mrb[74].mxu0 %v9714_v16 }
 0x23f   :  { %5165 = vmatprep.mubr.msk.f32.mxu0 %vm216_vm0, %v9715_v18 }
 0x242   :  { %1661 = vmatmul.mubr.f32.gmra.mrb[76].mxu0 %v9716_v24 }
 0x243   :  { %5166 = vmatprep.mubr.msk.f32.mxu0 %vm216_vm0, %v9717_v27 }
 0x246   :  { %1667 = vmatmul.mubr.f32.gmra.mrb[78].mxu0 %v9718_v33 }
 0x247   :  { %5167 = vmatprep.mubr.msk.f32.mxu0 %vm216_vm0, %v9719_v35 }
 0x24a   :  { %1673 = vmatmul.mubr.f32.gmra.mrb[80].mxu0 %v9720_v41 }
 0x24b   :  { %5168 = vmatprep.mubr.msk.f32.mxu0 %vm216_vm0, %v9721_v43  ;;  %v6264_v43 = vpack.c.bf16 %v5200_v61, %v5199_v30 }
 0x24e   :  { %1679 = vmatmul.mubr.f32.gmra.mrb[82].mxu0 %v9685_v56  ;;  %v9722_v56 = vld [vmem:[#allocation50_spill] sm:$0xff] }
 0x24f   :  { %5169 = vmatprep.mubr.msk.f32.mxu0 %vm216_vm0, %v9686_v58  ;;  %v1178_v58 = vld [vmem:[%s9510_s0 + $0x318] sm:$0xff] }
 0x252   :  { %1685 = vmatmul.mubr.f32.gmra.mrb[84].mxu0 %v9687_v60  ;;  %v9723_v60 = vld [vmem:[#allocation51_spill] sm:$0xff] }
 0x253   :  { %5170 = vmatprep.mubr.msk.f32.mxu0 %vm216_vm0, %v9688_v62  ;;  %v1177_v62 = vld [vmem:[%s9510_s0 + $0x310] sm:$0xff] }
 0x256   :  { %1691 = vmatmul.mubr.f32.gmra.mrb[86].mxu0 %v9689_v0  ;;  %v1819_v0 = vlaneseq }
 0x257   :  { %5171 = vmatprep.mubr.msk.f32.mxu0 %vm216_vm0, %v9690_v55 }
 0x258   :  { %v1820_v55 = vshrl.u32 %v1819_v0, 7 }
 0x25a   :  { %1697 = vmatmul.mubr.f32.gmra.mrb[88].mxu0 %v9691_v32  ;;  %v1821_v32 = vsub.s32 0, %v1820_v55 }
 0x25b   :  { %5172 = vmatprep.mubr.msk.f32.mxu0 %vm216_vm0, %v9692_v13  ;;  %v1825_v13 = vsub.s32 1, %v1820_v55 }
 0x25e   :  { %1703 = vmatmul.mubr.f32.gmra.mrb[90].mxu0 %v9693_v26  ;;  %v1817_v26 = vld [vmem:[%s9512_s2] sm:$0x3] }
 0x25f   :  { %5173 = vmatprep.mubr.msk.f32.mxu0 %vm216_vm0, %v9722_v56  ;;  %v8139_v49 = vrot.slane %v1817_v26, %v1821_v32  ;;  %v8141_v51 = vrot.slane %v1817_v26, %v1825_v13 }
 0x262   :  { %1709 = vmatmul.mubr.f32.gmra.mrb[92].mxu0 %v9723_v60  ;;  %v5201_v60 = vld [vmem:[%s9511_s3 + $0xd0] sm:$0xff] }
 0x263   :  { %5174 = vmatprep.mubr.msk.f32.mxu0 %vm216_vm0, %v1178_v58 }
 0x266   :  { %1715 = vmatmul.mubr.f32.gmra.mrb[94].mxu0 %v1177_v62  ;;  %v5202_v62 = vld [vmem:[%s9511_s3 + $0xd8] sm:$0xff] }
 0x27d   :  { %v1434_v57 = vpop.f32.mrb[0].mxu0 }
 0x27e   :  { %v1829_v59 = vadd.f32 %v8139_v49, %v1434_v57  ;;  %v1436_v63 = vpop.f32.mrb[1].mxu0  ;;  %v6267_v57 = vpack.c.bf16 %v5202_v62, %v5201_v60 }
 0x27f   :  { %v1830_v3 = vadd.f32 %v8141_v51, %v1436_v63  ;;  %v5203_v63 = vld [vmem:[%s9511_s3 + $0xe0] sm:$0xff] }
 0x280   :  { %v1925_v4 = vmax.f32 %v1829_v59, 0.0 }
 0x281   :  { %v1926_v5 = vmax.f32 %v1830_v3, 0.0  ;;  %v1440_v6 = vpop.f32.mrb[2].mxu0  ;;  %v5204_v3 = vld [vmem:[%s9511_s3 + $0xe8] sm:$0xff] }
 0x282   :  { %v1831_v7 = vadd.f32 %v8139_v49, %v1440_v6  ;;  %v1442_v9 = vpop.f32.mrb[3].mxu0 }
 0x283   :  { %2023 = vst.msk [vmem:[#allocation2 + $0x8] sm:$0xff] %vm2022_vm2, %v1926_v5  ;;  %v1832_v11 = vadd.f32 %v8141_v51, %v1442_v9 }
 0x284   :  { %v1927_v14 = vmax.f32 %v1831_v7, 0.0 }
 0x285   :  { %v1928_v15 = vmax.f32 %v1832_v11, 0.0  ;;  %v1446_v17 = vpop.f32.mrb[4].mxu0 }
 0x286   :  { %v1833_v19 = vadd.f32 %v8139_v49, %v1446_v17  ;;  %v1448_v20 = vpop.f32.mrb[5].mxu0  ;;  %v2122_v21 = vmax.f32 %v1925_v4, %v1927_v14 }
 0x287   :  { %2025 = vst.msk [vmem:[#allocation2 + $0x18] sm:$0xff] %vm2022_vm2, %v1928_v15  ;;  %v1834_v22 = vadd.f32 %v8141_v51, %v1448_v20 }
 0x288   :  { %v1929_v23 = vmax.f32 %v1833_v19, 0.0  ;;  %2124 = vst [vmem:[#allocation3] sm:$0xff] %v2122_v21  ;;  %v6270_v19 = vpack.c.bf16 %v5204_v3, %v5203_v63  ;;  %v5211_v63 = vld [vmem:[%s9511_s3 + $0x120] sm:$0xff]  ;;  %v5212_v3 = vld [vmem:[%s9511_s3 + $0x128] sm:$0xff] }
 0x289   :  { %v1930_v25 = vmax.f32 %v1834_v22, 0.0  ;;  %v1452_v28 = vpop.f32.mrb[6].mxu0  ;;  %v5205_v22 = vld [vmem:[%s9511_s3 + $0xf0] sm:$0xff] }
 0x28a   :  { %v1835_v31 = vadd.f32 %v8139_v49, %v1452_v28  ;;  %v1454_v34 = vpop.f32.mrb[7].mxu0  ;;  %v2119_v40 = vld [vmem:[#allocation2 + $0x8] sm:$0xff] }
 0x28b   :  { %2027 = vst.msk [vmem:[#allocation2 + $0x28] sm:$0xff] %vm2022_vm2, %v1930_v25  ;;  %v1836_v36 = vadd.f32 %v8141_v51, %v1454_v34 }
 0x28c   :  { %v1931_v37 = vmax.f32 %v1835_v31, 0.0 }
 0x28d   :  { %v1932_v38 = vmax.f32 %v1836_v36, 0.0  ;;  %v1458_v39 = vpop.f32.mrb[8].mxu0 }
 0x28e   :  { %v2121_v42 = vld [vmem:[#allocation2 + $0x18] sm:$0xff]  ;;  %v1837_v44 = vadd.f32 %v8139_v49, %v1458_v39  ;;  %v1460_v45 = vpop.f32.mrb[9].mxu0  ;;  %v8155_v46 = vmax.f32 %v1929_v23, %v1931_v37  ;;  %v5207_v39 = vld [vmem:[%s9511_s3 + $0x100] sm:$0xff] }
 0x28f   :  { %2029 = vst.msk [vmem:[#allocation2 + $0x38] sm:$0xff] %vm2022_vm2, %v1932_v38  ;;  %v1838_v47 = vadd.f32 %v8141_v51, %v1460_v45  ;;  %v2123_v48 = vmax.f32 %v2119_v40, %v2121_v42  ;;  %v5206_v23 = vld [vmem:[%s9511_s3 + $0xf8] sm:$0xff]  ;;  %v5208_v40 = vld [vmem:[%s9511_s3 + $0x108] sm:$0xff] }
 0x290   :  { %v1933_v50 = vmax.f32 %v1837_v44, 0.0  ;;  %2132 = vst [vmem:[#allocation3 + $0x10] sm:$0xff] %v8155_v46  ;;  %v6273_v37 = vpack.c.bf16 %v5206_v23, %v5205_v22 }
 0x291   :  { %v1934_v52 = vmax.f32 %v1838_v47, 0.0  ;;  %v1464_v53 = vpop.f32.mrb[10].mxu0  ;;  %2125 = vst.msk [vmem:[#allocation3 + $0x8] sm:$0xff] %vm2022_vm2, %v2123_v48 }
 0x292   :  { %v1839_v54 = vadd.f32 %v8139_v49, %v1464_v53  ;;  %v1466_v1 = vpop.f32.mrb[11].mxu0  ;;  %v2127_v16 = vld [vmem:[#allocation2 + $0x28] sm:$0xff] }
 0x293   :  { %2031 = vst.msk [vmem:[#allocation2 + $0x48] sm:$0xff] %vm2022_vm2, %v1934_v52  ;;  %v1840_v12 = vadd.f32 %v8141_v51, %v1466_v1 }
 0x294   :  { %v1935_v29 = vmax.f32 %v1839_v54, 0.0  ;;  %v6276_v54 = vpack.c.bf16 %v5208_v40, %v5207_v39 }
 0x295   :  { %v1936_v8 = vmax.f32 %v1840_v12, 0.0  ;;  %v1470_v10 = vpop.f32.mrb[12].mxu0 }
 0x296   :  { %v2129_v18 = vld [vmem:[#allocation2 + $0x38] sm:$0xff]  ;;  %v1841_v24 = vadd.f32 %v8139_v49, %v1470_v10  ;;  %v1472_v27 = vpop.f32.mrb[13].mxu0  ;;  %v8171_v33 = vmax.f32 %v1933_v50, %v1935_v29  ;;  %v5209_v10 = vld [vmem:[%s9511_s3 + $0x110] sm:$0xff] }
 0x297   :  { %v2131_v35 = vmax.f32 %v2127_v16, %v2129_v18  ;;  %2033 = vst.msk [vmem:[#allocation2 + $0x58] sm:$0xff] %vm2022_vm2, %v1936_v8  ;;  %v1842_v41 = vadd.f32 %v8141_v51, %v1472_v27  ;;  %v5210_v16 = vld [vmem:[%s9511_s3 + $0x118] sm:$0xff] }
 0x298   :  { %v1937_v56 = vmax.f32 %v1841_v24, 0.0  ;;  %v2311_v58 = vld [vmem:[#allocation3 + $0x8] sm:$0xff]  ;;  %2140 = vst [vmem:[#allocation3 + $0x20] sm:$0xff] %v8171_v33  ;;  %v6279_v24 = vpack.c.bf16 %v5210_v16, %v5209_v10 }
 0x299   :  { %2133 = vst.msk [vmem:[#allocation3 + $0x18] sm:$0xff] %vm2022_vm2, %v2131_v35  ;;  %v1938_v0 = vmax.f32 %v1842_v41, 0.0  ;;  %v1476_v55 = vpop.f32.mrb[14].mxu0  ;;  %5175 = vmatprep.mubr.msk.f32.mxu1 %vm2022_vm2, %v2311_v58  ;;  %v5216_v10 = vld [vmem:[%s9511_s3 + $0x148] sm:$0xff] }
 0x29a   :  { %v1843_v32 = vadd.f32 %v8139_v49, %v1476_v55  ;;  %v1478_v26 = vpop.f32.mrb[15].mxu0  ;;  %2519 = vmatmul.mubr.f32.vlgmr.msra.gmra.mrb[0].mxu1 %v2122_v21  ;;  %v2135_v6 = vld [vmem:[#allocation2 + $0x48] sm:$0xff] }
 0x29b   :  { %2035 = vst.msk [vmem:[#allocation2 + $0x68] sm:$0xff] %vm2022_vm2, %v1938_v0  ;;  %v1844_v13 = vadd.f32 %v8141_v51, %v1478_v26  ;;  %6265 = vmatpush1.bf16.msra.mxu1 %v6264_v43 }
 0x29c   :  { %v1939_v59 = vmax.f32 %v1843_v32, 0.0  ;;  %6266 = vmatprep.subr.bf16.mxu1 %v6714_v2 }
 0x29d   :  { %v1940_v4 = vmax.f32 %v1844_v13, 0.0  ;;  %v1482_v5 = vpop.f32.mrb[16].mxu0 }
 0x29e   :  { %v2137_v7 = vld [vmem:[#allocation2 + $0x58] sm:$0xff]  ;;  %v1845_v9 = vadd.f32 %v8139_v49, %v1482_v5  ;;  %v1484_v11 = vpop.f32.mrb[17].mxu0  ;;  %v8195_v14 = vmax.f32 %v1937_v56, %v1939_v59  ;;  %v6282_v5 = vpack.c.bf16 %v5212_v3, %v5211_v63 }
 0x29f   :  { %v2139_v15 = vmax.f32 %v2135_v6, %v2137_v7  ;;  %2037 = vst.msk [vmem:[#allocation2 + $0x78] sm:$0xff] %vm2022_vm2, %v1940_v4  ;;  %v1846_v17 = vadd.f32 %v8141_v51, %v1484_v11  ;;  %6268 = vmatpush1.bf16.msra.mxu1 %v6267_v57 }
 0x2a0   :  { %v1941_v20 = vmax.f32 %v1845_v9, 0.0  ;;  %v2313_v21 = vld [vmem:[#allocation3 + $0x18] sm:$0xff]  ;;  %2148 = vst [vmem:[#allocation3 + $0x30] sm:$0xff] %v8195_v14  ;;  %6269 = vmatprep.subr.bf16.mxu1 %v6714_v2 }
 0x2a1   :  { %2141 = vst.msk [vmem:[#allocation3 + $0x28] sm:$0xff] %vm2022_vm2, %v2139_v15  ;;  %v1942_v25 = vmax.f32 %v1846_v17, 0.0  ;;  %v1488_v28 = vpop.f32.mrb[18].mxu0  ;;  %5176 = vmatprep.mubr.msk.f32.mxu1 %vm2022_vm2, %v2313_v21 }
 0x2a2   :  { %v1847_v31 = vadd.f32 %v8139_v49, %v1488_v28  ;;  %v1490_v34 = vpop.f32.mrb[19].mxu0  ;;  %2524 = vmatmul.mubr.f32.gmra.mrb[2].mxu1 %v8155_v46  ;;  %v2143_v45 = vld [vmem:[#allocation2 + $0x68] sm:$0xff] }
 0x2a3   :  { %2039 = vst.msk [vmem:[#allocation2 + $0x88] sm:$0xff] %vm2022_vm2, %v1942_v25  ;;  %v1848_v36 = vadd.f32 %v8141_v51, %v1490_v34  ;;  %6271 = vmatpush1.bf16.msra.mxu1 %v6270_v19 }
 0x2a4   :  { %v1943_v38 = vmax.f32 %v1847_v31, 0.0  ;;  %6272 = vmatprep.subr.bf16.mxu1 %v6714_v2 }
 0x2a5   :  { %v1944_v42 = vmax.f32 %v1848_v36, 0.0  ;;  %v1494_v44 = vpop.f32.mrb[20].mxu0  ;;  %v5213_v36 = vld [vmem:[%s9511_s3 + $0x130] sm:$0xff] }
 0x2a6   :  { %v2145_v46 = vld [vmem:[#allocation2 + $0x78] sm:$0xff]  ;;  %v1849_v47 = vadd.f32 %v8139_v49, %v1494_v44  ;;  %v1496_v48 = vpop.f32.mrb[21].mxu0  ;;  %v8221_v50 = vmax.f32 %v1941_v20, %v1943_v38 }
 0x2a7   :  { %v2147_v52 = vmax.f32 %v2143_v45, %v2145_v46  ;;  %2041 = vst.msk [vmem:[#allocation2 + $0x98] sm:$0xff] %vm2022_vm2, %v1944_v42  ;;  %v1850_v53 = vadd.f32 %v8141_v51, %v1496_v48  ;;  %6274 = vmatpush1.bf16.msra.mxu1 %v6273_v37  ;;  %v5214_v37 = vld [vmem:[%s9511_s3 + $0x138] sm:$0xff] }
 0x2a8   :  { %v1945_v1 = vmax.f32 %v1849_v47, 0.0  ;;  %v2315_v12 = vld [vmem:[#allocation3 + $0x28] sm:$0xff]  ;;  %2156 = vst [vmem:[#allocation3 + $0x40] sm:$0xff] %v8221_v50  ;;  %6275 = vmatprep.subr.bf16.mxu1 %v6714_v2  ;;  %v6285_v39 = vpack.c.bf16 %v5214_v37, %v5213_v36 }
 0x2a9   :  { %2149 = vst.msk [vmem:[#allocation3 + $0x38] sm:$0xff] %vm2022_vm2, %v2147_v52  ;;  %v1946_v29 = vmax.f32 %v1850_v53, 0.0  ;;  %v1500_v30 = vpop.f32.mrb[22].mxu0  ;;  %5177 = vmatprep.mubr.msk.f32.mxu1 %vm2022_vm2, %v2315_v12 }
 0x2aa   :  { %v1851_v61 = vadd.f32 %v8139_v49, %v1500_v30  ;;  %v1502_v8 = vpop.f32.mrb[23].mxu0  ;;  %2529 = vmatmul.mubr.f32.gmra.mrb[4].mxu1 %v8171_v33  ;;  %v2151_v33 = vld [vmem:[#allocation2 + $0x88] sm:$0xff] }
 0x2ab   :  { %2043 = vst.msk [vmem:[#allocation2 + $0xa8] sm:$0xff] %vm2022_vm2, %v1946_v29  ;;  %v1852_v18 = vadd.f32 %v8141_v51, %v1502_v8  ;;  %6277 = vmatpush1.bf16.msra.mxu1 %v6276_v54  ;;  %v5215_v8 = vld [vmem:[%s9511_s3 + $0x140] sm:$0xff] }
 0x2ac   :  { %v1947_v27 = vmax.f32 %v1851_v61, 0.0  ;;  %6278 = vmatprep.subr.bf16.mxu1 %v6714_v2 }
 0x2ad   :  { %v1948_v35 = vmax.f32 %v1852_v18, 0.0  ;;  %v1506_v41 = vpop.f32.mrb[24].mxu0  ;;  %v6288_v18 = vpack.c.bf16 %v5216_v10, %v5215_v8 }
 0x2ae   :  { %v2153_v43 = vld [vmem:[#allocation2 + $0x98] sm:$0xff]  ;;  %v1853_v56 = vadd.f32 %v8139_v49, %v1506_v41  ;;  %v1508_v58 = vpop.f32.mrb[25].mxu0  ;;  %v8241_v60 = vmax.f32 %v1945_v1, %v1947_v27 }
 0x2af   :  { %v2155_v62 = vmax.f32 %v2151_v33, %v2153_v43  ;;  %2045 = vst.msk [vmem:[#allocation2 + $0xb8] sm:$0xff] %vm2022_vm2, %v1948_v35  ;;  %v1854_v0 = vadd.f32 %v8141_v51, %v1508_v58  ;;  %6280 = vmatpush1.bf16.msra.mxu1 %v6279_v24 }
 0x2b0   :  { %v1949_v55 = vmax.f32 %v1853_v56, 0.0  ;;  %v8245_v32 = vld [vmem:[#allocation3 + $0x38] sm:$0xff]  ;;  %6281 = vmatprep.subr.bf16.mxu1 %v6714_v2 }
 0x2b1   :  { %2157 = vst.msk [vmem:[#allocation3 + $0x48] sm:$0xff] %vm2022_vm2, %v2155_v62  ;;  %v1950_v26 = vmax.f32 %v1854_v0, 0.0  ;;  %v1512_v13 = vpop.f32.mrb[26].mxu0  ;;  %5178 = vmatprep.mubr.msk.f32.mxu1 %vm2022_vm2, %v8245_v32 }
 0x2b2   :  { %v1855_v57 = vadd.f32 %v8139_v49, %v1512_v13  ;;  %v1514_v59 = vpop.f32.mrb[27].mxu0  ;;  %2534 = vmatmul.mubr.f32.gmra.mrb[6].mxu1 %v8195_v14  ;;  %v2159_v11 = vld [vmem:[#allocation2 + $0xa8] sm:$0xff]  ;;  %v5217_v13 = vld [vmem:[%s9511_s3 + $0x150] sm:$0xff] }
 0x2b3   :  { %2047 = vst.msk [vmem:[#allocation2 + $0xc8] sm:$0xff] %vm2022_vm2, %v1950_v26  ;;  %v1856_v4 = vadd.f32 %v8141_v51, %v1514_v59  ;;  %6283 = vmatpush1.bf16.msra.mxu1 %v6282_v5  ;;  %v5220_v5 = vld [vmem:[%s9511_s3 + $0x168] sm:$0xff] }
 0x2b4   :  { %v1951_v6 = vmax.f32 %v1855_v57, 0.0  ;;  %6284 = vmatprep.subr.bf16.mxu1 %v6714_v2  ;;  %v5218_v57 = vld [vmem:[%s9511_s3 + $0x158] sm:$0xff] }
 0x2b5   :  { %v1952_v7 = vmax.f32 %v1856_v4, 0.0  ;;  %v1518_v9 = vpop.f32.mrb[28].mxu0  ;;  %v6291_v3 = vpack.c.bf16 %v5218_v57, %v5217_v13  ;;  %v5219_v4 = vld [vmem:[%s9511_s3 + $0x160] sm:$0xff] }
 0x2b6   :  { %v2161_v15 = vld [vmem:[#allocation2 + $0xb8] sm:$0xff]  ;;  %v1857_v14 = vadd.f32 %v8139_v49, %v1518_v9  ;;  %v1520_v17 = vpop.f32.mrb[29].mxu0  ;;  %v8262_v19 = vmax.f32 %v1949_v55, %v1951_v6 }
 0x2b7   :  { %v2163_v20 = vmax.f32 %v2159_v11, %v2161_v15  ;;  %2049 = vst.msk [vmem:[#allocation2 + $0xd8] sm:$0xff] %vm2022_vm2, %v1952_v7  ;;  %v1858_v21 = vadd.f32 %v8141_v51, %v1520_v17  ;;  %6286 = vmatpush1.bf16.msra.mxu1 %v6285_v39  ;;  %v6294_v11 = vpack.c.bf16 %v5220_v5, %v5219_v4  ;;  %v5222_v17 = vld [vmem:[%s9511_s3 + $0x178] sm:$0xff] }
 0x2b8   :  { %v1953_v22 = vmax.f32 %v1857_v14, 0.0  ;;  %v8267_v23 = vld [vmem:[#allocation3 + $0x48] sm:$0xff]  ;;  %6287 = vmatprep.subr.bf16.mxu1 %v6714_v2  ;;  %v5221_v14 = vld [vmem:[%s9511_s3 + $0x170] sm:$0xff] }
 0x2b9   :  { %2165 = vst.msk [vmem:[#allocation3 + $0x58] sm:$0xff] %vm2022_vm2, %v2163_v20  ;;  %v1954_v25 = vmax.f32 %v1858_v21, 0.0  ;;  %v1524_v28 = vpop.f32.mrb[30].mxu0  ;;  %5179 = vmatprep.mubr.msk.f32.mxu1 %vm2022_vm2, %v8267_v23 }
 0x2ba   :  { %v1859_v31 = vadd.f32 %v8139_v49, %v1524_v28  ;;  %v1526_v34 = vpop.f32.mrb[31].mxu0  ;;  %2539 = vmatmul.mubr.f32.gmra.mrb[8].mxu1 %v8221_v50  ;;  %v2167_v45 = vld [vmem:[#allocation2 + $0xc8] sm:$0xff] }
 0x2bb   :  { %2051 = vst.msk [vmem:[#allocation2 + $0xe8] sm:$0xff] %vm2022_vm2, %v1954_v25  ;;  %v1860_v38 = vadd.f32 %v8141_v51, %v1526_v34  ;;  %6289 = vmatpush1.bf16.msra.mxu1 %v6288_v18 }
 0x2bc   :  { %v1955_v40 = vmax.f32 %v1859_v31, 0.0  ;;  %6290 = vmatprep.subr.bf16.mxu1 %v6714_v2 }
 0x2bd   :  { %v1956_v42 = vmax.f32 %v1860_v38, 0.0  ;;  %v1530_v44 = vpop.f32.mrb[32].mxu0  ;;  %v6297_v38 = vpack.c.bf16 %v5222_v17, %v5221_v14 }
 0x2be   :  { %v2169_v46 = vld [vmem:[#allocation2 + $0xd8] sm:$0xff]  ;;  %v1861_v47 = vadd.f32 %v8139_v49, %v1530_v44  ;;  %v1532_v48 = vpop.f32.mrb[33].mxu0  ;;  %v8283_v50 = vmax.f32 %v1953_v22, %v1955_v40 }
 0x2bf   :  { %v2171_v52 = vmax.f32 %v2167_v45, %v2169_v46  ;;  %2053 = vst.msk [vmem:[#allocation2 + $0xf8] sm:$0xff] %vm2022_vm2, %v1956_v42  ;;  %v1862_v53 = vadd.f32 %v8141_v51, %v1532_v48  ;;  %6292 = vmatpush1.bf16.msra.mxu1 %v6291_v3 }
 0x2c0   :  { %v1957_v54 = vmax.f32 %v1861_v47, 0.0  ;;  %v8288_v1 = vld [vmem:[#allocation3 + $0x58] sm:$0xff]  ;;  %6293 = vmatprep.subr.bf16.mxu1 %v6714_v2 }
 0x2c1   :  { %2173 = vst.msk [vmem:[#allocation3 + $0x68] sm:$0xff] %vm2022_vm2, %v2171_v52  ;;  %v1958_v12 = vmax.f32 %v1862_v53, 0.0  ;;  %v1536_v29 = vpop.f32.mrb[34].mxu0  ;;  %5180 = vmatprep.mubr.msk.f32.mxu1 %vm2022_vm2, %v8288_v1 }
 0x2c2   :  { %v1863_v30 = vadd.f32 %v8139_v49, %v1536_v29  ;;  %v1538_v61 = vpop.f32.mrb[35].mxu0  ;;  %2544 = vmatmul.mubr.f32.gmra.mrb[10].mxu1 %v8241_v60  ;;  %v2175_v41 = vld [vmem:[#allocation2 + $0xe8] sm:$0xff] }
 0x2c3   :  { %2055 = vst.msk [vmem:[#allocation2 + $0x108] sm:$0xff] %vm2022_vm2, %v1958_v12  ;;  %v1864_v16 = vadd.f32 %v8141_v51, %v1538_v61  ;;  %6295 = vmatpush1.bf16.msra.mxu1 %v6294_v11 }
 0x2c4   :  { %v1959_v24 = vmax.f32 %v1863_v30, 0.0  ;;  %6296 = vmatprep.subr.bf16.mxu1 %v6714_v2 }
 0x2c5   :  { %v1960_v27 = vmax.f32 %v1864_v16, 0.0  ;;  %v1542_v35 = vpop.f32.mrb[36].mxu0 }
 0x2c6   :  { %v2177_v33 = vld [vmem:[#allocation2 + $0xf8] sm:$0xff]  ;;  %v1865_v43 = vadd.f32 %v8139_v49, %v1542_v35  ;;  %v1544_v56 = vpop.f32.mrb[37].mxu0  ;;  %v8304_v58 = vmax.f32 %v1957_v54, %v1959_v24 }
 0x2c7   :  { %v2179_v62 = vmax.f32 %v2175_v41, %v2177_v33  ;;  %2057 = vst.msk [vmem:[#allocation2 + $0x118] sm:$0xff] %vm2022_vm2, %v1960_v27  ;;  %v1866_v0 = vadd.f32 %v8141_v51, %v1544_v56  ;;  %6298 = vmatpush1.bf16.msra.mxu1 %v6297_v38 }
 0x2c8   :  { %v1961_v55 = vmax.f32 %v1865_v43, 0.0  ;;  %v8309_v26 = vld [vmem:[#allocation3 + $0x68] sm:$0xff] }
 0x2c9   :  { %2181 = vst.msk [vmem:[#allocation3 + $0x78] sm:$0xff] %vm2022_vm2, %v2179_v62  ;;  %v1962_v59 = vmax.f32 %v1866_v0, 0.0  ;;  %v1548_v63 = vpop.f32.mrb[38].mxu0  ;;  %5181 = vmatprep.mubr.msk.f32.mxu1 %vm2022_vm2, %v8309_v26 }
 0x2ca   :  { %v1867_v6 = vadd.f32 %v8139_v49, %v1548_v63  ;;  %v1550_v7 = vpop.f32.mrb[39].mxu0  ;;  %2549 = vmatmul.mubr.f32.gmra.mrb[12].mxu1 %v8262_v19  ;;  %v2183_v22 = vld [vmem:[#allocation2 + $0x108] sm:$0xff] }
 0x2cb   :  { %2059 = vst.msk [vmem:[#allocation2 + $0x128] sm:$0xff] %vm2022_vm2, %v1962_v59  ;;  %v1868_v9 = vadd.f32 %v8141_v51, %v1550_v7 }
 0x2cc   :  { %v1963_v15 = vmax.f32 %v1867_v6, 0.0 }
 0x2cd   :  { %v1964_v20 = vmax.f32 %v1868_v9, 0.0  ;;  %v1554_v21 = vpop.f32.mrb[40].mxu0 }
 0x2ce   :  { %v2185_v25 = vld [vmem:[#allocation2 + $0x118] sm:$0xff]  ;;  %v1869_v28 = vadd.f32 %v8139_v49, %v1554_v21  ;;  %v1556_v31 = vpop.f32.mrb[41].mxu0  ;;  %v8338_v34 = vmax.f32 %v1961_v55, %v1963_v15 }
 0x2cf   :  { %v2187_v36 = vmax.f32 %v2183_v22, %v2185_v25  ;;  %2061 = vst.msk [vmem:[#allocation2 + $0x138] sm:$0xff] %vm2022_vm2, %v1964_v20  ;;  %v1870_v37 = vadd.f32 %v8141_v51, %v1556_v31 }
 0x2d0   :  { %v1965_v39 = vmax.f32 %v1869_v28, 0.0  ;;  %v8342_v40 = vld [vmem:[#allocation3 + $0x78] sm:$0xff] }
 0x2d1   :  { %2189 = vst.msk [vmem:[#allocation3 + $0x88] sm:$0xff] %vm2022_vm2, %v2187_v36  ;;  %v1966_v42 = vmax.f32 %v1870_v37, 0.0  ;;  %v1560_v44 = vpop.f32.mrb[42].mxu0  ;;  %5182 = vmatprep.mubr.msk.f32.mxu1 %vm2022_vm2, %v8342_v40 }
 0x2d2   :  { %v1871_v45 = vadd.f32 %v8139_v49, %v1560_v44  ;;  %v1562_v46 = vpop.f32.mrb[43].mxu0  ;;  %2554 = vmatmul.mubr.f32.gmra.mrb[14].mxu1 %v8283_v50  ;;  %v2191_v54 = vld [vmem:[#allocation2 + $0x128] sm:$0xff] }
 0x2d3   :  { %2063 = vst.msk [vmem:[#allocation2 + $0x148] sm:$0xff] %vm2022_vm2, %v1966_v42  ;;  %v1872_v47 = vadd.f32 %v8141_v51, %v1562_v46 }
 0x2d4   :  { %v1967_v48 = vmax.f32 %v1871_v45, 0.0 }
 0x2d5   :  { %v1968_v52 = vmax.f32 %v1872_v47, 0.0  ;;  %v1566_v53 = vpop.f32.mrb[44].mxu0 }
 0x2d6   :  { %v2193_v12 = vld [vmem:[#allocation2 + $0x138] sm:$0xff]  ;;  %v1873_v29 = vadd.f32 %v8139_v49, %v1566_v53  ;;  %v1568_v30 = vpop.f32.mrb[45].mxu0  ;;  %v8353_v61 = vmax.f32 %v1965_v39, %v1967_v48 }
 0x2d7   :  { %v2195_v8 = vmax.f32 %v2191_v54, %v2193_v12  ;;  %2065 = vst.msk [vmem:[#allocation2 + $0x158] sm:$0xff] %vm2022_vm2, %v1968_v52  ;;  %v1874_v10 = vadd.f32 %v8141_v51, %v1568_v30 }
 0x2d8   :  { %v1969_v16 = vmax.f32 %v1873_v29, 0.0  ;;  %v8357_v18 = vld [vmem:[#allocation3 + $0x88] sm:$0xff] }
 0x2d9   :  { %2197 = vst.msk [vmem:[#allocation3 + $0x98] sm:$0xff] %vm2022_vm2, %v2195_v8  ;;  %v1970_v24 = vmax.f32 %v1874_v10, 0.0  ;;  %v1572_v27 = vpop.f32.mrb[46].mxu0  ;;  %5183 = vmatprep.mubr.msk.f32.mxu1 %vm2022_vm2, %v8357_v18 }
 0x2da   :  { %v1875_v35 = vadd.f32 %v8139_v49, %v1572_v27  ;;  %v1574_v41 = vpop.f32.mrb[47].mxu0  ;;  %2559 = vmatmul.mubr.f32.gmra.mrb[16].mxu1 %v8304_v58  ;;  %v2199_v0 = vld [vmem:[#allocation2 + $0x148] sm:$0xff] }
 0x2db   :  { %2067 = vst.msk [vmem:[#allocation2 + $0x168] sm:$0xff] %vm2022_vm2, %v1970_v24  ;;  %v1876_v33 = vadd.f32 %v8141_v51, %v1574_v41 }
 0x2dc   :  { %v1971_v43 = vmax.f32 %v1875_v35, 0.0 }
 0x2dd   :  { %v1972_v56 = vmax.f32 %v1876_v33, 0.0  ;;  %v1578_v62 = vpop.f32.mrb[48].mxu0 }
 0x2de   :  { %v2201_v55 = vld [vmem:[#allocation2 + $0x158] sm:$0xff]  ;;  %v1877_v13 = vadd.f32 %v8139_v49, %v1578_v62  ;;  %v1580_v57 = vpop.f32.mrb[49].mxu0  ;;  %v8367_v59 = vmax.f32 %v1969_v16, %v1971_v43 }
 0x2df   :  { %v2203_v63 = vmax.f32 %v2199_v0, %v2201_v55  ;;  %2069 = vst.msk [vmem:[#allocation2 + $0x178] sm:$0xff] %vm2022_vm2, %v1972_v56  ;;  %v1878_v3 = vadd.f32 %v8141_v51, %v1580_v57 }
 0x2e0   :  { %v1973_v4 = vmax.f32 %v1877_v13, 0.0  ;;  %v8371_v5 = vld [vmem:[#allocation3 + $0x98] sm:$0xff] }
 0x2e1   :  { %2205 = vst.msk [vmem:[#allocation3 + $0xa8] sm:$0xff] %vm2022_vm2, %v2203_v63  ;;  %v1974_v6 = vmax.f32 %v1878_v3, 0.0  ;;  %v1584_v7 = vpop.f32.mrb[50].mxu0  ;;  %5184 = vmatprep.mubr.msk.f32.mxu1 %vm2022_vm2, %v8371_v5 }
 0x2e2   :  { %v1879_v9 = vadd.f32 %v8139_v49, %v1584_v7  ;;  %v1586_v11 = vpop.f32.mrb[51].mxu0  ;;  %2564 = vmatmul.mubr.f32.gmra.mrb[18].mxu1 %v8338_v34  ;;  %v2207_v21 = vld [vmem:[#allocation2 + $0x168] sm:$0xff] }
 0x2e3   :  { %2071 = vst.msk [vmem:[#allocation2 + $0x188] sm:$0xff] %vm2022_vm2, %v1974_v6  ;;  %v1880_v15 = vadd.f32 %v8141_v51, %v1586_v11 }
 0x2e4   :  { %v1975_v14 = vmax.f32 %v1879_v9, 0.0 }
 0x2e5   :  { %v1976_v17 = vmax.f32 %v1880_v15, 0.0  ;;  %v1590_v20 = vpop.f32.mrb[52].mxu0 }
 0x2e6   :  { %v2209_v22 = vld [vmem:[#allocation2 + $0x178] sm:$0xff]  ;;  %v1881_v25 = vadd.f32 %v8139_v49, %v1590_v20  ;;  %v1592_v28 = vpop.f32.mrb[53].mxu0  ;;  %v8381_v31 = vmax.f32 %v1973_v4, %v1975_v14 }
 0x2e7   :  { %v2211_v36 = vmax.f32 %v2207_v21, %v2209_v22  ;;  %2073 = vst.msk [vmem:[#allocation2 + $0x198] sm:$0xff] %vm2022_vm2, %v1976_v17  ;;  %v1882_v37 = vadd.f32 %v8141_v51, %v1592_v28 }
 0x2e8   :  { %v1977_v38 = vmax.f32 %v1881_v25, 0.0  ;;  %v8385_v39 = vld [vmem:[#allocation3 + $0xa8] sm:$0xff] }
 0x2e9   :  { %2213 = vst.msk [vmem:[#allocation3 + $0xb8] sm:$0xff] %vm2022_vm2, %v2211_v36  ;;  %v1978_v42 = vmax.f32 %v1882_v37, 0.0  ;;  %v1596_v44 = vpop.f32.mrb[54].mxu0  ;;  %5185 = vmatprep.mubr.msk.f32.mxu1 %vm2022_vm2, %v8385_v39 }
 0x2ea   :  { %v1883_v45 = vadd.f32 %v8139_v49, %v1596_v44  ;;  %v1598_v46 = vpop.f32.mrb[55].mxu0  ;;  %2569 = vmatmul.mubr.f32.gmra.mrb[20].mxu1 %v8353_v61  ;;  %v2215_v54 = vld [vmem:[#allocation2 + $0x188] sm:$0xff] }
 0x2eb   :  { %2075 = vst.msk [vmem:[#allocation2 + $0x1a8] sm:$0xff] %vm2022_vm2, %v1978_v42  ;;  %v1884_v47 = vadd.f32 %v8141_v51, %v1598_v46 }
 0x2ec   :  { %v1979_v48 = vmax.f32 %v1883_v45, 0.0 }
 0x2ed   :  { %v1980_v52 = vmax.f32 %v1884_v47, 0.0  ;;  %v1602_v53 = vpop.f32.mrb[56].mxu0 }
 0x2ee   :  { %v2217_v12 = vld [vmem:[#allocation2 + $0x198] sm:$0xff]  ;;  %v1885_v29 = vadd.f32 %v8139_v49, %v1602_v53  ;;  %v1604_v30 = vpop.f32.mrb[57].mxu0  ;;  %v8395_v8 = vmax.f32 %v1977_v38, %v1979_v48 }
 0x2ef   :  { %v2219_v10 = vmax.f32 %v2215_v54, %v2217_v12  ;;  %2077 = vst.msk [vmem:[#allocation2 + $0x1b8] sm:$0xff] %vm2022_vm2, %v1980_v52  ;;  %v1886_v16 = vadd.f32 %v8141_v51, %v1604_v30 }
 0x2f0   :  { %v1981_v24 = vmax.f32 %v1885_v29, 0.0  ;;  %v8399_v27 = vld [vmem:[#allocation3 + $0xb8] sm:$0xff] }
 0x2f1   :  { %2221 = vst.msk [vmem:[#allocation3 + $0xc8] sm:$0xff] %vm2022_vm2, %v2219_v10  ;;  %v1982_v35 = vmax.f32 %v1886_v16, 0.0  ;;  %v1608_v41 = vpop.f32.mrb[58].mxu0  ;;  %5186 = vmatprep.mubr.msk.f32.mxu1 %vm2022_vm2, %v8399_v27 }
 0x2f2   :  { %v1887_v33 = vadd.f32 %v8139_v49, %v1608_v41  ;;  %v1610_v43 = vpop.f32.mrb[59].mxu0  ;;  %2574 = vmatmul.mubr.f32.gmra.mrb[22].mxu1 %v8367_v59  ;;  %v2223_v13 = vld [vmem:[#allocation2 + $0x1a8] sm:$0xff] }
 0x2f3   :  { %2079 = vst.msk [vmem:[#allocation2 + $0x1c8] sm:$0xff] %vm2022_vm2, %v1982_v35  ;;  %v1888_v56 = vadd.f32 %v8141_v51, %v1610_v43 }
 0x2f4   :  { %v1983_v62 = vmax.f32 %v1887_v33, 0.0 }
 0x2f5   :  { %v1984_v0 = vmax.f32 %v1888_v56, 0.0  ;;  %v1614_v55 = vpop.f32.mrb[60].mxu0 }
 0x2f6   :  { %v2225_v57 = vld [vmem:[#allocation2 + $0x1b8] sm:$0xff]  ;;  %v1889_v63 = vadd.f32 %v8139_v49, %v1614_v55  ;;  %v1616_v3 = vpop.f32.mrb[61].mxu0  ;;  %v8409_v4 = vmax.f32 %v1981_v24, %v1983_v62 }
 0x2f7   :  { %v2227_v6 = vmax.f32 %v2223_v13, %v2225_v57  ;;  %2081 = vst.msk [vmem:[#allocation2 + $0x1d8] sm:$0xff] %vm2022_vm2, %v1984_v0  ;;  %v1890_v7 = vadd.f32 %v8141_v51, %v1616_v3 }
 0x2f8   :  { %v1985_v9 = vmax.f32 %v1889_v63, 0.0  ;;  %v8413_v11 = vld [vmem:[#allocation3 + $0xc8] sm:$0xff] }
 0x2f9   :  { %2229 = vst.msk [vmem:[#allocation3 + $0xd8] sm:$0xff] %vm2022_vm2, %v2227_v6  ;;  %v1986_v15 = vmax.f32 %v1890_v7, 0.0  ;;  %v1620_v14 = vpop.f32.mrb[62].mxu0  ;;  %5187 = vmatprep.mubr.msk.f32.mxu1 %vm2022_vm2, %v8413_v11 }
 0x2fa   :  { %v1891_v17 = vadd.f32 %v8139_v49, %v1620_v14  ;;  %v1622_v20 = vpop.f32.mrb[63].mxu0  ;;  %2579 = vmatmul.mubr.f32.gmra.mrb[24].mxu1 %v8381_v31  ;;  %v2231_v36 = vld [vmem:[#allocation2 + $0x1c8] sm:$0xff] }
 0x2fb   :  { %2083 = vst.msk [vmem:[#allocation2 + $0x1e8] sm:$0xff] %vm2022_vm2, %v1986_v15  ;;  %v1892_v21 = vadd.f32 %v8141_v51, %v1622_v20 }
 0x2fc   :  { %v1987_v22 = vmax.f32 %v1891_v17, 0.0 }
 0x2fd   :  { %v1988_v25 = vmax.f32 %v1892_v21, 0.0  ;;  %v1626_v28 = vpop.f32.mrb[64].mxu0 }
 0x2fe   :  { %v2233_v37 = vld [vmem:[#allocation2 + $0x1d8] sm:$0xff]  ;;  %v1893_v38 = vadd.f32 %v8139_v49, %v1626_v28  ;;  %v1628_v42 = vpop.f32.mrb[65].mxu0  ;;  %v8423_v44 = vmax.f32 %v1985_v9, %v1987_v22 }
 0x2ff   :  { %v2235_v45 = vmax.f32 %v2231_v36, %v2233_v37  ;;  %2085 = vst.msk [vmem:[#allocation2 + $0x1f8] sm:$0xff] %vm2022_vm2, %v1988_v25  ;;  %v1894_v46 = vadd.f32 %v8141_v51, %v1628_v42 }
 0x300   :  { %v1989_v47 = vmax.f32 %v1893_v38, 0.0  ;;  %v8427_v48 = vld [vmem:[#allocation3 + $0xd8] sm:$0xff] }
 0x301   :  { %2237 = vst.msk [vmem:[#allocation3 + $0xe8] sm:$0xff] %vm2022_vm2, %v2235_v45  ;;  %v1990_v52 = vmax.f32 %v1894_v46, 0.0  ;;  %v1632_v53 = vpop.f32.mrb[66].mxu0  ;;  %5188 = vmatprep.mubr.msk.f32.mxu1 %vm2022_vm2, %v8427_v48 }
 0x302   :  { %v1895_v54 = vadd.f32 %v8139_v49, %v1632_v53  ;;  %v1634_v12 = vpop.f32.mrb[67].mxu0  ;;  %2584 = vmatmul.mubr.f32.gmra.mrb[26].mxu1 %v8395_v8  ;;  %v2239_v24 = vld [vmem:[#allocation2 + $0x1e8] sm:$0xff] }
 0x303   :  { %2087 = vst.msk [vmem:[#allocation2 + $0x208] sm:$0xff] %vm2022_vm2, %v1990_v52  ;;  %v1896_v29 = vadd.f32 %v8141_v51, %v1634_v12 }
 0x304   :  { %v1991_v30 = vmax.f32 %v1895_v54, 0.0 }
 0x305   :  { %v1992_v10 = vmax.f32 %v1896_v29, 0.0  ;;  %v1638_v16 = vpop.f32.mrb[68].mxu0 }
 0x306   :  { %v2241_v35 = vld [vmem:[#allocation2 + $0x1f8] sm:$0xff]  ;;  %v1897_v41 = vadd.f32 %v8139_v49, %v1638_v16  ;;  %v1640_v33 = vpop.f32.mrb[69].mxu0  ;;  %v8437_v43 = vmax.f32 %v1989_v47, %v1991_v30 }
 0x307   :  { %v2243_v56 = vmax.f32 %v2239_v24, %v2241_v35  ;;  %2089 = vst.msk [vmem:[#allocation2 + $0x218] sm:$0xff] %vm2022_vm2, %v1992_v10  ;;  %v1898_v62 = vadd.f32 %v8141_v51, %v1640_v33 }
 0x308   :  { %v1993_v0 = vmax.f32 %v1897_v41, 0.0  ;;  %v8441_v55 = vld [vmem:[#allocation3 + $0xe8] sm:$0xff] }
 0x309   :  { %2245 = vst.msk [vmem:[#allocation3 + $0xf8] sm:$0xff] %vm2022_vm2, %v2243_v56  ;;  %v1994_v13 = vmax.f32 %v1898_v62, 0.0  ;;  %v1644_v57 = vpop.f32.mrb[70].mxu0  ;;  %5189 = vmatprep.mubr.msk.f32.mxu1 %vm2022_vm2, %v8441_v55 }
 0x30a   :  { %v1899_v63 = vadd.f32 %v8139_v49, %v1644_v57  ;;  %v1646_v3 = vpop.f32.mrb[71].mxu0  ;;  %2589 = vmatmul.mubr.f32.gmra.mrb[28].mxu1 %v8409_v4  ;;  %v2247_v14 = vld [vmem:[#allocation2 + $0x208] sm:$0xff] }
 0x30b   :  { %2091 = vst.msk [vmem:[#allocation2 + $0x228] sm:$0xff] %vm2022_vm2, %v1994_v13  ;;  %v1900_v6 = vadd.f32 %v8141_v51, %v1646_v3 }
 0x30c   :  { %v1995_v7 = vmax.f32 %v1899_v63, 0.0 }
 0x30d   :  { %v1996_v9 = vmax.f32 %v1900_v6, 0.0  ;;  %v1650_v15 = vpop.f32.mrb[72].mxu0 }
 0x30e   :  { %v2249_v17 = vld [vmem:[#allocation2 + $0x218] sm:$0xff]  ;;  %v1901_v20 = vadd.f32 %v8139_v49, %v1650_v15  ;;  %v1652_v21 = vpop.f32.mrb[73].mxu0  ;;  %v8451_v22 = vmax.f32 %v1993_v0, %v1995_v7 }
 0x30f   :  { %v2251_v25 = vmax.f32 %v2247_v14, %v2249_v17  ;;  %2093 = vst.msk [vmem:[#allocation2 + $0x238] sm:$0xff] %vm2022_vm2, %v1996_v9  ;;  %v1902_v28 = vadd.f32 %v8141_v51, %v1652_v21 }
 0x310   :  { %v1997_v36 = vmax.f32 %v1901_v20, 0.0  ;;  %v8455_v37 = vld [vmem:[#allocation3 + $0xf8] sm:$0xff] }
 0x311   :  { %2253 = vst.msk [vmem:[#allocation3 + $0x108] sm:$0xff] %vm2022_vm2, %v2251_v25  ;;  %v1998_v38 = vmax.f32 %v1902_v28, 0.0  ;;  %v1656_v42 = vpop.f32.mrb[74].mxu0  ;;  %5190 = vmatprep.mubr.msk.f32.mxu1 %vm2022_vm2, %v8455_v37 }
 0x312   :  { %v1903_v45 = vadd.f32 %v8139_v49, %v1656_v42  ;;  %v1658_v46 = vpop.f32.mrb[75].mxu0  ;;  %2594 = vmatmul.mubr.f32.gmra.mrb[30].mxu1 %v8423_v44  ;;  %v2255_v12 = vld [vmem:[#allocation2 + $0x228] sm:$0xff] }
 0x313   :  { %2095 = vst.msk [vmem:[#allocation2 + $0x248] sm:$0xff] %vm2022_vm2, %v1998_v38  ;;  %v1904_v47 = vadd.f32 %v8141_v51, %v1658_v46 }
 0x314   :  { %v1999_v52 = vmax.f32 %v1903_v45, 0.0 }
 0x315   :  { %v2000_v53 = vmax.f32 %v1904_v47, 0.0  ;;  %v1662_v54 = vpop.f32.mrb[76].mxu0 }
 0x316   :  { %v2257_v29 = vld [vmem:[#allocation2 + $0x238] sm:$0xff]  ;;  %v1905_v30 = vadd.f32 %v8139_v49, %v1662_v54  ;;  %v1664_v10 = vpop.f32.mrb[77].mxu0  ;;  %v8465_v16 = vmax.f32 %v1997_v36, %v1999_v52 }
 0x317   :  { %v2259_v24 = vmax.f32 %v2255_v12, %v2257_v29  ;;  %2097 = vst.msk [vmem:[#allocation2 + $0x258] sm:$0xff] %vm2022_vm2, %v2000_v53  ;;  %v1906_v35 = vadd.f32 %v8141_v51, %v1664_v10 }
 0x318   :  { %v2001_v41 = vmax.f32 %v1905_v30, 0.0  ;;  %v8469_v33 = vld [vmem:[#allocation3 + $0x108] sm:$0xff] }
 0x319   :  { %2261 = vst.msk [vmem:[#allocation3 + $0x118] sm:$0xff] %vm2022_vm2, %v2259_v24  ;;  %v2002_v56 = vmax.f32 %v1906_v35, 0.0  ;;  %v1668_v62 = vpop.f32.mrb[78].mxu0  ;;  %5191 = vmatprep.mubr.msk.f32.mxu1 %vm2022_vm2, %v8469_v33 }
 0x31a   :  { %v1907_v0 = vadd.f32 %v8139_v49, %v1668_v62  ;;  %v1670_v13 = vpop.f32.mrb[79].mxu0  ;;  %2599 = vmatmul.mubr.f32.gmra.mrb[32].mxu1 %v8437_v43  ;;  %v2263_v7 = vld [vmem:[#allocation2 + $0x248] sm:$0xff] }
 0x31b   :  { %2099 = vst.msk [vmem:[#allocation2 + $0x268] sm:$0xff] %vm2022_vm2, %v2002_v56  ;;  %v1908_v57 = vadd.f32 %v8141_v51, %v1670_v13 }
 0x31c   :  { %v2003_v63 = vmax.f32 %v1907_v0, 0.0 }
 0x31d   :  { %v2004_v3 = vmax.f32 %v1908_v57, 0.0  ;;  %v1674_v6 = vpop.f32.mrb[80].mxu0 }
 0x31e   :  { %v2265_v9 = vld [vmem:[#allocation2 + $0x258] sm:$0xff]  ;;  %v1909_v15 = vadd.f32 %v8139_v49, %v1674_v6  ;;  %v1676_v14 = vpop.f32.mrb[81].mxu0  ;;  %v8479_v17 = vmax.f32 %v2001_v41, %v2003_v63 }
 0x31f   :  { %v2267_v20 = vmax.f32 %v2263_v7, %v2265_v9  ;;  %2101 = vst.msk [vmem:[#allocation2 + $0x278] sm:$0xff] %vm2022_vm2, %v2004_v3  ;;  %v1910_v21 = vadd.f32 %v8141_v51, %v1676_v14 }
 0x320   :  { %v2005_v25 = vmax.f32 %v1909_v15, 0.0  ;;  %v8483_v28 = vld [vmem:[#allocation3 + $0x118] sm:$0xff] }
 0x321   :  { %2269 = vst.msk [vmem:[#allocation3 + $0x128] sm:$0xff] %vm2022_vm2, %v2267_v20  ;;  %v2006_v36 = vmax.f32 %v1910_v21, 0.0  ;;  %v1680_v38 = vpop.f32.mrb[82].mxu0  ;;  %5192 = vmatprep.mubr.msk.f32.mxu1 %vm2022_vm2, %v8483_v28 }
 0x322   :  { %v1911_v42 = vadd.f32 %v8139_v49, %v1680_v38  ;;  %v1682_v45 = vpop.f32.mrb[83].mxu0  ;;  %2604 = vmatmul.mubr.f32.gmra.mrb[34].mxu1 %v8451_v22  ;;  %v2271_v54 = vld [vmem:[#allocation2 + $0x268] sm:$0xff] }
 0x323   :  { %2103 = vst.msk [vmem:[#allocation2 + $0x288] sm:$0xff] %vm2022_vm2, %v2006_v36  ;;  %v1912_v46 = vadd.f32 %v8141_v51, %v1682_v45 }
 0x324   :  { %v2007_v47 = vmax.f32 %v1911_v42, 0.0 }
 0x325   :  { %v2008_v52 = vmax.f32 %v1912_v46, 0.0  ;;  %v1686_v53 = vpop.f32.mrb[84].mxu0 }
 0x326   :  { %v2273_v12 = vld [vmem:[#allocation2 + $0x278] sm:$0xff]  ;;  %v1913_v29 = vadd.f32 %v8139_v49, %v1686_v53  ;;  %v1688_v30 = vpop.f32.mrb[85].mxu0  ;;  %v8493_v10 = vmax.f32 %v2005_v25, %v2007_v47 }
 0x327   :  { %v2275_v24 = vmax.f32 %v2271_v54, %v2273_v12  ;;  %2105 = vst.msk [vmem:[#allocation2 + $0x298] sm:$0xff] %vm2022_vm2, %v2008_v52  ;;  %v1914_v35 = vadd.f32 %v8141_v51, %v1688_v30 }
 0x328   :  { %v2009_v41 = vmax.f32 %v1913_v29, 0.0  ;;  %v8497_v56 = vld [vmem:[#allocation3 + $0x128] sm:$0xff] }
 0x329   :  { %2277 = vst.msk [vmem:[#allocation3 + $0x138] sm:$0xff] %vm2022_vm2, %v2275_v24  ;;  %v2010_v62 = vmax.f32 %v1914_v35, 0.0  ;;  %v1692_v0 = vpop.f32.mrb[86].mxu0  ;;  %5193 = vmatprep.mubr.msk.f32.mxu1 %vm2022_vm2, %v8497_v56 }
 0x32a   :  { %v1915_v13 = vadd.f32 %v8139_v49, %v1692_v0  ;;  %v1694_v57 = vpop.f32.mrb[87].mxu0  ;;  %2609 = vmatmul.mubr.f32.gmra.mrb[36].mxu1 %v8465_v16  ;;  %v2279_v9 = vld [vmem:[#allocation2 + $0x288] sm:$0xff] }
 0x32b   :  { %2107 = vst.msk [vmem:[#allocation2 + $0x2a8] sm:$0xff] %vm2022_vm2, %v2010_v62  ;;  %v1916_v63 = vadd.f32 %v8141_v51, %v1694_v57 }
 0x32c   :  { %v2011_v3 = vmax.f32 %v1915_v13, 0.0 }
 0x32d   :  { %v2012_v6 = vmax.f32 %v1916_v63, 0.0  ;;  %v1698_v7 = vpop.f32.mrb[88].mxu0 }
 0x32e   :  { %v2281_v15 = vld [vmem:[#allocation2 + $0x298] sm:$0xff]  ;;  %v1917_v14 = vadd.f32 %v8139_v49, %v1698_v7  ;;  %v1700_v20 = vpop.f32.mrb[89].mxu0  ;;  %v8507_v21 = vmax.f32 %v2009_v41, %v2011_v3 }
 0x32f   :  { %v2283_v25 = vmax.f32 %v2279_v9, %v2281_v15  ;;  %2109 = vst.msk [vmem:[#allocation2 + $0x2b8] sm:$0xff] %vm2022_vm2, %v2012_v6  ;;  %v1918_v36 = vadd.f32 %v8141_v51, %v1700_v20 }
 0x330   :  { %v2013_v38 = vmax.f32 %v1917_v14, 0.0  ;;  %v8511_v42 = vld [vmem:[#allocation3 + $0x138] sm:$0xff] }
 0x331   :  { %2285 = vst.msk [vmem:[#allocation3 + $0x148] sm:$0xff] %vm2022_vm2, %v2283_v25  ;;  %v2014_v45 = vmax.f32 %v1918_v36, 0.0  ;;  %v1704_v46 = vpop.f32.mrb[90].mxu0  ;;  %5194 = vmatprep.mubr.msk.f32.mxu1 %vm2022_vm2, %v8511_v42 }
 0x332   :  { %v1919_v47 = vadd.f32 %v8139_v49, %v1704_v46  ;;  %v1706_v52 = vpop.f32.mrb[91].mxu0  ;;  %2614 = vmatmul.mubr.f32.gmra.mrb[38].mxu1 %v8479_v17  ;;  %v2287_v30 = vld [vmem:[#allocation2 + $0x2a8] sm:$0xff] }
 0x333   :  { %2111 = vst.msk [vmem:[#allocation2 + $0x2c8] sm:$0xff] %vm2022_vm2, %v2014_v45  ;;  %v1920_v53 = vadd.f32 %v8141_v51, %v1706_v52 }
 0x334   :  { %v2015_v54 = vmax.f32 %v1919_v47, 0.0 }
 0x335   :  { %v2016_v12 = vmax.f32 %v1920_v53, 0.0  ;;  %v1710_v29 = vpop.f32.mrb[92].mxu0 }
 0x336   :  { %v2289_v24 = vld [vmem:[#allocation2 + $0x2b8] sm:$0xff]  ;;  %v1921_v35 = vadd.f32 %v8139_v49, %v1710_v29  ;;  %v1712_v41 = vpop.f32.mrb[93].mxu0  ;;  %v8521_v62 = vmax.f32 %v2013_v38, %v2015_v54  ;;  %v6706_v54 = vld [vmem:[#allocation3 + $0x8] sm:$0xff] }
 0x337   :  { %v2291_v0 = vmax.f32 %v2287_v30, %v2289_v24  ;;  %2113 = vst.msk [vmem:[#allocation2 + $0x2d8] sm:$0xff] %vm2022_vm2, %v2016_v12  ;;  %v1922_v13 = vadd.f32 %v8141_v51, %v1712_v41  ;;  %v6707_v12 = vld [vmem:[#allocation3] sm:$0xff]  ;;  %v6708_v29 = vld [vmem:[#allocation3 + $0x18] sm:$0xff]  ;;  %v6709_v30 = vld [vmem:[#allocation3 + $0x10] sm:$0xff] }
 0x338   :  { %v2017_v57 = vmax.f32 %v1921_v35, 0.0  ;;  %v8525_v63 = vld [vmem:[#allocation3 + $0x148] sm:$0xff]  ;;  %v6711_v35 = vld [vmem:[#allocation3 + $0x20] sm:$0xff]  ;;  %v6712_v41 = vld [vmem:[#allocation3 + $0x30] sm:$0xff] }
 0x339   :  { %2293 = vst.msk [vmem:[#allocation3 + $0x158] sm:$0xff] %vm2022_vm2, %v2291_v0  ;;  %v2018_v3 = vmax.f32 %v1922_v13, 0.0  ;;  %v1716_v6 = vpop.f32.mrb[94].mxu0  ;;  %5195 = vmatprep.mubr.msk.f32.mxu1 %vm2022_vm2, %v8525_v63  ;;  %v6710_v24 = vld [vmem:[#allocation3 + $0x28] sm:$0xff]  ;;  %v6713_v0 = vld [vmem:[#allocation3 + $0x40] sm:$0xff] }
 0x33a   :  { %v1923_v7 = vadd.f32 %v8139_v49, %v1716_v6  ;;  %v1718_v9 = vpop.f32.mrb[95].mxu0  ;;  %2619 = vmatmul.mubr.f32.gmra.mrb[40].mxu1 %v8493_v10  ;;  %v2295_v25 = vld [vmem:[#allocation2 + $0x2c8] sm:$0xff] }
 0x33b   :  { %2115 = vst.msk [vmem:[#allocation2 + $0x2e8] sm:$0xff] %vm2022_vm2, %v2018_v3  ;;  %v1924_v15 = vadd.f32 %v8141_v51, %v1718_v9 }
 0x33c   :  { %v2019_v14 = vmax.f32 %v1923_v7, 0.0 }
 0x33d   :  { %v2020_v20 = vmax.f32 %v1924_v15, 0.0 }
 0x33e   :  { %v2297_v36 = vld [vmem:[#allocation2 + $0x2d8] sm:$0xff]  ;;  %v8534_v38 = vmax.f32 %v2017_v57, %v2019_v14 }
 0x33f   :  { %v2299_v45 = vmax.f32 %v2295_v25, %v2297_v36  ;;  %2117 = vst.msk [vmem:[#allocation2 + $0x2f8] sm:$0xff] %vm2022_vm2, %v2020_v20  ;;  %v2873_v36 = vld [vmem:[%s9513_s4] sm:$0xff] }
 0x340   :  { %v8537_v46 = vld [vmem:[#allocation3 + $0x158] sm:$0xff] }
 0x341   :  { %2301 = vst.msk [vmem:[#allocation3 + $0x168] sm:$0xff] %vm2022_vm2, %v2299_v45  ;;  %5196 = vmatprep.mubr.msk.f32.mxu1 %vm2022_vm2, %v8537_v46 }
 0x342   :  { %2624 = vmatmul.mubr.f32.gmra.mrb[42].mxu1 %v8507_v21  ;;  %v2303_v49 = vld [vmem:[#allocation2 + $0x2e8] sm:$0xff] }
 0x346   :  { %v2305_v51 = vld [vmem:[#allocation2 + $0x2f8] sm:$0xff] }
 0x347   :  { %v2307_v47 = vmax.f32 %v2303_v49, %v2305_v51 }
 0x348   :  { %v8543_v52 = vld [vmem:[#allocation3 + $0x168] sm:$0xff] }
 0x349   :  { %2309 = vst.msk [vmem:[#allocation3 + $0x178] sm:$0xff] %vm2022_vm2, %v2307_v47  ;;  %5197 = vmatprep.mubr.msk.f32.mxu1 %vm2022_vm2, %v8543_v52 }
 0x34a   :  { %2629 = vmatmul.mubr.f32.gmra.mrb[44].mxu1 %v8521_v62 }
 0x350   :  { %v8549_v53 = vld [vmem:[#allocation3 + $0x178] sm:$0xff] }
 0x351   :  { %5198 = vmatprep.mubr.msk.f32.mxu1 %vm2022_vm2, %v8549_v53 }
 0x352   :  { %2634 = vmatmul.mubr.f32.gmra.mrb[46].mxu1 %v8534_v38 }
 0x353   :  { %5223 = vmatprep.mubr.msk.f32.mxu1 %vm2022_vm2, %v6706_v54 }
 0x356   :  { %2729 = vmatmul.mubr.f32.vlgmr.msra.gmra.mrb[48].mxu1 %v6707_v12 }
 0x357   :  { %5224 = vmatprep.mubr.msk.f32.mxu1 %vm2022_vm2, %v6708_v29 }
 0x35a   :  { %2734 = vmatmul.mubr.f32.gmra.mrb[50].mxu1 %v6709_v30 }
 0x35b   :  { %5225 = vmatprep.mubr.msk.f32.mxu1 %vm2022_vm2, %v6710_v24 }
 0x35e   :  { %2739 = vmatmul.mubr.f32.gmra.mrb[52].mxu1 %v6711_v35 }
 0x35f   :  { %5226 = vmatprep.mubr.msk.f32.mxu1 %vm2022_vm2, %v8245_v32 }
 0x362   :  { %2744 = vmatmul.mubr.f32.gmra.mrb[54].mxu1 %v6712_v41 }
 0x363   :  { %5227 = vmatprep.mubr.msk.f32.mxu1 %vm2022_vm2, %v8267_v23 }
 0x366   :  { %2749 = vmatmul.mubr.f32.gmra.mrb[56].mxu1 %v6713_v0 }
 0x367   :  { %5228 = vmatprep.mubr.msk.f32.mxu1 %vm2022_vm2, %v8288_v1 }
 0x36a   :  { %2754 = vmatmul.mubr.f32.gmra.mrb[58].mxu1 %v8241_v60  ;;  %v5247_v60 = vld [vmem:[%s9513_s4 + $0x60] sm:$0xff] }
 0x36b   :  { %5229 = vmatprep.mubr.msk.f32.mxu1 %vm2022_vm2, %v8309_v26 }
 0x36d   :  { %v8566_v13 = vpop.f32.mrb[0].mxu1 }
 0x36e   :  { %v2522_v57 = vpop.f32.mrb[1].mxu1  ;;  %2759 = vmatmul.mubr.f32.gmra.mrb[60].mxu1 %v8262_v19  ;;  %v5248_v19 = vld [vmem:[%s9513_s4 + $0x68] sm:$0xff] }
 0x36f   :  { %5230 = vmatprep.mubr.msk.f32.mxu1 %vm2022_vm2, %v8342_v40  ;;  %v5249_v40 = vld [vmem:[%s9513_s4 + $0x70] sm:$0xff] }
 0x372   :  { %2764 = vmatmul.mubr.f32.gmra.mrb[62].mxu1 %v8283_v50  ;;  %v6299_v50 = vpack.c.bf16 %v5248_v19, %v5247_v60 }
 0x373   :  { %5231 = vmatprep.mubr.msk.f32.mxu1 %vm2022_vm2, %v8357_v18 }
 0x374   :  { %6300 = vmatprep.subr.bf16.mxu1 %v6299_v50 }
 0x375   :  { %v8574_v32 = vpop.f32.mrb[2].mxu1  ;;  %6302 = vmatpush3.bf16.msra.mxu1 %v6299_v50 }
 0x376   :  { %v2527_v23 = vpop.f32.mrb[3].mxu1  ;;  %2769 = vmatmul.mubr.f32.gmra.mrb[64].mxu1 %v8304_v58 }
 0x377   :  { %5232 = vmatprep.mubr.msk.f32.mxu1 %vm2022_vm2, %v8371_v5 }
 0x37a   :  { %2774 = vmatmul.mubr.f32.gmra.mrb[66].mxu1 %v8338_v34 }
 0x37b   :  { %5233 = vmatprep.mubr.msk.f32.mxu1 %vm2022_vm2, %v8385_v39 }
 0x37d   :  { %v8588_v1 = vpop.f32.mrb[4].mxu1 }
 0x37e   :  { %v2532_v58 = vpop.f32.mrb[5].mxu1  ;;  %2779 = vmatmul.mubr.f32.gmra.mrb[68].mxu1 %v8353_v61  ;;  %v5250_v61 = vld [vmem:[%s9513_s4 + $0x78] sm:$0xff] }
 0x37f   :  { %5234 = vmatprep.mubr.msk.f32.mxu1 %vm2022_vm2, %v8399_v27  ;;  %v6303_v18 = vpack.c.bf16 %v5250_v61, %v5249_v40  ;;  %v5252_v27 = vld [vmem:[%s9513_s4 + $0x88] sm:$0xff] }
 0x381   :  { %6304 = vmatprep.subr.bf16.mxu1 %v6303_v18 }
 0x382   :  { %2784 = vmatmul.mubr.f32.gmra.mrb[70].mxu1 %v8367_v59 }
 0x383   :  { %5235 = vmatprep.mubr.msk.f32.mxu1 %vm2022_vm2, %v8413_v11  ;;  %6306 = vmatpush3.bf16.msra.mxu1 %v6303_v18 }
 0x385   :  { %v8596_v26 = vpop.f32.mrb[6].mxu1 }
 0x386   :  { %v2537_v34 = vpop.f32.mrb[7].mxu1  ;;  %2789 = vmatmul.mubr.f32.gmra.mrb[72].mxu1 %v8381_v31 }
 0x387   :  { %5236 = vmatprep.mubr.msk.f32.mxu1 %vm2022_vm2, %v8427_v48 }
 0x38a   :  { %2794 = vmatmul.mubr.f32.gmra.mrb[74].mxu1 %v8395_v8  ;;  %v5251_v8 = vld [vmem:[%s9513_s4 + $0x80] sm:$0xff] }
 0x38b   :  { %5237 = vmatprep.mubr.msk.f32.mxu1 %vm2022_vm2, %v8441_v55  ;;  %v5254_v55 = vld [vmem:[%s9513_s4 + $0x98] sm:$0xff] }
 0x38d   :  { %v8610_v59 = vpop.f32.mrb[8].mxu1 }
 0x38e   :  { %v2542_v5 = vpop.f32.mrb[9].mxu1  ;;  %2799 = vmatmul.mubr.f32.gmra.mrb[76].mxu1 %v8409_v4  ;;  %v6307_v4 = vpack.c.bf16 %v5252_v27, %v5251_v8  ;;  %v2875_v8 = vld [vmem:[%s9513_s4 + $0x10] sm:$0xff]  ;;  %v2876_v27 = vld [vmem:[%s9513_s4 + $0x18] sm:$0xff] }
 0x38f   :  { %5238 = vmatprep.mubr.msk.f32.mxu1 %vm2022_vm2, %v8455_v37 }
 0x390   :  { %6308 = vmatprep.subr.bf16.mxu1 %v6307_v4 }
 0x391   :  { %6310 = vmatpush3.bf16.msra.mxu1 %v6307_v4 }
 0x392   :  { %2804 = vmatmul.mubr.f32.gmra.mrb[78].mxu1 %v8423_v44 }
 0x393   :  { %5239 = vmatprep.mubr.msk.f32.mxu1 %vm2022_vm2, %v8469_v33  ;;  %v5256_v33 = vld [vmem:[%s9513_s4 + $0xa8] sm:$0xff] }
 0x395   :  { %v8618_v31 = vpop.f32.mrb[10].mxu1 }
 0x396   :  { %v2547_v39 = vpop.f32.mrb[11].mxu1  ;;  %2809 = vmatmul.mubr.f32.gmra.mrb[80].mxu1 %v8437_v43  ;;  %v5253_v43 = vld [vmem:[%s9513_s4 + $0x90] sm:$0xff] }
 0x397   :  { %5240 = vmatprep.mubr.msk.f32.mxu1 %vm2022_vm2, %v8483_v28  ;;  %v6311_v37 = vpack.c.bf16 %v5254_v55, %v5253_v43  ;;  %v6327_v55 = vpack.c.bf16 %v2876_v27, %v2875_v8 }
 0x399   :  { %6312 = vmatprep.subr.bf16.mxu1 %v6311_v37 }
 0x39a   :  { %2814 = vmatmul.mubr.f32.gmra.mrb[82].mxu1 %v8451_v22 }
 0x39b   :  { %5241 = vmatprep.mubr.msk.f32.mxu1 %vm2022_vm2, %v8497_v56  ;;  %6314 = vmatpush3.bf16.msra.mxu1 %v6311_v37  ;;  %v5258_v56 = vld [vmem:[%s9513_s4 + $0xb8] sm:$0xff] }
 0x39d   :  { %v8632_v11 = vpop.f32.mrb[12].mxu1 }
 0x39e   :  { %v2552_v44 = vpop.f32.mrb[13].mxu1  ;;  %2819 = vmatmul.mubr.f32.gmra.mrb[84].mxu1 %v8465_v16  ;;  %v5255_v16 = vld [vmem:[%s9513_s4 + $0xa0] sm:$0xff] }
 0x39f   :  { %5242 = vmatprep.mubr.msk.f32.mxu1 %vm2022_vm2, %v8511_v42 }
 0x3a2   :  { %2824 = vmatmul.mubr.f32.gmra.mrb[86].mxu1 %v8479_v17  ;;  %v6315_v17 = vpack.c.bf16 %v5256_v33, %v5255_v16 }
 0x3a3   :  { %5243 = vmatprep.mubr.msk.f32.mxu1 %vm2022_vm2, %v8525_v63 }
 0x3a4   :  { %6316 = vmatprep.subr.bf16.mxu1 %v6315_v17 }
 0x3a5   :  { %v8640_v48 = vpop.f32.mrb[14].mxu1  ;;  %6318 = vmatpush3.bf16.msra.mxu1 %v6315_v17  ;;  %v2879_v17 = vld [vmem:[%s9513_s4 + $0x30] sm:$0xff] }
 0x3a6   :  { %v2557_v22 = vpop.f32.mrb[15].mxu1  ;;  %2829 = vmatmul.mubr.f32.gmra.mrb[88].mxu1 %v8493_v10  ;;  %v5257_v10 = vld [vmem:[%s9513_s4 + $0xb0] sm:$0xff] }
 0x3a7   :  { %5244 = vmatprep.mubr.msk.f32.mxu1 %vm2022_vm2, %v8537_v46  ;;  %v2878_v22 = vld [vmem:[%s9513_s4 + $0x28] sm:$0xff] }
 0x3aa   :  { %2834 = vmatmul.mubr.f32.gmra.mrb[90].mxu1 %v8507_v21  ;;  %v6319_v21 = vpack.c.bf16 %v5258_v56, %v5257_v10  ;;  %v2880_v10 = vld [vmem:[%s9513_s4 + $0x38] sm:$0xff] }
 0x3ab   :  { %5245 = vmatprep.mubr.msk.f32.mxu1 %vm2022_vm2, %v8543_v52 }
 0x3ac   :  { %6320 = vmatprep.subr.bf16.mxu1 %v6319_v21 }
 0x3ad   :  { %v8660_v28 = vpop.f32.mrb[16].mxu1  ;;  %6322 = vmatpush3.bf16.msra.mxu1 %v6319_v21  ;;  %v6335_v21 = vpack.c.bf16 %v2880_v10, %v2879_v17 }
 0x3ae   :  { %v2562_v42 = vpop.f32.mrb[17].mxu1  ;;  %2839 = vmatmul.mubr.f32.gmra.mrb[92].mxu1 %v8521_v62 }
 0x3af   :  { %5246 = vmatprep.mubr.msk.f32.mxu1 %vm2022_vm2, %v8549_v53 }
 0x3b2   :  { %2844 = vmatmul.mubr.f32.gmra.mrb[94].mxu1 %v8534_v38  ;;  %v2874_v38 = vld [vmem:[%s9513_s4 + $0x8] sm:$0xff] }
 0x3b3   :  { %v6323_v46 = vpack.c.bf16 %v2874_v38, %v2873_v36  ;;  %v2883_v36 = vld [vmem:[%s9513_s4 + $0x50] sm:$0xff]  ;;  %v2884_v38 = vld [vmem:[%s9513_s4 + $0x58] sm:$0xff] }
 0x3b5   :  { %v8672_v63 = vpop.f32.mrb[18].mxu1  ;;  %6324 = vmatprep.subr.bf16.mxu1 %v6323_v46 }
 0x3b6   :  { %v2567_v3 = vpop.f32.mrb[19].mxu1 }
 0x3b7   :  { %v2881_v3 = vld [vmem:[%s9513_s4 + $0x40] sm:$0xff] }
 0x3bd   :  { %v8674_v6 = vpop.f32.mrb[20].mxu1 }
 0x3be   :  { %v2572_v7 = vpop.f32.mrb[21].mxu1 }
 0x3bf   :  { %v2882_v7 = vld [vmem:[%s9513_s4 + $0x48] sm:$0xff] }
 0x3c5   :  { %v8676_v9 = vpop.f32.mrb[22].mxu1 }
 0x3c6   :  { %v2577_v15 = vpop.f32.mrb[23].mxu1 }
 0x3cd   :  { %v8678_v14 = vpop.f32.mrb[24].mxu1 }
 0x3ce   :  { %v2582_v62 = vpop.f32.mrb[25].mxu1 }
 0x3d5   :  { %v8680_v20 = vpop.f32.mrb[26].mxu1 }
 0x3d6   :  { %v2587_v25 = vpop.f32.mrb[27].mxu1 }
 0x3d7   :  { %v6339_v25 = vpack.c.bf16 %v2882_v7, %v2881_v3 }
 0x3dd   :  { %v8688_v45 = vpop.f32.mrb[28].mxu1 }
 0x3de   :  { %v2592_v49 = vpop.f32.mrb[29].mxu1 }
 0x3e5   :  { %v8690_v51 = vpop.f32.mrb[30].mxu1 }
 0x3e6   :  { %v2597_v47 = vpop.f32.mrb[31].mxu1 }
 0x3e7   :  { %v6343_v47 = vpack.c.bf16 %v2884_v38, %v2883_v36 }
 0x3ed   :  { %v8692_v52 = vpop.f32.mrb[32].mxu1 }
 0x3ee   :  { %v2602_v53 = vpop.f32.mrb[33].mxu1 }
 0x3ef   :  { %v5303_v53 = vld [vmem:[%s9513_s4 + $0xc0] sm:$0xff] }
 0x3f5   :  { %v8694_v54 = vpop.f32.mrb[34].mxu1 }
 0x3f6   :  { %v2607_v12 = vpop.f32.mrb[35].mxu1 }
 0x3f7   :  { %v5304_v12 = vld [vmem:[%s9513_s4 + $0xc8] sm:$0xff] }
 0x3fd   :  { %v8696_v29 = vpop.f32.mrb[36].mxu1 }
 0x3fe   :  { %v2612_v30 = vpop.f32.mrb[37].mxu1 }
 0x405   :  { %v8698_v24 = vpop.f32.mrb[38].mxu1 }
 0x406   :  { %v2617_v35 = vpop.f32.mrb[39].mxu1 }
 0x40d   :  { %v8700_v41 = vpop.f32.mrb[40].mxu1 }
 0x40e   :  { %v2622_v0 = vpop.f32.mrb[41].mxu1 }
 0x40f   :  { %v8781_v0 = vpack.c.bf16 %v5304_v12, %v5303_v53  ;;  %v5306_v12 = vld [vmem:[%s9513_s4 + $0xd8] sm:$0xff] }
 0x415   :  { %v8702_v57 = vpop.f32.mrb[42].mxu1 }
 0x416   :  { %v2627_v23 = vpop.f32.mrb[43].mxu1 }
 0x41d   :  { %v8704_v60 = vpop.f32.mrb[44].mxu1 }
 0x41e   :  { %v2632_v19 = vpop.f32.mrb[45].mxu1 }
 0x425   :  { %v8706_v50 = vpop.f32.mrb[46].mxu1 }
 0x426   :  { %v2637_v58 = vpop.f32.mrb[47].mxu1 }
 0x429   :  { %v8708_v34 = vpop.f32.mrb[48].mxu1 }
 0x42a   :  { %v2849_v40 = vmax.f32 %v8566_v13, %v8708_v34  ;;  %v2732_v61 = vpop.f32.mrb[49].mxu1  ;;  %v5309_v34 = vld [vmem:[%s9513_s4 + $0xf0] sm:$0xff] }
 0x42d   :  { %v2735_v18 = vpop.f32.mrb[50].mxu1 }
 0x42e   :  { %v8713_v5 = vmax.f32 %v8574_v32, %v2735_v18  ;;  %v2737_v39 = vpop.f32.mrb[51].mxu1  ;;  %v2877_v32 = vld [vmem:[%s9513_s4 + $0x20] sm:$0xff] }
 0x42f   :  { %v6331_v33 = vpack.c.bf16 %v2878_v22, %v2877_v32 }
 0x430   :  { %5685 = vmatprep.mubr.msk.f32.mxu1 %vm2898_vm3, %v8713_v5 }
 0x431   :  { %v2740_v4 = vpop.f32.mrb[52].mxu1 }
 0x432   :  { %v8724_v44 = vmax.f32 %v8588_v1, %v2740_v4  ;;  %v2742_v43 = vpop.f32.mrb[53].mxu1 }
 0x434   :  { %5686 = vmatmul.mubr.msk.f32.vlgmr.msra.gmra.mrb[96].mxu1 %vm2898_vm3, %v8724_v44 }
 0x435   :  { %v2745_v37 = vpop.f32.mrb[54].mxu1  ;;  %6326 = vmatpush3.bf16.msra.mxu1 %v6323_v46 }
 0x436   :  { %v8735_v16 = vmax.f32 %v8596_v26, %v2745_v37  ;;  %v2747_v1 = vpop.f32.mrb[55].mxu1  ;;  %6328 = vmatprep.subr.bf16.mxu1 %v6327_v55 }
 0x438   :  { %5688 = vmatprep.mubr.msk.f32.mxu1 %vm2898_vm3, %v8735_v16 }
 0x439   :  { %v2750_v56 = vpop.f32.mrb[56].mxu1  ;;  %6330 = vmatpush3.bf16.msra.mxu1 %v6327_v55 }
 0x43a   :  { %v8746_v42 = vmax.f32 %v8610_v59, %v2750_v56  ;;  %v2752_v26 = vpop.f32.mrb[57].mxu1  ;;  %6332 = vmatprep.subr.bf16.mxu1 %v6331_v33 }
 0x43c   :  { %5689 = vmatmul.mubr.msk.f32.gmra.mrb[98].mxu1 %vm2898_vm3, %v8746_v42 }
 0x43d   :  { %v2755_v15 = vpop.f32.mrb[58].mxu1  ;;  %6334 = vmatpush3.bf16.msra.mxu1 %v6331_v33 }
 0x43e   :  { %v8757_v62 = vmax.f32 %v8618_v31, %v2755_v15  ;;  %v2757_v59 = vpop.f32.mrb[59].mxu1  ;;  %6336 = vmatprep.subr.bf16.mxu1 %v6335_v21 }
 0x440   :  { %5691 = vmatprep.mubr.msk.f32.mxu1 %vm2898_vm3, %v8757_v62 }
 0x441   :  { %v2760_v46 = vpop.f32.mrb[60].mxu1  ;;  %6338 = vmatpush3.bf16.msra.mxu1 %v6335_v21 }
 0x442   :  { %v8768_v49 = vmax.f32 %v8632_v11, %v2760_v46  ;;  %v2762_v31 = vpop.f32.mrb[61].mxu1  ;;  %6340 = vmatprep.subr.bf16.mxu1 %v6339_v25 }
 0x444   :  { %5692 = vmatmul.mubr.msk.f32.gmra.mrb[100].mxu1 %vm2898_vm3, %v8768_v49 }
 0x445   :  { %v2765_v30 = vpop.f32.mrb[62].mxu1  ;;  %6342 = vmatpush3.bf16.msra.mxu1 %v6339_v25 }
 0x446   :  { %v8779_v35 = vmax.f32 %v8640_v48, %v2765_v30  ;;  %v2767_v11 = vpop.f32.mrb[63].mxu1  ;;  %6344 = vmatprep.subr.bf16.mxu1 %v6343_v47 }
 0x448   :  { %5694 = vmatprep.mubr.msk.f32.mxu1 %vm2898_vm3, %v8779_v35 }
 0x449   :  { %v2770_v23 = vpop.f32.mrb[64].mxu1  ;;  %6346 = vmatpush3.bf16.msra.mxu1 %v6343_v47 }
 0x44a   :  { %v8786_v19 = vmax.f32 %v8660_v28, %v2770_v23  ;;  %v2772_v58 = vpop.f32.mrb[65].mxu1  ;;  %6348 = vmatprep.subr.bf16.mxu1 %v8781_v0  ;;  %v5307_v23 = vld [vmem:[%s9513_s4 + $0xe0] sm:$0xff] }
 0x44b   :  { %v5308_v58 = vld [vmem:[%s9513_s4 + $0xe8] sm:$0xff] }
 0x44c   :  { %5695 = vmatmul.mubr.msk.f32.gmra.mrb[102].mxu1 %vm2898_vm3, %v8786_v19  ;;  %v6355_v13 = vpack.c.bf16 %v5308_v58, %v5307_v23  ;;  %v5349_v58 = vld [vmem:[%s9514_s6 + $0x58] sm:$0xff] }
 0x44d   :  { %v2775_v48 = vpop.f32.mrb[66].mxu1 }
 0x44e   :  { %v8792_v61 = vmax.f32 %v8672_v63, %v2775_v48  ;;  %v2777_v18 = vpop.f32.mrb[67].mxu1  ;;  %v5312_v48 = vld [vmem:[%s9513_s4 + $0x108] sm:$0xff] }
 0x450   :  { %5697 = vmatprep.mubr.msk.f32.mxu1 %vm2898_vm3, %v8792_v61 }
 0x451   :  { %v2780_v39 = vpop.f32.mrb[68].mxu1 }
 0x452   :  { %v8797_v8 = vmax.f32 %v8674_v6, %v2780_v39  ;;  %v2782_v28 = vpop.f32.mrb[69].mxu1  ;;  %v5313_v39 = vld [vmem:[%s9513_s4 + $0x110] sm:$0xff] }
 0x453   :  { %v5314_v28 = vld [vmem:[%s9513_s4 + $0x118] sm:$0xff] }
 0x454   :  { %5698 = vmatmul.mubr.msk.f32.gmra.mrb[104].mxu1 %vm2898_vm3, %v8797_v8 }
 0x455   :  { %v2785_v27 = vpop.f32.mrb[70].mxu1 }
 0x456   :  { %v8802_v4 = vmax.f32 %v8676_v9, %v2785_v27  ;;  %v2787_v43 = vpop.f32.mrb[71].mxu1  ;;  %v6367_v27 = vpack.c.bf16 %v5314_v28, %v5313_v39 }
 0x457   :  { %v3660_v43 = vld [vmem:[%s9514_s6] sm:$0xff] }
 0x458   :  { %5700 = vmatprep.mubr.msk.f32.mxu1 %vm2898_vm3, %v8802_v4 }
 0x459   :  { %v2790_v63 = vpop.f32.mrb[72].mxu1 }
 0x45a   :  { %v8807_v55 = vmax.f32 %v8678_v14, %v2790_v63  ;;  %v2792_v32 = vpop.f32.mrb[73].mxu1  ;;  %v3661_v63 = vld [vmem:[%s9514_s6 + $0x8] sm:$0xff] }
 0x45b   :  { %v6372_v32 = vpack.c.bf16 %v3661_v63, %v3660_v43  ;;  %v5351_v63 = vld [vmem:[%s9514_s6 + $0x68] sm:$0xff] }
 0x45c   :  { %5701 = vmatmul.mubr.msk.f32.gmra.mrb[106].mxu1 %vm2898_vm3, %v8807_v55 }
 0x45d   :  { %v2795_v6 = vpop.f32.mrb[74].mxu1 }
 0x45e   :  { %v8812_v22 = vmax.f32 %v8680_v20, %v2795_v6  ;;  %v2797_v37 = vpop.f32.mrb[75].mxu1  ;;  %v3662_v6 = vld [vmem:[%s9514_s6 + $0x10] sm:$0xff] }
 0x45f   :  { %v3663_v37 = vld [vmem:[%s9514_s6 + $0x18] sm:$0xff] }
 0x460   :  { %5703 = vmatprep.mubr.msk.f32.mxu1 %vm2898_vm3, %v8812_v22 }
 0x461   :  { %v2800_v9 = vpop.f32.mrb[76].mxu1 }
 0x462   :  { %v8817_v1 = vmax.f32 %v8688_v45, %v2800_v9  ;;  %v2802_v33 = vpop.f32.mrb[77].mxu1  ;;  %v6375_v9 = vpack.c.bf16 %v3663_v37, %v3662_v6 }
 0x463   :  { %v3665_v33 = vld [vmem:[%s9514_s6 + $0x28] sm:$0xff] }
 0x464   :  { %5704 = vmatmul.mubr.msk.f32.gmra.mrb[108].mxu1 %vm2898_vm3, %v8817_v1 }
 0x465   :  { %v2805_v14 = vpop.f32.mrb[78].mxu1 }
 0x466   :  { %v8822_v17 = vmax.f32 %v8690_v51, %v2805_v14  ;;  %v2807_v10 = vpop.f32.mrb[79].mxu1 }
 0x468   :  { %5706 = vmatprep.mubr.msk.f32.mxu1 %vm2898_vm3, %v8822_v17 }
 0x469   :  { %v2810_v20 = vpop.f32.mrb[80].mxu1 }
 0x46a   :  { %v8827_v56 = vmax.f32 %v8692_v52, %v2810_v20  ;;  %v2812_v26 = vpop.f32.mrb[81].mxu1 }
 0x46c   :  { %5707 = vmatmul.mubr.msk.f32.gmra.mrb[110].mxu1 %vm2898_vm3, %v8827_v56 }
 0x46d   :  { %v2815_v45 = vpop.f32.mrb[82].mxu1 }
 0x46e   :  { %v8832_v21 = vmax.f32 %v8694_v54, %v2815_v45  ;;  %v2817_v3 = vpop.f32.mrb[83].mxu1 }
 0x470   :  { %5709 = vmatprep.mubr.msk.f32.mxu1 %vm2898_vm3, %v8832_v21 }
 0x471   :  { %v2820_v51 = vpop.f32.mrb[84].mxu1 }
 0x472   :  { %v8837_v7 = vmax.f32 %v8696_v29, %v2820_v51  ;;  %v2822_v15 = vpop.f32.mrb[85].mxu1 }
 0x474   :  { %5710 = vmatmul.mubr.msk.f32.gmra.mrb[112].mxu1 %vm2898_vm3, %v8837_v7 }
 0x475   :  { %v2825_v52 = vpop.f32.mrb[86].mxu1 }
 0x476   :  { %v8842_v59 = vmax.f32 %v8698_v24, %v2825_v52  ;;  %v2827_v25 = vpop.f32.mrb[87].mxu1 }
 0x478   :  { %5712 = vmatprep.mubr.msk.f32.mxu1 %vm2898_vm3, %v8842_v59 }
 0x479   :  { %v2830_v54 = vpop.f32.mrb[88].mxu1 }
 0x47a   :  { %v8847_v36 = vmax.f32 %v8700_v41, %v2830_v54  ;;  %v2832_v38 = vpop.f32.mrb[89].mxu1  ;;  %v5305_v41 = vld [vmem:[%s9513_s4 + $0xd0] sm:$0xff] }
 0x47b   :  { %v6351_v11 = vpack.c.bf16 %v5306_v12, %v5305_v41 }
 0x47c   :  { %5713 = vmatmul.mubr.msk.f32.gmra.mrb[114].mxu1 %vm2898_vm3, %v8847_v36 }
 0x47d   :  { %v2835_v29 = vpop.f32.mrb[90].mxu1 }
 0x47e   :  { %v8852_v46 = vmax.f32 %v8702_v57, %v2835_v29  ;;  %v2837_v31 = vpop.f32.mrb[91].mxu1 }
 0x480   :  { %5715 = vmatprep.mubr.msk.f32.mxu1 %vm2898_vm3, %v8852_v46 }
 0x481   :  { %v2840_v24 = vpop.f32.mrb[92].mxu1 }
 0x482   :  { %v8857_v47 = vmax.f32 %v8704_v60, %v2840_v24  ;;  %v2842_v53 = vpop.f32.mrb[93].mxu1 }
 0x484   :  { %5716 = vmatmul.mubr.msk.f32.gmra.mrb[116].mxu1 %vm2898_vm3, %v8857_v47 }
 0x485   :  { %v8867_v57 = vpop.f32.mrb[94].mxu1  ;;  %5742 = vmatprep.mubr.msk.f32.mxu1 %vm2898_vm3, %v2849_v40  ;;  %v5310_v40 = vld [vmem:[%s9513_s4 + $0xf8] sm:$0xff] }
 0x486   :  { %v2872_v60 = vmax.f32 %v8706_v50, %v8867_v57  ;;  %v2847_v30 = vpop.f32.mrb[95].mxu1  ;;  %v3669_v50 = vld [vmem:[%s9514_s6 + $0x48] sm:$0xff] }
 0x488   :  { %5743 = vmatmul.mubr.msk.f32.vlgmr.msra.gmra.mrb[96].mxu1 %vm2898_vm3, %v8713_v5  ;;  %v6359_v5 = vpack.c.bf16 %v5310_v40, %v5309_v34 }
 0x489   :  { %5745 = vmatprep.mubr.msk.f32.mxu1 %vm2898_vm3, %v8724_v44  ;;  %6350 = vmatpush3.bf16.msra.mxu1 %v8781_v0  ;;  %v5311_v0 = vld [vmem:[%s9513_s4 + $0x100] sm:$0xff] }
 0x48a   :  { %6352 = vmatprep.subr.bf16.mxu1 %v6351_v11  ;;  %v6363_v18 = vpack.c.bf16 %v5312_v48, %v5311_v0 }
 0x48c   :  { %5746 = vmatmul.mubr.msk.f32.gmra.mrb[98].mxu1 %vm2898_vm3, %v8735_v16 }
 0x48d   :  { %5748 = vmatprep.mubr.msk.f32.mxu1 %vm2898_vm3, %v8746_v42  ;;  %6354 = vmatpush3.bf16.msra.mxu1 %v6351_v11 }
 0x48e   :  { %6356 = vmatprep.subr.bf16.mxu1 %v6355_v13 }
 0x490   :  { %5749 = vmatmul.mubr.msk.f32.gmra.mrb[100].mxu1 %vm2898_vm3, %v8757_v62 }
 0x491   :  { %5751 = vmatprep.mubr.msk.f32.mxu1 %vm2898_vm3, %v8768_v49  ;;  %6358 = vmatpush3.bf16.msra.mxu1 %v6355_v13  ;;  %v5350_v13 = vld [vmem:[%s9514_s6 + $0x60] sm:$0xff] }
 0x492   :  { %6360 = vmatprep.subr.bf16.mxu1 %v6359_v5  ;;  %v6387_v28 = vpack.c.bf16 %v5350_v13, %v5349_v58 }
 0x494   :  { %5752 = vmatmul.mubr.msk.f32.gmra.mrb[102].mxu1 %vm2898_vm3, %v8779_v35 }
 0x495   :  { %5754 = vmatprep.mubr.msk.f32.mxu1 %vm2898_vm3, %v8786_v19  ;;  %6362 = vmatpush3.bf16.msra.mxu1 %v6359_v5 }
 0x496   :  { %6364 = vmatprep.subr.bf16.mxu1 %v6363_v18 }
 0x498   :  { %5755 = vmatmul.mubr.msk.f32.gmra.mrb[104].mxu1 %vm2898_vm3, %v8792_v61 }
 0x499   :  { %5757 = vmatprep.mubr.msk.f32.mxu1 %vm2898_vm3, %v8797_v8  ;;  %6366 = vmatpush3.bf16.msra.mxu1 %v6363_v18 }
 0x49a   :  { %6368 = vmatprep.subr.bf16.mxu1 %v6367_v27 }
 0x49c   :  { %5758 = vmatmul.mubr.msk.f32.gmra.mrb[106].mxu1 %vm2898_vm3, %v8802_v4 }
 0x49d   :  { %5760 = vmatprep.mubr.msk.f32.mxu1 %vm2898_vm3, %v8807_v55  ;;  %6370 = vmatpush3.bf16.msra.mxu1 %v6367_v27 }
 0x49e   :  { %6371 = vmatprep.subr.bf16.mxu1 %v6714_v2 }
 0x4a0   :  { %5761 = vmatmul.mubr.msk.f32.gmra.mrb[108].mxu1 %vm2898_vm3, %v8812_v22 }
 0x4a1   :  { %5763 = vmatprep.mubr.msk.f32.mxu1 %vm2898_vm3, %v8817_v1 }
 0x4a4   :  { %5764 = vmatmul.mubr.msk.f32.gmra.mrb[110].mxu1 %vm2898_vm3, %v8822_v17 }
 0x4a5   :  { %5766 = vmatprep.mubr.msk.f32.mxu1 %vm2898_vm3, %v8827_v56 }
 0x4a8   :  { %5767 = vmatmul.mubr.msk.f32.gmra.mrb[112].mxu1 %vm2898_vm3, %v8832_v21 }
 0x4a9   :  { %5769 = vmatprep.mubr.msk.f32.mxu1 %vm2898_vm3, %v8837_v7 }
 0x4ac   :  { %5770 = vmatmul.mubr.msk.f32.gmra.mrb[114].mxu1 %vm2898_vm3, %v8842_v59 }
 0x4ad   :  { %5772 = vmatprep.mubr.msk.f32.mxu1 %vm2898_vm3, %v8847_v36 }
 0x4b0   :  { %5773 = vmatmul.mubr.msk.f32.gmra.mrb[116].mxu1 %vm2898_vm3, %v8852_v46 }
 0x4b1   :  { %5799 = vmatprep.mubr.msk.f32.mxu1 %vm2898_vm3, %v8724_v44  ;;  %v3664_v44 = vld [vmem:[%s9514_s6 + $0x20] sm:$0xff] }
 0x4b4   :  { %5800 = vmatmul.mubr.msk.f32.vlgmr.msra.gmra.mrb[96].mxu1 %vm2898_vm3, %v8735_v16  ;;  %v6378_v16 = vpack.c.bf16 %v3665_v33, %v3664_v44 }
 0x4b5   :  { %5802 = vmatprep.mubr.msk.f32.mxu1 %vm2898_vm3, %v8746_v42  ;;  %6373 = vmatpush3.bf16.msra.mxu1 %v6372_v32  ;;  %v3666_v42 = vld [vmem:[%s9514_s6 + $0x30] sm:$0xff] }
 0x4b6   :  { %6374 = vmatprep.subr.bf16.mxu1 %v6714_v2  ;;  %v5352_v32 = vld [vmem:[%s9514_s6 + $0x70] sm:$0xff] }
 0x4b8   :  { %5803 = vmatmul.mubr.msk.f32.gmra.mrb[98].mxu1 %vm2898_vm3, %v8757_v62  ;;  %v3667_v62 = vld [vmem:[%s9514_s6 + $0x38] sm:$0xff] }
 0x4b9   :  { %5805 = vmatprep.mubr.msk.f32.mxu1 %vm2898_vm3, %v8768_v49  ;;  %6376 = vmatpush3.bf16.msra.mxu1 %v6375_v9  ;;  %v6381_v49 = vpack.c.bf16 %v3667_v62, %v3666_v42 }
 0x4ba   :  { %6377 = vmatprep.subr.bf16.mxu1 %v6714_v2 }
 0x4bc   :  { %5806 = vmatmul.mubr.msk.f32.gmra.mrb[100].mxu1 %vm2898_vm3, %v8779_v35  ;;  %v3668_v35 = vld [vmem:[%s9514_s6 + $0x40] sm:$0xff] }
 0x4bd   :  { %5808 = vmatprep.mubr.msk.f32.mxu1 %vm2898_vm3, %v8786_v19  ;;  %6379 = vmatpush3.bf16.msra.mxu1 %v6378_v16  ;;  %v6384_v19 = vpack.c.bf16 %v3669_v50, %v3668_v35 }
 0x4be   :  { %6380 = vmatprep.subr.bf16.mxu1 %v6714_v2 }
 0x4c0   :  { %5809 = vmatmul.mubr.msk.f32.gmra.mrb[102].mxu1 %vm2898_vm3, %v8792_v61  ;;  %v6715_v61 = vmov 0.0  }
 0x4c1   :  { %5811 = vmatprep.mubr.msk.f32.mxu1 %vm2898_vm3, %v8797_v8  ;;  %6382 = vmatpush3.bf16.msra.mxu1 %v6381_v49  ;;  %v3670_v8 = vld [vmem:[%s9514_s6 + $0x50] sm:$0xff]  ;;  %v6390_v49 = vpack.c.bf16 %v5352_v32, %v5351_v63  ;;  %v5359_v32 = vld [vmem:[%s9514_s6 + $0xa8] sm:$0xff] }
 0x4c2   :  { %6383 = vmatprep.subr.bf16.mxu1 %v6714_v2 }
 0x4c4   :  { %5812 = vmatmul.mubr.msk.f32.gmra.mrb[104].mxu1 %vm2898_vm3, %v8802_v4  ;;  %v9033_v4 = vld [vmem:[%s9515_s5] ss:$0 sm:$0xff] }
 0x4c5   :  { %5814 = vmatprep.mubr.msk.f32.mxu1 %vm2898_vm3, %v8807_v55  ;;  %6385 = vmatpush3.bf16.msra.mxu1 %v6384_v19  ;;  %v5353_v19 = vld [vmem:[%s9514_s6 + $0x78] sm:$0xff] }
 0x4c6   :  { %5852 = vmatprep.subr.mxu1 %v6715_v61 }
 0x4c8   :  { %5815 = vmatmul.mubr.msk.f32.gmra.mrb[106].mxu1 %vm2898_vm3, %v8812_v22 }
 0x4c9   :  { %5817 = vmatprep.mubr.msk.f32.mxu1 %vm2898_vm3, %v8817_v1  ;;  %5853 = vmatpush3.msra.mxu1 %v3670_v8  ;;  %v5354_v8 = vld [vmem:[%s9514_s6 + $0x80] sm:$0xff] }
 0x4ca   :  { %6386 = vmatprep.subr.bf16.mxu1 %v6714_v2 }
 0x4cc   :  { %5818 = vmatmul.mubr.msk.f32.gmra.mrb[108].mxu1 %vm2898_vm3, %v8822_v17 }
 0x4cd   :  { %5820 = vmatprep.mubr.msk.f32.mxu1 %vm2898_vm3, %v8827_v56 }
 0x4d0   :  { %5821 = vmatmul.mubr.msk.f32.gmra.mrb[110].mxu1 %vm2898_vm3, %v8832_v21 }
 0x4d1   :  { %5823 = vmatprep.mubr.msk.f32.mxu1 %vm2898_vm3, %v8837_v7 }
 0x4d4   :  { %5824 = vmatmul.mubr.msk.f32.gmra.mrb[112].mxu1 %vm2898_vm3, %v8842_v59 }
 0x4d5   :  { %5826 = vmatprep.mubr.msk.f32.mxu1 %vm2898_vm3, %v8847_v36 }
 0x4d8   :  { %5827 = vmatmul.mubr.msk.f32.gmra.mrb[114].mxu1 %vm2898_vm3, %v8852_v46 }
 0x4d9   :  { %5829 = vmatprep.mubr.msk.f32.mxu1 %vm2898_vm3, %v8857_v47 }
 0x4dc   :  { %5830 = vmatmul.mubr.msk.f32.gmra.mrb[116].mxu1 %vm2898_vm3, %v2872_v60 }
 0x4dd   :  { %5854 = vmatprep.mubr.msk.f32.mxu1 %vm6716_vm4, %v6715_v61 }
 0x587   :  { %v5801_v55 = vpop.f32.mrb[96].mxu1 }
 0x588   :  { %v3539_v22 = vadd.f32 %v5801_v55, %v9033_v4  ;;  %v3400_v1 = vpop.f32.mrb[97].mxu1 }
 0x589   :  { %v3538_v14 = vadd.f32 %v9033_v4, %v3400_v1 }
 0x58a   :  { %v3561_v17 = vmax.f32 %v3539_v22, 0.0 }
 0x58b   :  { %v3560_v10 = vmax.f32 %v3538_v14, 0.0  ;;  %v5804_v20 = vpop.f32.mrb[98].mxu1 }
 0x58c   :  { %3584 = vst.msk [vmem:[#allocation4 + $0x8] sm:$0xff] %vm3582_vm5, %v3561_v17  ;;  %v3541_v56 = vadd.f32 %v5804_v20, %v9033_v4  ;;  %v3410_v26 = vpop.f32.mrb[99].mxu1 }
 0x58d   :  { %3583 = vst.msk [vmem:[#allocation4] sm:$0xff] %vm3582_vm5, %v3560_v10  ;;  %v3540_v45 = vadd.f32 %v9033_v4, %v3410_v26  ;;  %v6393_v26 = vpack.c.bf16 %v5354_v8, %v5353_v19 }
 0x58e   :  { %v3563_v21 = vmax.f32 %v3541_v56, 0.0 }
 0x58f   :  { %v3562_v3 = vmax.f32 %v3540_v45, 0.0  ;;  %v5807_v51 = vpop.f32.mrb[100].mxu1 }
 0x590   :  { %3586 = vst.msk [vmem:[#allocation4 + $0x18] sm:$0xff] %vm3582_vm5, %v3563_v21  ;;  %v3543_v7 = vadd.f32 %v5807_v51, %v9033_v4  ;;  %v3420_v15 = vpop.f32.mrb[101].mxu1  ;;  %v5356_v51 = vld [vmem:[%s9514_s6 + $0x90] sm:$0xff] }
 0x591   :  { %3585 = vst.msk [vmem:[#allocation4 + $0x10] sm:$0xff] %vm3582_vm5, %v3562_v3  ;;  %v3542_v52 = vadd.f32 %v9033_v4, %v3420_v15  ;;  %v5355_v3 = vld [vmem:[%s9514_s6 + $0x88] sm:$0xff] }
 0x592   :  { %v3565_v59 = vmax.f32 %v3543_v7, 0.0 }
 0x593   :  { %v3606_v25 = vld [vmem:[#allocation4 + $0x8] sm:$0xff]  ;;  %v3564_v54 = vmax.f32 %v3542_v52, 0.0  ;;  %v5810_v36 = vpop.f32.mrb[102].mxu1 }
 0x594   :  { %v3605_v38 = vld [vmem:[#allocation4] sm:$0xff]  ;;  %3588 = vst.msk [vmem:[#allocation4 + $0x28] sm:$0xff] %vm3582_vm5, %v3565_v59  ;;  %v3545_v29 = vadd.f32 %v5810_v36, %v9033_v4  ;;  %v3430_v46 = vpop.f32.mrb[103].mxu1 }
 0x595   :  { %v3607_v31 = vmax.f32 %v3605_v38, %v3606_v25  ;;  %3587 = vst.msk [vmem:[#allocation4 + $0x20] sm:$0xff] %vm3582_vm5, %v3564_v54  ;;  %v3544_v24 = vadd.f32 %v9033_v4, %v3430_v46 }
 0x596   :  { %v3567_v47 = vmax.f32 %v3545_v29, 0.0  ;;  %v6396_v29 = vpack.c.bf16 %v5356_v51, %v5355_v3  ;;  %v4425_v51 = vld [vmem:[%s9517_s9] sm:$0xff] }
 0x597   :  { %3608 = vst.msk [vmem:[#allocation5] sm:$0xff] %vm3582_vm5, %v3607_v31  ;;  %v3610_v53 = vld [vmem:[#allocation4 + $0x18] sm:$0xff]  ;;  %v3566_v41 = vmax.f32 %v3544_v24, 0.0  ;;  %v5813_v12 = vpop.f32.mrb[104].mxu1 }
 0x598   :  { %v3609_v57 = vld [vmem:[#allocation4 + $0x10] sm:$0xff]  ;;  %3590 = vst.msk [vmem:[#allocation4 + $0x38] sm:$0xff] %vm3582_vm5, %v3567_v47  ;;  %v3547_v60 = vadd.f32 %v5813_v12, %v9033_v4  ;;  %v3440_v30 = vpop.f32.mrb[105].mxu1  ;;  %v5357_v24 = vld [vmem:[%s9514_s6 + $0x98] sm:$0xff]  ;;  %v5358_v47 = vld [vmem:[%s9514_s6 + $0xa0] sm:$0xff] }
 0x599   :  { %v3611_v11 = vmax.f32 %v3609_v57, %v3610_v53  ;;  %3589 = vst.msk [vmem:[#allocation4 + $0x30] sm:$0xff] %vm3582_vm5, %v3566_v41  ;;  %v3546_v23 = vadd.f32 %v9033_v4, %v3440_v30  ;;  %v6399_v58 = vpack.c.bf16 %v5358_v47, %v5357_v24 }
 0x59a   :  { %v3569_v34 = vmax.f32 %v3547_v60, 0.0 }
 0x59b   :  { %3612 = vst.msk [vmem:[#allocation5 + $0x8] sm:$0xff] %vm3582_vm5, %v3611_v11  ;;  %v3614_v40 = vld [vmem:[#allocation4 + $0x28] sm:$0xff]  ;;  %v3568_v5 = vmax.f32 %v3546_v23, 0.0  ;;  %v5816_v0 = vpop.f32.mrb[106].mxu1 }
 0x59c   :  { %v3613_v48 = vld [vmem:[#allocation4 + $0x20] sm:$0xff]  ;;  %3592 = vst.msk [vmem:[#allocation4 + $0x48] sm:$0xff] %vm3582_vm5, %v3569_v34  ;;  %v3549_v18 = vadd.f32 %v5816_v0, %v9033_v4  ;;  %v3450_v39 = vpop.f32.mrb[107].mxu1 }
 0x59d   :  { %v3615_v27 = vmax.f32 %v3613_v48, %v3614_v40  ;;  %3591 = vst.msk [vmem:[#allocation4 + $0x40] sm:$0xff] %vm3582_vm5, %v3568_v5  ;;  %v3548_v43 = vadd.f32 %v9033_v4, %v3450_v39 }
 0x59e   :  { %v3571_v6 = vmax.f32 %v3549_v18, 0.0  ;;  %v9071_v37 = vld [vmem:[#allocation5] sm:$0xff] }
 0x59f   :  { %3616 = vst.msk [vmem:[#allocation5 + $0x10] sm:$0xff] %vm3582_vm5, %v3615_v27  ;;  %v3618_v9 = vld [vmem:[#allocation4 + $0x38] sm:$0xff]  ;;  %v3570_v44 = vmax.f32 %v3548_v43, 0.0  ;;  %v5819_v33 = vpop.f32.mrb[108].mxu1  ;;  %5855 = vmatmul.mubr.msk.f32.vlgmr.msra.gmra.mrb[118].mxu1 %vm3582_vm5, %v9071_v37 }
 0x5a0   :  { %v3617_v16 = vld [vmem:[#allocation4 + $0x30] sm:$0xff]  ;;  %3594 = vst.msk [vmem:[#allocation4 + $0x58] sm:$0xff] %vm3582_vm5, %v3571_v6  ;;  %v3551_v42 = vadd.f32 %v5819_v33, %v9033_v4  ;;  %v3460_v62 = vpop.f32.mrb[109].mxu1  ;;  %6388 = vmatpush3.bf16.msra.mxu1 %v6387_v28  ;;  %5857 = vmatprep.mubr.msk.f32.mxu1 %vm6716_vm4, %v6715_v61 }
 0x5a1   :  { %v3619_v35 = vmax.f32 %v3617_v16, %v3618_v9  ;;  %3593 = vst.msk [vmem:[#allocation4 + $0x50] sm:$0xff] %vm3582_vm5, %v3570_v44  ;;  %v3550_v50 = vadd.f32 %v9033_v4, %v3460_v62  ;;  %6389 = vmatprep.subr.bf16.mxu1 %v6714_v2 }
 0x5a2   :  { %v3573_v55 = vmax.f32 %v3551_v42, 0.0  ;;  %v9089_v22 = vld [vmem:[#allocation5 + $0x8] sm:$0xff] }
 0x5a3   :  { %3620 = vst.msk [vmem:[#allocation5 + $0x18] sm:$0xff] %vm3582_vm5, %v3619_v35  ;;  %v3622_v1 = vld [vmem:[#allocation4 + $0x48] sm:$0xff]  ;;  %v3572_v14 = vmax.f32 %v3550_v50, 0.0  ;;  %v5822_v17 = vpop.f32.mrb[110].mxu1  ;;  %5858 = vmatmul.mubr.msk.f32.gmra.mrb[120].mxu1 %vm3582_vm5, %v9089_v22 }
 0x5a4   :  { %v3621_v10 = vld [vmem:[#allocation4 + $0x40] sm:$0xff]  ;;  %3596 = vst.msk [vmem:[#allocation4 + $0x68] sm:$0xff] %vm3582_vm5, %v3573_v55  ;;  %v3553_v20 = vadd.f32 %v5822_v17, %v9033_v4  ;;  %v3470_v56 = vpop.f32.mrb[111].mxu1  ;;  %5860 = vmatprep.mubr.msk.f32.mxu1 %vm6716_vm4, %v6715_v61  ;;  %6391 = vmatpush3.bf16.msra.mxu1 %v6390_v49 }
 0x5a5   :  { %v3623_v45 = vmax.f32 %v3621_v10, %v3622_v1  ;;  %3595 = vst.msk [vmem:[#allocation4 + $0x60] sm:$0xff] %vm3582_vm5, %v3572_v14  ;;  %v3552_v21 = vadd.f32 %v9033_v4, %v3470_v56  ;;  %6392 = vmatprep.subr.bf16.mxu1 %v6714_v2  ;;  %v5374_v56 = vld [vmem:[%s9516_s7 + $0x48] sm:$0xff] }
 0x5a6   :  { %v3575_v7 = vmax.f32 %v3553_v20, 0.0  ;;  %v9107_v15 = vld [vmem:[#allocation5 + $0x10] sm:$0xff] }
 0x5a7   :  { %3624 = vst.msk [vmem:[#allocation5 + $0x20] sm:$0xff] %vm3582_vm5, %v3623_v45  ;;  %v3626_v52 = vld [vmem:[#allocation4 + $0x58] sm:$0xff]  ;;  %v3574_v59 = vmax.f32 %v3552_v21, 0.0  ;;  %v5825_v25 = vpop.f32.mrb[112].mxu1  ;;  %5861 = vmatmul.mubr.msk.f32.gmra.mrb[122].mxu1 %vm3582_vm5, %v9107_v15  ;;  %v5373_v20 = vld [vmem:[%s9516_s7 + $0x40] sm:$0xff]  ;;  %v5375_v45 = vld [vmem:[%s9516_s7 + $0x50] sm:$0xff] }
 0x5a8   :  { %v3625_v54 = vld [vmem:[#allocation4 + $0x50] sm:$0xff]  ;;  %3598 = vst.msk [vmem:[#allocation4 + $0x78] sm:$0xff] %vm3582_vm5, %v3575_v7  ;;  %v3555_v36 = vadd.f32 %v5825_v25, %v9033_v4  ;;  %v3480_v38 = vpop.f32.mrb[113].mxu1  ;;  %5863 = vmatprep.mubr.msk.f32.mxu1 %vm6716_vm4, %v6715_v61  ;;  %6394 = vmatpush3.bf16.msra.mxu1 %v6393_v26  ;;  %v6405_v26 = vpack.c.bf16 %v5374_v56, %v5373_v20  ;;  %v5376_v21 = vld [vmem:[%s9516_s7 + $0x58] sm:$0xf] }
 0x5a9   :  { %v3627_v46 = vmax.f32 %v3625_v54, %v3626_v52  ;;  %3597 = vst.msk [vmem:[#allocation4 + $0x70] sm:$0xff] %vm3582_vm5, %v3574_v59  ;;  %v3554_v31 = vadd.f32 %v9033_v4, %v3480_v38  ;;  %6395 = vmatprep.subr.bf16.mxu1 %v6714_v2  ;;  %v6408_v3 = vpack.c.bf16 %v5376_v21, %v5375_v45 }
 0x5aa   :  { %v3577_v53 = vmax.f32 %v3555_v36, 0.0  ;;  %v9125_v41 = vld [vmem:[#allocation5 + $0x18] sm:$0xff] }
 0x5ab   :  { %3628 = vst.msk [vmem:[#allocation5 + $0x28] sm:$0xff] %vm3582_vm5, %v3627_v46  ;;  %v3630_v12 = vld [vmem:[#allocation4 + $0x68] sm:$0xff]  ;;  %v3576_v57 = vmax.f32 %v3554_v31, 0.0  ;;  %v5828_v60 = vpop.f32.mrb[114].mxu1  ;;  %5864 = vmatmul.mubr.msk.f32.gmra.mrb[124].mxu1 %vm3582_vm5, %v9125_v41 }
 0x5ac   :  { %v3629_v30 = vld [vmem:[#allocation4 + $0x60] sm:$0xff]  ;;  %3600 = vst.msk [vmem:[#allocation4 + $0x88] sm:$0xff] %vm3582_vm5, %v3577_v53  ;;  %v3557_v11 = vadd.f32 %v5828_v60, %v9033_v4  ;;  %v3490_v23 = vpop.f32.mrb[115].mxu1  ;;  %5866 = vmatprep.mubr.msk.f32.mxu1 %vm6716_vm4, %v6715_v61  ;;  %6397 = vmatpush3.bf16.msra.mxu1 %v6396_v29 }
 0x5ad   :  { %v3631_v13 = vmax.f32 %v3629_v30, %v3630_v12  ;;  %3599 = vst.msk [vmem:[#allocation4 + $0x80] sm:$0xff] %vm3582_vm5, %v3576_v57  ;;  %v3556_v34 = vadd.f32 %v9033_v4, %v3490_v23  ;;  %6398 = vmatprep.subr.bf16.mxu1 %v6714_v2 }
 0x5ae   :  { %v3579_v40 = vmax.f32 %v3557_v11, 0.0  ;;  %v3653_v5 = vld [vmem:[#allocation5 + $0x20] sm:$0xff] }
 0x5af   :  { %3632 = vst.msk [vmem:[#allocation5 + $0x30] sm:$0xff] %vm3582_vm5, %v3631_v13  ;;  %v3634_v0 = vld [vmem:[#allocation4 + $0x78] sm:$0xff]  ;;  %v3578_v48 = vmax.f32 %v3556_v34, 0.0  ;;  %v5831_v18 = vpop.f32.mrb[116].mxu1  ;;  %5867 = vmatmul.mubr.msk.f32.gmra.mrb[126].mxu1 %vm3582_vm5, %v3653_v5 }
 0x5b0   :  { %v3633_v39 = vld [vmem:[#allocation4 + $0x70] sm:$0xff]  ;;  %3602 = vst.msk [vmem:[#allocation4 + $0x98] sm:$0xff] %vm3582_vm5, %v3579_v40  ;;  %v3559_v28 = vadd.f32 %v5831_v18, %v9033_v4  ;;  %v3500_v27 = vpop.f32.mrb[117].mxu1  ;;  %5869 = vmatprep.mubr.msk.f32.mxu1 %vm6716_vm4, %v6715_v61  ;;  %6400 = vmatpush3.bf16.msra.mxu1 %v6399_v58 }
 0x5b1   :  { %v3635_v43 = vmax.f32 %v3633_v39, %v3634_v0  ;;  %3601 = vst.msk [vmem:[#allocation4 + $0x90] sm:$0xff] %vm3582_vm5, %v3578_v48  ;;  %v3558_v63 = vadd.f32 %v9033_v4, %v3500_v27  ;;  %5907 = vmatprep.subr.mxu1 %v6715_v61  ;;  %v3968_v0 = vld [vmem:[%s9516_s7 + $0x8] sm:$0xff]  ;;  %v3969_v27 = vld [vmem:[%s9516_s7 + $0x10] sm:$0xff] }
 0x5b2   :  { %v3581_v6 = vmax.f32 %v3559_v28, 0.0  ;;  %v3654_v9 = vld [vmem:[#allocation5 + $0x28] sm:$0xff] }
 0x5b3   :  { %3636 = vst.msk [vmem:[#allocation5 + $0x38] sm:$0xff] %vm3582_vm5, %v3635_v43  ;;  %v3638_v44 = vld [vmem:[#allocation4 + $0x88] sm:$0xff]  ;;  %v3580_v33 = vmax.f32 %v3558_v63, 0.0  ;;  %5870 = vmatmul.mubr.msk.f32.gmra.mrb[128].mxu1 %vm3582_vm5, %v3654_v9  ;;  %v3970_v43 = vld [vmem:[%s9516_s7 + $0x18] sm:$0xff] }
 0x5b4   :  { %v3637_v16 = vld [vmem:[#allocation4 + $0x80] sm:$0xff]  ;;  %3604 = vst.msk [vmem:[#allocation4 + $0xa8] sm:$0xff] %vm3582_vm5, %v3581_v6  ;;  %5872 = vmatprep.mubr.msk.f32.mxu1 %vm6716_vm4, %v6715_v61  ;;  %5908 = vmatpush3.msra.mxu1 %v5359_v32  ;;  %v6415_v32 = vpack.c.bf16 %v3970_v43, %v3969_v27 }
 0x5b5   :  { %v3639_v4 = vmax.f32 %v3637_v16, %v3638_v44  ;;  %3603 = vst.msk [vmem:[#allocation4 + $0xa0] sm:$0xff] %vm3582_vm5, %v3580_v33  ;;  %6401 = vmatprep.subr.bf16.mxu1 %v6714_v2  ;;  %v3971_v44 = vld [vmem:[%s9516_s7 + $0x20] sm:$0xff]  ;;  %v3972_v33 = vld [vmem:[%s9516_s7 + $0x28] sm:$0xf] }
 0x5b6   :  { %v3655_v42 = vld [vmem:[#allocation5 + $0x30] sm:$0xff] }
 0x5b7   :  { %3640 = vst.msk [vmem:[#allocation5 + $0x40] sm:$0xff] %vm3582_vm5, %v3639_v4  ;;  %v3642_v62 = vld [vmem:[#allocation4 + $0x98] sm:$0xff]  ;;  %5873 = vmatmul.mubr.msk.f32.gmra.mrb[130].mxu1 %vm3582_vm5, %v3655_v42  ;;  %v6418_v4 = vpack.c.bf16 %v3972_v33, %v3971_v44 }
 0x5b8   :  { %v3641_v49 = vld [vmem:[#allocation4 + $0x90] sm:$0xff]  ;;  %5875 = vmatprep.mubr.msk.f32.mxu1 %vm6716_vm4, %v6715_v61 }
 0x5b9   :  { %v3643_v35 = vmax.f32 %v3641_v49, %v3642_v62 }
 0x5ba   :  { %v3656_v50 = vld [vmem:[#allocation5 + $0x38] sm:$0xff] }
 0x5bb   :  { %3644 = vst.msk [vmem:[#allocation5 + $0x48] sm:$0xff] %vm3582_vm5, %v3643_v35  ;;  %v3646_v19 = vld [vmem:[#allocation4 + $0xa8] sm:$0xff]  ;;  %5876 = vmatmul.mubr.msk.f32.gmra.mrb[132].mxu1 %vm3582_vm5, %v3656_v50 }
 0x5bc   :  { %v3645_v8 = vld [vmem:[#allocation4 + $0xa0] sm:$0xff]  ;;  %5878 = vmatprep.mubr.msk.f32.mxu1 %vm6716_vm4, %v6715_v61 }
 0x5bd   :  { %v3647_v55 = vmax.f32 %v3645_v8, %v3646_v19 }
 0x5be   :  { %v3657_v1 = vld [vmem:[#allocation5 + $0x40] sm:$0xff] }
 0x5bf   :  { %3648 = vst.msk [vmem:[#allocation5 + $0x50] sm:$0xff] %vm3582_vm5, %v3647_v55  ;;  %5879 = vmatmul.mubr.msk.f32.gmra.mrb[134].mxu1 %vm3582_vm5, %v3657_v1 }
 0x5c0   :  { %5881 = vmatprep.mubr.msk.f32.mxu1 %vm6716_vm4, %v6715_v61 }
 0x5c2   :  { %v3658_v14 = vld [vmem:[#allocation5 + $0x48] sm:$0xff] }
 0x5c3   :  { %5882 = vmatmul.mubr.msk.f32.gmra.mrb[136].mxu1 %vm3582_vm5, %v3658_v14 }
 0x5c4   :  { %5884 = vmatprep.mubr.msk.f32.mxu1 %vm6716_vm4, %v6715_v61 }
 0x5c6   :  { %v3659_v17 = vld [vmem:[#allocation5 + $0x50] sm:$0xff] }
 0x5c7   :  { %5885 = vmatmul.mubr.msk.f32.gmra.mrb[138].mxu1 %vm3582_vm5, %v3659_v17 }
 0x5c8   :  { %5909 = vmatprep.mubr.msk.f32.mxu1 %vm6716_vm4, %v6715_v61 }
 0x5cb   :  { %5910 = vmatmul.mubr.msk.f32.vlgmr.msra.gmra.mrb[140].mxu1 %vm3582_vm5, %v9071_v37  ;;  %v5371_v37 = vld [vmem:[%s9516_s7 + $0x30] sm:$0xff] }
 0x5cc   :  { %5912 = vmatprep.mubr.msk.f32.mxu1 %vm6716_vm4, %v6715_v61 }
 0x5cf   :  { %5913 = vmatmul.mubr.msk.f32.gmra.mrb[142].mxu1 %vm3582_vm5, %v9089_v22  ;;  %v5372_v22 = vld [vmem:[%s9516_s7 + $0x38] sm:$0xff] }
 0x5d0   :  { %5915 = vmatprep.mubr.msk.f32.mxu1 %vm6716_vm4, %v6715_v61  ;;  %v6402_v10 = vpack.c.bf16 %v5372_v22, %v5371_v37 }
 0x5d2   :  { %6403 = vmatpush3.bf16.msra.mxu1 %v6402_v10 }
 0x5d3   :  { %5916 = vmatmul.mubr.msk.f32.gmra.mrb[144].mxu1 %vm3582_vm5, %v9107_v15  ;;  %6404 = vmatprep.subr.bf16.mxu1 %v6714_v2 }
 0x5d4   :  { %5918 = vmatprep.mubr.msk.f32.mxu1 %vm6716_vm4, %v6715_v61 }
 0x5d6   :  { %6406 = vmatpush3.bf16.msra.mxu1 %v6405_v26 }
 0x5d7   :  { %5919 = vmatmul.mubr.msk.f32.gmra.mrb[146].mxu1 %vm3582_vm5, %v9125_v41  ;;  %6407 = vmatprep.subr.bf16.mxu1 %v6714_v2 }
 0x5d8   :  { %5921 = vmatprep.mubr.msk.f32.mxu1 %vm6716_vm4, %v6715_v61 }
 0x5da   :  { %6410 = vmatpush3.bf16.msk.msra.mxu1 %vm9232_vm8, %v6408_v3 }
 0x5db   :  { %5922 = vmatmul.mubr.msk.f32.gmra.mrb[148].mxu1 %vm3582_vm5, %v3653_v5  ;;  %6411 = vmatprep.subr.bf16.mxu1 %v6714_v2  ;;  %v3967_v5 = vld [vmem:[%s9516_s7] sm:$0xff] }
 0x5dc   :  { %5924 = vmatprep.mubr.msk.f32.mxu1 %vm6716_vm4, %v6715_v61  ;;  %v6412_v18 = vpack.c.bf16 %v3968_v0, %v3967_v5 }
 0x5df   :  { %5925 = vmatmul.mubr.msk.f32.gmra.mrb[150].mxu1 %vm3582_vm5, %v3654_v9 }
 0x5e0   :  { %5927 = vmatprep.mubr.msk.f32.mxu1 %vm6716_vm4, %v6715_v61 }
 0x5e3   :  { %5928 = vmatmul.mubr.msk.f32.gmra.mrb[152].mxu1 %vm3582_vm5, %v3655_v42 }
 0x5e4   :  { %5930 = vmatprep.mubr.msk.f32.mxu1 %vm6716_vm4, %v6715_v61 }
 0x5e7   :  { %5931 = vmatmul.mubr.msk.f32.gmra.mrb[154].mxu1 %vm3582_vm5, %v3656_v50 }
 0x5e8   :  { %5933 = vmatprep.mubr.msk.f32.mxu1 %vm6716_vm4, %v6715_v61 }
 0x5eb   :  { %5934 = vmatmul.mubr.msk.f32.gmra.mrb[156].mxu1 %vm3582_vm5, %v3657_v1 }
 0x5ec   :  { %5936 = vmatprep.mubr.msk.f32.mxu1 %vm6716_vm4, %v6715_v61 }
 0x5ef   :  { %5937 = vmatmul.mubr.msk.f32.gmra.mrb[158].mxu1 %vm3582_vm5, %v3658_v14 }
 0x5f0   :  { %5939 = vmatprep.mubr.msk.f32.mxu1 %vm6716_vm4, %v6715_v61 }
 0x5f3   :  { %5940 = vmatmul.mubr.msk.f32.gmra.mrb[160].mxu1 %vm3582_vm5, %v3659_v17 }
 0x5f4   :  { %5954 = vmatprep.mubr.msk.f32.mxu1 %vm6716_vm4, %v6715_v61 }
 0x672   :  { %v9239_v7 = vpop.f32.mrb[118].mxu1 }
 0x673   :  { %v5856_v15 = vpop.f32.mrb[119].mxu1 }
 0x674   :  { %v5397_v15 = vld [vmem:[%s9516_s7 + $0x60] sm:$0xff] }
 0x676   :  { %v3775_v52 = vpop.f32.mrb[120].mxu1 }
 0x677   :  { %v5859_v59 = vpop.f32.mrb[121].mxu1 }
 0x67a   :  { %v3780_v25 = vpop.f32.mrb[122].mxu1 }
 0x67b   :  { %v5862_v54 = vpop.f32.mrb[123].mxu1 }
 0x67e   :  { %v3785_v36 = vpop.f32.mrb[124].mxu1 }
 0x67f   :  { %v5865_v38 = vpop.f32.mrb[125].mxu1 }
 0x680   :  { %v5399_v38 = vld [vmem:[%s9516_s7 + $0x70] sm:$0xff] }
 0x682   :  { %v3790_v29 = vpop.f32.mrb[126].mxu1 }
 0x683   :  { %v5868_v46 = vpop.f32.mrb[127].mxu1 }
 0x686   :  { %v3795_v31 = vpop.f32.mrb[128].mxu1 }
 0x687   :  { %v5871_v24 = vpop.f32.mrb[129].mxu1 }
 0x688   :  { %v5402_v24 = vld [vmem:[%s9516_s7 + $0x88] sm:$0xf] }
 0x68a   :  { %v3800_v47 = vpop.f32.mrb[130].mxu1 }
 0x68b   :  { %v5874_v53 = vpop.f32.mrb[131].mxu1 }
 0x68e   :  { %v3805_v41 = vpop.f32.mrb[132].mxu1 }
 0x68f   :  { %v5877_v12 = vpop.f32.mrb[133].mxu1 }
 0x690   :  { %v4428_v12 = vld [vmem:[%s9517_s9 + $0x18] sm:$0xff] }
 0x692   :  { %v3810_v57 = vpop.f32.mrb[134].mxu1 }
 0x693   :  { %v5880_v60 = vpop.f32.mrb[135].mxu1 }
 0x694   :  { %v4429_v60 = vld [vmem:[%s9517_s9 + $0x20] sm:$0xf] }
 0x696   :  { %v9241_v30 = vpop.f32.mrb[136].mxu1 }
 0x697   :  { %v5883_v11 = vpop.f32.mrb[137].mxu1 }
 0x698   :  { %v5420_v11 = vld [vmem:[%s9517_s9 + $0x30] sm:$0xff] }
 0x69a   :  { %v9243_v23 = vpop.f32.mrb[138].mxu1 }
 0x69b   :  { %v5886_v58 = vpop.f32.mrb[139].mxu1 }
 0x69e   :  { %v9245_v13 = vpop.f32.mrb[140].mxu1 }
 0x69f   :  { %v3956_v34 = vmax.f32 %v9239_v7, %v9245_v13  ;;  %v5911_v40 = vpop.f32.mrb[141].mxu1 }
 0x6a2   :  { %v3907_v48 = vpop.f32.mrb[142].mxu1 }
 0x6a3   :  { %v9255_v39 = vmax.f32 %v3775_v52, %v3907_v48  ;;  %v5914_v28 = vpop.f32.mrb[143].mxu1  ;;  %v5398_v52 = vld [vmem:[%s9516_s7 + $0x68] sm:$0xff] }
 0x6a5   :  { %5955 = vmatmul.mubr.msk.f32.vlgmr.msra.gmra.mrb[162].mxu1 %vm3980_vm9, %v9255_v39 }
 0x6a6   :  { %v3912_v63 = vpop.f32.mrb[144].mxu1  ;;  %6413 = vmatpush3.bf16.msra.mxu1 %v6412_v18  ;;  %5957 = vmatprep.mubr.msk.f32.mxu1 %vm6716_vm4, %v6715_v61 }
 0x6a7   :  { %v9267_v6 = vmax.f32 %v3780_v25, %v3912_v63  ;;  %v5917_v9 = vpop.f32.mrb[145].mxu1  ;;  %6414 = vmatprep.subr.bf16.mxu1 %v6714_v2  ;;  %v6422_v25 = vpack.c.bf16 %v5398_v52, %v5397_v15 }
 0x6a9   :  { %5958 = vmatmul.mubr.msk.f32.gmra.mrb[164].mxu1 %vm3980_vm9, %v9267_v6 }
 0x6aa   :  { %v3917_v16 = vpop.f32.mrb[146].mxu1  ;;  %5960 = vmatprep.mubr.msk.f32.mxu1 %vm6716_vm4, %v6715_v61  ;;  %6416 = vmatpush3.bf16.msra.mxu1 %v6415_v32 }
 0x6ab   :  { %v9280_v42 = vmax.f32 %v3785_v36, %v3917_v16  ;;  %v5920_v62 = vpop.f32.mrb[147].mxu1  ;;  %6417 = vmatprep.subr.bf16.mxu1 %v6714_v2 }
 0x6ad   :  { %5961 = vmatmul.mubr.msk.f32.gmra.mrb[166].mxu1 %vm3980_vm9, %v9280_v42 }
 0x6ae   :  { %v3922_v49 = vpop.f32.mrb[148].mxu1  ;;  %5963 = vmatprep.mubr.msk.f32.mxu1 %vm6716_vm4, %v6715_v61  ;;  %6420 = vmatpush3.bf16.msk.msra.mxu1 %vm9232_vm8, %v6418_v4 }
 0x6af   :  { %v9289_v35 = vmax.f32 %v3790_v29, %v3922_v49  ;;  %v5923_v50 = vpop.f32.mrb[149].mxu1  ;;  %6421 = vmatprep.subr.bf16.mxu1 %v6714_v2  ;;  %v5400_v29 = vld [vmem:[%s9516_s7 + $0x78] sm:$0xff] }
 0x6b0   :  { %v6425_v46 = vpack.c.bf16 %v5400_v29, %v5399_v38 }
 0x6b1   :  { %5964 = vmatmul.mubr.msk.f32.gmra.mrb[168].mxu1 %vm3980_vm9, %v9289_v35 }
 0x6b2   :  { %v3927_v19 = vpop.f32.mrb[150].mxu1  ;;  %5966 = vmatprep.mubr.msk.f32.mxu1 %vm6716_vm4, %v6715_v61 }
 0x6b3   :  { %v9296_v8 = vmax.f32 %v3795_v31, %v3927_v19  ;;  %v5926_v55 = vpop.f32.mrb[151].mxu1  ;;  %v5401_v31 = vld [vmem:[%s9516_s7 + $0x80] sm:$0xff] }
 0x6b4   :  { %v6428_v7 = vpack.c.bf16 %v5402_v24, %v5401_v31 }
 0x6b5   :  { %5967 = vmatmul.mubr.msk.f32.gmra.mrb[170].mxu1 %vm3980_vm9, %v9296_v8 }
 0x6b6   :  { %v3932_v1 = vpop.f32.mrb[152].mxu1  ;;  %5969 = vmatprep.mubr.msk.f32.mxu1 %vm6716_vm4, %v6715_v61 }
 0x6b7   :  { %v3962_v14 = vmax.f32 %v3800_v47, %v3932_v1  ;;  %v5929_v17 = vpop.f32.mrb[153].mxu1  ;;  %v4426_v47 = vld [vmem:[%s9517_s9 + $0x8] sm:$0xff] }
 0x6b8   :  { %v6431_v53 = vpack.c.bf16 %v4426_v47, %v4425_v51 }
 0x6b9   :  { %5970 = vmatmul.mubr.msk.f32.gmra.mrb[172].mxu1 %vm3980_vm9, %v3962_v14 }
 0x6ba   :  { %v3937_v37 = vpop.f32.mrb[154].mxu1  ;;  %5972 = vmatprep.mubr.msk.f32.mxu1 %vm6716_vm4, %v6715_v61 }
 0x6bb   :  { %v3963_v22 = vmax.f32 %v3805_v41, %v3937_v37  ;;  %v5932_v10 = vpop.f32.mrb[155].mxu1  ;;  %v4427_v41 = vld [vmem:[%s9517_s9 + $0x10] sm:$0xff] }
 0x6bd   :  { %5973 = vmatmul.mubr.msk.f32.gmra.mrb[174].mxu1 %vm3980_vm9, %v3963_v22 }
 0x6be   :  { %v3942_v20 = vpop.f32.mrb[156].mxu1  ;;  %5975 = vmatprep.mubr.msk.f32.mxu1 %vm6716_vm4, %v6715_v61 }
 0x6bf   :  { %v3964_v56 = vmax.f32 %v3810_v57, %v3942_v20  ;;  %v5935_v26 = vpop.f32.mrb[157].mxu1  ;;  %v6435_v57 = vpack.c.bf16 %v4428_v12, %v4427_v41 }
 0x6c1   :  { %5976 = vmatmul.mubr.msk.f32.gmra.mrb[176].mxu1 %vm3980_vm9, %v3964_v56 }
 0x6c2   :  { %v3947_v45 = vpop.f32.mrb[158].mxu1  ;;  %5978 = vmatprep.mubr.msk.f32.mxu1 %vm6716_vm4, %v6715_v61 }
 0x6c3   :  { %v3965_v21 = vmax.f32 %v9241_v30, %v3947_v45  ;;  %v5938_v3 = vpop.f32.mrb[159].mxu1  ;;  %v5419_v30 = vld [vmem:[%s9517_s9 + $0x28] sm:$0xff] }
 0x6c5   :  { %5979 = vmatmul.mubr.msk.f32.gmra.mrb[178].mxu1 %vm3980_vm9, %v3965_v21 }
 0x6c6   :  { %v3952_v59 = vpop.f32.mrb[160].mxu1  ;;  %5993 = vmatprep.mubr.msk.f32.mxu1 %vm6716_vm4, %v6715_v61 }
 0x6c7   :  { %v3966_v54 = vmax.f32 %v9243_v23, %v3952_v59  ;;  %v5941_v36 = vpop.f32.mrb[161].mxu1  ;;  %v9425_v23 = vpack.c.bf16 %v5420_v11, %v5419_v30 }
 0x6c8   :  { %v5413_v36 = vld [vmem:[%s9518_s8] ss:$0 sm:$0xff] }
 0x6c9   :  { %5994 = vmatmul.mubr.msk.f32.vlgmr.msra.gmra.mrb[180].mxu1 %vm3980_vm9, %v3956_v34 }
 0x6ca   :  { %6423 = vmatpush3.bf16.msra.mxu1 %v6422_v25  ;;  %5996 = vmatprep.mubr.msk.f32.mxu1 %vm6716_vm4, %v6715_v61 }
 0x6cb   :  { %6424 = vmatprep.subr.bf16.mxu1 %v6714_v2 }
 0x6cd   :  { %5997 = vmatmul.mubr.msk.f32.gmra.mrb[182].mxu1 %vm3980_vm9, %v9255_v39 }
 0x6ce   :  { %5999 = vmatprep.mubr.msk.f32.mxu1 %vm6716_vm4, %v6715_v61  ;;  %6426 = vmatpush3.bf16.msra.mxu1 %v6425_v46 }
 0x6cf   :  { %6427 = vmatprep.subr.bf16.mxu1 %v6714_v2 }
 0x6d1   :  { %6000 = vmatmul.mubr.msk.f32.gmra.mrb[184].mxu1 %vm3980_vm9, %v9267_v6 }
 0x6d2   :  { %6002 = vmatprep.mubr.msk.f32.mxu1 %vm6716_vm4, %v6715_v61  ;;  %6430 = vmatpush3.bf16.msk.msra.mxu1 %vm9232_vm8, %v6428_v7 }
 0x6d3   :  { %6432 = vmatprep.subr.bf16.mxu1 %v6431_v53 }
 0x6d5   :  { %6003 = vmatmul.mubr.msk.f32.gmra.mrb[186].mxu1 %vm3980_vm9, %v9280_v42 }
 0x6d6   :  { %6005 = vmatprep.mubr.msk.f32.mxu1 %vm6716_vm4, %v6715_v61 }
 0x6d9   :  { %6006 = vmatmul.mubr.msk.f32.gmra.mrb[188].mxu1 %vm3980_vm9, %v9289_v35 }
 0x6da   :  { %6008 = vmatprep.mubr.msk.f32.mxu1 %vm6716_vm4, %v6715_v61 }
 0x6dd   :  { %6009 = vmatmul.mubr.msk.f32.gmra.mrb[190].mxu1 %vm3980_vm9, %v9296_v8 }
 0x6de   :  { %6011 = vmatprep.mubr.msk.f32.mxu1 %vm6716_vm4, %v6715_v61 }
 0x6e1   :  { %6012 = vmatmul.mubr.msk.f32.gmra.mrb[192].mxu1 %vm3980_vm9, %v3962_v14 }
 0x6e2   :  { %6014 = vmatprep.mubr.msk.f32.mxu1 %vm6716_vm4, %v6715_v61 }
 0x6e5   :  { %6015 = vmatmul.mubr.msk.f32.gmra.mrb[194].mxu1 %vm3980_vm9, %v3963_v22 }
 0x6e6   :  { %6017 = vmatprep.mubr.msk.f32.mxu1 %vm6716_vm4, %v6715_v61 }
 0x6e9   :  { %6018 = vmatmul.mubr.msk.f32.gmra.mrb[196].mxu1 %vm3980_vm9, %v3964_v56 }
 0x6ea   :  { %6032 = vmatprep.mubr.msk.f32.mxu1 %vm6716_vm4, %v6715_v61 }
 0x6ed   :  { %6033 = vmatmul.mubr.msk.f32.vlgmr.msra.gmra.mrb[198].mxu1 %vm3980_vm9, %v9267_v6 }
 0x6ee   :  { %6035 = vmatprep.mubr.msk.f32.mxu1 %vm6716_vm4, %v6715_v61  ;;  %6434 = vmatpush3.bf16.msra.mxu1 %v6431_v53 }
 0x6ef   :  { %6436 = vmatprep.subr.bf16.mxu1 %v6435_v57 }
 0x6f1   :  { %6036 = vmatmul.mubr.msk.f32.gmra.mrb[200].mxu1 %vm3980_vm9, %v9280_v42 }
 0x6f2   :  { %6038 = vmatprep.mubr.msk.f32.mxu1 %vm6716_vm4, %v6715_v61  ;;  %6438 = vmatpush3.bf16.msra.mxu1 %v6435_v57 }
 0x6f3   :  { %6067 = vmatprep.subr.msk.mxu1 %vm4008_vm6, %v4429_v60 }
 0x6f5   :  { %6039 = vmatmul.mubr.msk.f32.gmra.mrb[202].mxu1 %vm3980_vm9, %v9289_v35 }
 0x6f6   :  { %6041 = vmatprep.mubr.msk.f32.mxu1 %vm6716_vm4, %v6715_v61  ;;  %6068 = vmatpush3.msk.msra.mxu1 %vm4008_vm6, %v4429_v60 }
 0x6f7   :  { %6440 = vmatprep.subr.bf16.mxu1 %v9425_v23 }
 0x6f9   :  { %6042 = vmatmul.mubr.msk.f32.gmra.mrb[204].mxu1 %vm3980_vm9, %v9296_v8 }
 0x6fa   :  { %6044 = vmatprep.mubr.msk.f32.mxu1 %vm6716_vm4, %v6715_v61 }
 0x6fd   :  { %6045 = vmatmul.mubr.msk.f32.gmra.mrb[206].mxu1 %vm3980_vm9, %v3962_v14 }
 0x6fe   :  { %6047 = vmatprep.mubr.msk.f32.mxu1 %vm6716_vm4, %v6715_v61 }
 0x701   :  { %6048 = vmatmul.mubr.msk.f32.gmra.mrb[208].mxu1 %vm3980_vm9, %v3963_v22 }
 0x702   :  { %6050 = vmatprep.mubr.msk.f32.mxu1 %vm6716_vm4, %v6715_v61 }
 0x705   :  { %6051 = vmatmul.mubr.msk.f32.gmra.mrb[210].mxu1 %vm3980_vm9, %v3964_v56 }
 0x706   :  { %6053 = vmatprep.mubr.msk.f32.mxu1 %vm6716_vm4, %v6715_v61 }
 0x709   :  { %6054 = vmatmul.mubr.msk.f32.gmra.mrb[212].mxu1 %vm3980_vm9, %v3965_v21 }
 0x70a   :  { %6056 = vmatprep.mubr.msk.f32.mxu1 %vm6716_vm4, %v6715_v61 }
 0x70d   :  { %6057 = vmatmul.mubr.msk.f32.gmra.mrb[214].mxu1 %vm3980_vm9, %v3966_v54 }
 0x778   :  { %v4078_v58 = vpop.f32.mrb[162].mxu1 }
 0x779   :  { %v5956_v13 = vpop.f32.mrb[163].mxu1 }
 0x77c   :  { %v4083_v34 = vpop.f32.mrb[164].mxu1 }
 0x77d   :  { %v5959_v40 = vpop.f32.mrb[165].mxu1 }
 0x780   :  { %v4088_v5 = vpop.f32.mrb[166].mxu1 }
 0x781   :  { %v5962_v0 = vpop.f32.mrb[167].mxu1 }
 0x784   :  { %v4093_v48 = vpop.f32.mrb[168].mxu1 }
 0x785   :  { %v5965_v18 = vpop.f32.mrb[169].mxu1 }
 0x788   :  { %v4098_v39 = vpop.f32.mrb[170].mxu1 }
 0x789   :  { %v5968_v28 = vpop.f32.mrb[171].mxu1 }
 0x78c   :  { %v4103_v27 = vpop.f32.mrb[172].mxu1 }
 0x78d   :  { %v5971_v43 = vpop.f32.mrb[173].mxu1 }
 0x790   :  { %v4108_v63 = vpop.f32.mrb[174].mxu1 }
 0x791   :  { %v5974_v32 = vpop.f32.mrb[175].mxu1 }
 0x794   :  { %v4113_v6 = vpop.f32.mrb[176].mxu1 }
 0x795   :  { %v5977_v9 = vpop.f32.mrb[177].mxu1 }
 0x798   :  { %v4118_v44 = vpop.f32.mrb[178].mxu1 }
 0x799   :  { %v5980_v33 = vpop.f32.mrb[179].mxu1 }
 0x79c   :  { %v4194_v16 = vpop.f32.mrb[180].mxu1 }
 0x79d   :  { %v4195_v4 = vadd.f32 %v4194_v16, %v4078_v58  ;;  %v5995_v42 = vpop.f32.mrb[181].mxu1 }
 0x7a0   :  { %v4199_v62 = vpop.f32.mrb[182].mxu1 }
 0x7a1   :  { %v4200_v49 = vadd.f32 %v4199_v62, %v4083_v34  ;;  %v5998_v35 = vpop.f32.mrb[183].mxu1 }
 0x7a4   :  { %v4204_v50 = vpop.f32.mrb[184].mxu1 }
 0x7a5   :  { %v4205_v19 = vadd.f32 %v4204_v50, %v4088_v5  ;;  %v6001_v8 = vpop.f32.mrb[185].mxu1 }
 0x7a8   :  { %v4209_v55 = vpop.f32.mrb[186].mxu1 }
 0x7a9   :  { %v4210_v1 = vadd.f32 %v4209_v55, %v4093_v48  ;;  %v6004_v14 = vpop.f32.mrb[187].mxu1 }
 0x7ac   :  { %v4214_v17 = vpop.f32.mrb[188].mxu1 }
 0x7ad   :  { %v4215_v37 = vadd.f32 %v4214_v17, %v4098_v39  ;;  %v6007_v22 = vpop.f32.mrb[189].mxu1 }
 0x7ae   :  { %v5422_v22 = vld [vmem:[%s9517_s9 + $0x40] sm:$0xff] }
 0x7b0   :  { %v4219_v10 = vpop.f32.mrb[190].mxu1 }
 0x7b1   :  { %v4220_v20 = vadd.f32 %v4219_v10, %v4103_v27  ;;  %v6010_v56 = vpop.f32.mrb[191].mxu1 }
 0x7b4   :  { %v4224_v26 = vpop.f32.mrb[192].mxu1 }
 0x7b5   :  { %v4225_v45 = vadd.f32 %v4224_v26, %v4108_v63  ;;  %v6013_v21 = vpop.f32.mrb[193].mxu1 }
 0x7b8   :  { %v4229_v3 = vpop.f32.mrb[194].mxu1 }
 0x7b9   :  { %v4230_v15 = vadd.f32 %v4229_v3, %v4113_v6  ;;  %v6016_v52 = vpop.f32.mrb[195].mxu1 }
 0x7bc   :  { %v4234_v59 = vpop.f32.mrb[196].mxu1 }
 0x7bd   :  { %v6019_v25 = vpop.f32.mrb[197].mxu1 }
 0x7c0   :  { %v4317_v54 = vpop.f32.mrb[198].mxu1 }
 0x7c1   :  { %v4361_v38 = vadd.f32 %v4317_v54, %v4195_v4  ;;  %v6034_v29 = vpop.f32.mrb[199].mxu1 }
 0x7c3   :  { %v4377_v46 = vadd.f32 %v5413_v36, %v4361_v38  ;;  %v4630_v38 = vld [vmem:[%s9519_s10 + $0x8] sm:$0xff] }
 0x7c4   :  { %v4322_v31 = vpop.f32.mrb[200].mxu1 }
 0x7c5   :  { %v4386_v24 = vmax.f32 %v4377_v46, 0.0  ;;  %v4362_v7 = vadd.f32 %v4322_v31, %v4200_v49  ;;  %v6037_v51 = vpop.f32.mrb[201].mxu1 }
 0x7c6   :  { %v5431_v51 = vld [vmem:[%s9519_s10 + $0x10] sm:$0xff] }
 0x7c7   :  { %4396 = vst.msk [vmem:[#allocation6] sm:$0xff] %vm4395_vm10, %v4386_v24  ;;  %v4378_v47 = vadd.f32 %v5413_v36, %v4362_v7 }
 0x7c8   :  { %v4327_v53 = vpop.f32.mrb[202].mxu1 }
 0x7c9   :  { %v4387_v41 = vmax.f32 %v4378_v47, 0.0  ;;  %v4363_v12 = vadd.f32 %v4327_v53, %v4205_v19  ;;  %v6040_v57 = vpop.f32.mrb[203].mxu1  ;;  %v5432_v47 = vld [vmem:[%s9519_s10 + $0x18] sm:$0xff] }
 0x7ca   :  { %v6451_v57 = vpack.c.bf16 %v5432_v47, %v5431_v51 }
 0x7cb   :  { %4397 = vst.msk [vmem:[#allocation6 + $0x8] sm:$0xff] %vm4395_vm10, %v4387_v41  ;;  %v4379_v60 = vadd.f32 %v5413_v36, %v4363_v12 }
 0x7cc   :  { %v4332_v30 = vpop.f32.mrb[204].mxu1 }
 0x7cd   :  { %v4388_v11 = vmax.f32 %v4379_v60, 0.0  ;;  %v4364_v58 = vadd.f32 %v4332_v30, %v4210_v1  ;;  %v6043_v13 = vpop.f32.mrb[205].mxu1 }
 0x7ce   :  { %v4405_v18 = vld [vmem:[#allocation6] sm:$0xff] }
 0x7cf   :  { %4398 = vst.msk [vmem:[#allocation6 + $0x10] sm:$0xff] %vm4395_vm10, %v4388_v11  ;;  %v4380_v34 = vadd.f32 %v5413_v36, %v4364_v58 }
 0x7d0   :  { %v4337_v40 = vpop.f32.mrb[206].mxu1 }
 0x7d1   :  { %v4389_v5 = vmax.f32 %v4380_v34, 0.0  ;;  %v4365_v0 = vadd.f32 %v4337_v40, %v4215_v37  ;;  %v6046_v48 = vpop.f32.mrb[207].mxu1  ;;  %v5421_v37 = vld [vmem:[%s9517_s9 + $0x38] sm:$0xff]  ;;  %v5434_v34 = vld [vmem:[%s9519_s10 + $0x20] sm:$0xff]  ;;  %v5435_v40 = vld [vmem:[%s9519_s10 + $0x28] sm:$0xff] }
 0x7d2   :  { %v4406_v39 = vld [vmem:[#allocation6 + $0x8] sm:$0xff]  ;;  %v6443_v21 = vpack.c.bf16 %v5422_v22, %v5421_v37  ;;  %v5438_v48 = vld [vmem:[%s9519_s10 + $0x38] sm:$0xff] }
 0x7d3   :  { %4399 = vst.msk [vmem:[#allocation6 + $0x18] sm:$0xff] %vm4395_vm10, %v4389_v5  ;;  %v4381_v28 = vadd.f32 %v5413_v36, %v4365_v0  ;;  %v4407_v27 = vmax.f32 %v4405_v18, %v4406_v39  ;;  %v6454_v5 = vpack.c.bf16 %v5435_v40, %v5434_v34  ;;  %v5437_v0 = vld [vmem:[%s9519_s10 + $0x30] sm:$0xff] }
 0x7d4   :  { %v4342_v43 = vpop.f32.mrb[208].mxu1  ;;  %v6457_v18 = vpack.c.bf16 %v5438_v48, %v5437_v0 }
 0x7d5   :  { %v4390_v63 = vmax.f32 %v4381_v28, 0.0  ;;  %v4366_v32 = vadd.f32 %v4342_v43, %v4220_v20  ;;  %v6049_v6 = vpop.f32.mrb[209].mxu1  ;;  %4408 = vst.msk [vmem:[#allocation7] sm:$0xff] %vm4395_vm10, %v4407_v27 }
 0x7d6   :  { %v4409_v42 = vld [vmem:[#allocation6 + $0x10] sm:$0xff] }
 0x7d7   :  { %4400 = vst.msk [vmem:[#allocation6 + $0x20] sm:$0xff] %vm4395_vm10, %v4390_v63  ;;  %v4382_v9 = vadd.f32 %v5413_v36, %v4366_v32 }
 0x7d8   :  { %v4347_v44 = vpop.f32.mrb[210].mxu1 }
 0x7d9   :  { %v4391_v33 = vmax.f32 %v4382_v9, 0.0  ;;  %v4367_v16 = vadd.f32 %v4347_v44, %v4225_v45  ;;  %v6052_v4 = vpop.f32.mrb[211].mxu1 }
 0x7da   :  { %v4410_v62 = vld [vmem:[#allocation6 + $0x18] sm:$0xff] }
 0x7db   :  { %v4411_v49 = vmax.f32 %v4409_v42, %v4410_v62  ;;  %4401 = vst.msk [vmem:[#allocation6 + $0x28] sm:$0xff] %vm4395_vm10, %v4391_v33  ;;  %v4383_v35 = vadd.f32 %v5413_v36, %v4367_v16 }
 0x7dc   :  { %v4352_v50 = vpop.f32.mrb[212].mxu1  ;;  %v4421_v19 = vld [vmem:[#allocation7] sm:$0xff] }
 0x7dd   :  { %4412 = vst.msk [vmem:[#allocation7 + $0x8] sm:$0xff] %vm4395_vm10, %v4411_v49  ;;  %v4392_v8 = vmax.f32 %v4383_v35, 0.0  ;;  %v4368_v55 = vadd.f32 %v4352_v50, %v4230_v15  ;;  %v6055_v1 = vpop.f32.mrb[213].mxu1  ;;  %6069 = vmatprep.mubr.msk.f32.mxu1 %vm4395_vm10, %v4421_v19  ;;  %v5423_v15 = vld [vmem:[%s9517_s9 + $0x48] sm:$0xf] }
 0x7de   :  { %v4413_v56 = vld [vmem:[#allocation6 + $0x20] sm:$0xff] }
 0x7df   :  { %4402 = vst.msk [vmem:[#allocation6 + $0x30] sm:$0xff] %vm4395_vm10, %v4392_v8  ;;  %v4384_v14 = vadd.f32 %v5413_v36, %v4368_v55  ;;  %v4629_v36 = vld [vmem:[%s9519_s10] sm:$0xff] }
 0x7e0   :  { %v4357_v17 = vpop.f32.mrb[214].mxu1  ;;  %v6448_v29 = vpack.c.bf16 %v4630_v38, %v4629_v36 }
 0x7e1   :  { %v4393_v10 = vmax.f32 %v4384_v14, 0.0  ;;  %v6058_v20 = vpop.f32.mrb[215].mxu1 }
 0x7e2   :  { %v4414_v26 = vld [vmem:[#allocation6 + $0x28] sm:$0xff] }
 0x7e3   :  { %4403 = vst.msk [vmem:[#allocation6 + $0x38] sm:$0xff] %vm4395_vm10, %v4393_v10  ;;  %v4415_v45 = vmax.f32 %v4413_v56, %v4414_v26 }
 0x7e4   :  { %v4422_v3 = vld [vmem:[#allocation7 + $0x8] sm:$0xff] }
 0x7e5   :  { %6070 = vmatmul.mubr.msk.f32.vlgmr.msra.gmra.mrb[216].mxu1 %vm4395_vm10, %v4422_v3  ;;  %4416 = vst.msk [vmem:[#allocation7 + $0x10] sm:$0xff] %vm4395_vm10, %v4415_v45 }
 0x7e6   :  { %6442 = vmatpush3.bf16.msra.mxu1 %v9425_v23  ;;  %v4417_v52 = vld [vmem:[#allocation6 + $0x30] sm:$0xff] }
 0x7e7   :  { %6444 = vmatprep.subr.bf16.mxu1 %v6443_v21 }
 0x7ea   :  { %v4418_v59 = vld [vmem:[#allocation6 + $0x38] sm:$0xff]  ;;  %6446 = vmatpush3.bf16.msra.mxu1 %v6443_v21 }
 0x7eb   :  { %v4419_v25 = vmax.f32 %v4417_v52, %v4418_v59  ;;  %6083 = vmatprep.subr.msk.mxu1 %vm4008_vm6, %v5423_v15 }
 0x7ec   :  { %v4423_v54 = vld [vmem:[#allocation7 + $0x10] sm:$0xff] }
 0x7ed   :  { %6072 = vmatprep.mubr.msk.f32.mxu1 %vm4395_vm10, %v4423_v54  ;;  %4420 = vst.msk [vmem:[#allocation7 + $0x18] sm:$0xff] %vm4395_vm10, %v4419_v25 }
 0x7ee   :  { %6084 = vmatpush3.msk.msra.mxu1 %vm4008_vm6, %v5423_v15 }
 0x7ef   :  { %6447 = vmatprep.subr.bf16.mxu1 %v6714_v2 }
 0x7f4   :  { %v4424_v23 = vld [vmem:[#allocation7 + $0x18] sm:$0xff] }
 0x7f5   :  { %6073 = vmatmul.mubr.msk.f32.gmra.mrb[218].mxu1 %vm4395_vm10, %v4424_v23 }
 0x7f6   :  { %6085 = vmatprep.mubr.msk.f32.mxu1 %vm4395_vm10, %v4421_v19 }
 0x7f9   :  { %6086 = vmatmul.mubr.msk.f32.vlgmr.msra.gmra.mrb[220].mxu1 %vm4395_vm10, %v4422_v3 }
 0x7fa   :  { %6088 = vmatprep.mubr.msk.f32.mxu1 %vm4395_vm10, %v4423_v54  ;;  %6449 = vmatpush3.bf16.msra.mxu1 %v6448_v29 }
 0x7fb   :  { %6450 = vmatprep.subr.bf16.mxu1 %v6714_v2 }
 0x7fd   :  { %6089 = vmatmul.mubr.msk.f32.gmra.mrb[222].mxu1 %vm4395_vm10, %v4424_v23 }
 0x7fe   :  { %6095 = vmatprep.mubr.msk.f32.mxu1 %vm6716_vm4, %v6715_v61 }
 0x8b8   :  { %v6071_v46 = vpop.f32.mrb[216].mxu1 }
 0x8b9   :  { %v4511_v31 = vpop.f32.mrb[217].mxu1 }
 0x8c8   :  { %v6074_v24 = vpop.f32.mrb[218].mxu1 }
 0x8c9   :  { %v4521_v7 = vpop.f32.mrb[219].mxu1 }
 0x8cc   :  { %v6087_v53 = vpop.f32.mrb[220].mxu1 }
 0x8cd   :  { %v4625_v41 = vmax.f32 %v6071_v46, %v6087_v53  ;;  %v4605_v12 = vpop.f32.mrb[221].mxu1 }
 0x8ce   :  { %v4624_v60 = vmax.f32 %v4511_v31, %v4605_v12 }
 0x8d0   :  { %v6090_v30 = vpop.f32.mrb[222].mxu1  ;;  %6096 = vmatmul.mubr.msk.f32.vlgmr.msra.gmra.mrb[224].mxu1 %vm4631_vm11, %v4624_v60 }
 0x8d1   :  { %v4627_v11 = vmax.f32 %v6074_v24, %v6090_v30  ;;  %v4615_v58 = vpop.f32.mrb[223].mxu1  ;;  %6452 = vmatpush3.bf16.msra.mxu1 %v6451_v57  ;;  %6102 = vmatprep.mubr.msk.f32.mxu1 %vm6716_vm4, %v6715_v61 }
 0x8d2   :  { %v4626_v13 = vmax.f32 %v4521_v7, %v4615_v58  ;;  %6453 = vmatprep.subr.bf16.mxu1 %v6714_v2 }
 0x8d8   :  { %6103 = vmatmul.mubr.msk.f32.vlgmr.msra.gmra.mrb[224].mxu1 %vm4631_vm11, %v4625_v41 }
 0x8d9   :  { %6455 = vmatpush3.bf16.msra.mxu1 %v6454_v5  ;;  %6109 = vmatprep.mubr.msk.f32.mxu1 %vm6716_vm4, %v6715_v61 }
 0x8da   :  { %6456 = vmatprep.subr.bf16.mxu1 %v6714_v2  ;;  %v5430_v2 = vld [vmem:[%s9520_s11] ss:$0 sm:$0xff] }
 0x8e0   :  { %6110 = vmatmul.mubr.msk.f32.vlgmr.msra.gmra.mrb[224].mxu1 %vm4631_vm11, %v4626_v13 }
 0x8e1   :  { %6458 = vmatpush3.bf16.msra.mxu1 %v6457_v18  ;;  %6116 = vmatprep.mubr.msk.f32.mxu1 %vm6716_vm4, %v6715_v61 }
 0x8e8   :  { %6117 = vmatmul.mubr.msk.f32.vlgmr.msra.gmra.mrb[224].mxu1 %vm4631_vm11, %v4627_v11 }
 0x9bb   :  { %v4938_v39 = vpop.f32.mrb[224].mxu1 }
 0x9bc   :  { %v6459_v28 = vadd.f32 %v5430_v2, %v4938_v39  ;;  %v6118_v27 = vpop.f32.mrb[225].mxu1 }
 0x9be   :  { %4944 = vst.msk [vmem:[%s9521_s12] sm:$0xff] %vm4943_vm12, %v6459_v28 }

</bundles_post_ra>
